<compile_context>
chip_gen: v7x
topology: tpu7x:2x2x1
jax: 0.10.0
libtpu: 0.0.40
codegen_flags: <defaults>
</compile_context>

<pallas_src>
import functools
import math

import jax
import jax.numpy as jnp
from jax.experimental import pallas as pl
from jax.experimental.pallas import tpu as pltpu

LN_EPS = 1e-5
NEG = -1e9  # additive mask value (test inputs contain no fully-masked rows)

_TRANS_B = (((1,), (1,)), ((), ()))  # contract last dims of both operands (q @ k^T w/o k.T)


# ----------------------------- in-kernel helpers -----------------------------

def _layernorm(x, g, b):
    mean = jnp.mean(x, axis=-1, keepdims=True)
    var = jnp.mean((x - mean) ** 2, axis=-1, keepdims=True)
    return (x - mean) * jax.lax.rsqrt(var + LN_EPS) * g + b


def _mha(q, k, v, wo, bo, bias, num_heads):
    """Multi-head attention + output projection for one batch element.

    q: [T, E] (1/sqrt(Dh) already folded into the q projection), k/v: [S, E].
    Head contexts are folded straight into the output projection
    (out = bo + sum_h attn_h @ wo[h*Dh:(h+1)*Dh, :]) so no lane-concat is needed.
    bias: None, [1, S] (key padding) or [T, S] (causal + padding), additive.
    """
    T, E = q.shape
    Dh = E // num_heads
    out = bo  # [1, E], broadcasts on first accumulate
    for h in range(num_heads):
        sl = slice(h * Dh, (h + 1) * Dh)
        s = jax.lax.dot_general(q[:, sl], k[:, sl], _TRANS_B,
                                preferred_element_type=jnp.float32)        # [T, S]
        if bias is not None:
            s = s + bias
        s = s - jnp.max(s, axis=-1, keepdims=True)
        p = jnp.exp(s)
        # approx reciprocal uses the EUP slot (free); tiny rel. error vs exact divide.
        p = p * pl.reciprocal(jnp.sum(p, axis=-1, keepdims=True), approx=True)
        ah = jnp.dot(p, v[:, sl], preferred_element_type=jnp.float32)      # [T, Dh]
        out = out + jnp.dot(ah, wo[sl, :], preferred_element_type=jnp.float32)
    return out


# ----------------------------- fused whole-model kernel -----------------------------

def _fused_transformer_kernel(
        # per-batch activations / masks
        src_ref, tgt_ref, sbias_ref, tbias_ref,
        # encoder weights (stacked over layers)
        e_wqkv, e_bqkv, e_wo, e_bo, e_g1, e_bt1, e_w1, e_bf1, e_w2, e_bf2, e_g2, e_bt2,
        # decoder weights (stacked over layers)
        d_wqkv, d_bqkv, d_swo, d_sbo,
        d_cwq, d_cbq, d_cwkv, d_cbkv, d_cwo, d_cbo,
        d_g1, d_bt1, d_g2, d_bt2, d_g3, d_bt3,
        d_w1, d_bf1, d_w2, d_bf2,
        # final norms + output projection (vocab padded to a 128 multiple)
        en_g, en_b, dn_g, dn_b, fc_w, fc_b,
        # output
        out_ref,
        *, num_heads, num_layers):
    x = src_ref[0].astype(jnp.float32)          # [S, E]
    y = tgt_ref[0].astype(jnp.float32)          # [T, E]
    S, E = x.shape
    T = y.shape[0]

    src_bias = sbias_ref[0]                     # [1, S] additive key-padding bias
    tgt_bias = tbias_ref[0]                     # [1, T]

    # causal mask built in-kernel (never DMA'd from HBM)
    row = jax.lax.broadcasted_iota(jnp.int32, (T, T), 0)
    col = jax.lax.broadcasted_iota(jnp.int32, (T, T), 1)
    dec_self_bias = jnp.where(col > row, NEG, 0.0).astype(jnp.float32) + tgt_bias  # [T, T]

    # ---------------- encoder ----------------
    for l in range(num_layers):
        qkv = jnp.dot(x, e_wqkv[l], preferred_element_type=jnp.float32) + e_bqkv[l]
        a = _mha(qkv[:, :E], qkv[:, E:2 * E], qkv[:, 2 * E:],
                 e_wo[l], e_bo[l], src_bias, num_heads)
        x = _layernorm(x + a, e_g1[l], e_bt1[l])
        h = jnp.maximum(
            jnp.dot(x, e_w1[l], preferred_element_type=jnp.float32) + e_bf1[l], 0.0)
        f = jnp.dot(h, e_w2[l], preferred_element_type=jnp.float32) + e_bf2[l]
        x = _layernorm(x + f, e_g2[l], e_bt2[l])
    mem = _layernorm(x, en_g[...], en_b[...])   # final encoder norm added by nn.Transformer

    # ---------------- decoder ----------------
    for l in range(num_layers):
        # masked self-attention
        qkv = jnp.dot(y, d_wqkv[l], preferred_element_type=jnp.float32) + d_bqkv[l]
        a = _mha(qkv[:, :E], qkv[:, E:2 * E], qkv[:, 2 * E:],
                 d_swo[l], d_sbo[l], dec_self_bias, num_heads)
        y = _layernorm(y + a, d_g1[l], d_bt1[l])
        # cross-attention over encoder memory (module never passes a memory mask)
        q = jnp.dot(y, d_cwq[l], preferred_element_type=jnp.float32) + d_cbq[l]
        kv = jnp.dot(mem, d_cwkv[l], preferred_element_type=jnp.float32) + d_cbkv[l]
        a = _mha(q, kv[:, :E], kv[:, E:], d_cwo[l], d_cbo[l], None, num_heads)
        y = _layernorm(y + a, d_g2[l], d_bt2[l])
        # FFN (hidden activation never leaves VMEM/registers)
        h = jnp.maximum(
            jnp.dot(y, d_w1[l], preferred_element_type=jnp.float32) + d_bf1[l], 0.0)
        f = jnp.dot(h, d_w2[l], preferred_element_type=jnp.float32) + d_bf2[l]
        y = _layernorm(y + f, d_g3[l], d_bt3[l])
    y = _layernorm(y, dn_g[...], dn_b[...])     # final decoder norm added by nn.Transformer

    # lane-dense (128-multiple) output projection store
    logits = jnp.dot(y, fc_w[...], preferred_element_type=jnp.float32) + fc_b[...]
    out_ref[0] = logits.astype(out_ref.dtype)


# ------------------------------- forward wrapper -------------------------------

def transformer_forward(params, src, tgt, src_kpm=None, tgt_kpm=None,
                        *, num_heads, num_layers, vocab_out):
    B, S = src.shape
    _, T = tgt.shape
    E = params["emb_en"].shape[1]
    Vp = params["fc_w"].shape[1]

    # token + positional embedding (gathers stay in JAX glue)
    src_emb = params["emb_en"][src] + params["pos_en"][:S][None, :, :]
    tgt_emb = params["emb_zh"][tgt] + params["pos_zh"][:T][None, :, :]

    # key-padding masks as tiny additive [B, 1, len] biases (causal mask built in-kernel)
    def kpm_bias(kpm, length):
        if kpm is None:
            return jnp.zeros((B, 1, length), jnp.float32)
        return jnp.where(kpm, NEG, 0.0).astype(jnp.float32)[:, None, :]

    src_bias = kpm_bias(src_kpm, S)
    tgt_bias = kpm_bias(tgt_kpm, T)

    enc, dec = params["enc"], params["dec"]
    weights = [
        enc["wqkv"], enc["bqkv"], enc["wo"], enc["bo"], enc["g1"], enc["bt1"],
        enc["w1"], enc["bf1"], enc["w2"], enc["bf2"], enc["g2"], enc["bt2"],
        dec["wqkv"], dec["bqkv"], dec["swo"], dec["sbo"],
        dec["cwq"], dec["cbq"], dec["cwkv"], dec["cbkv"], dec["cwo"], dec["cbo"],
        dec["g1"], dec["bt1"], dec["g2"], dec["bt2"], dec["g3"], dec["bt3"],
        dec["w1"], dec["bf1"], dec["w2"], dec["bf2"],
        params["enc_norm_g"], params["enc_norm_b"],
        params["dec_norm_g"], params["dec_norm_b"],
        params["fc_w"], params["fc_b"],
    ]

    def full_spec(a):
        # whole-array block, same block every grid step -> fetched once, stays in VMEM
        if a.ndim == 2:
            return pl.BlockSpec(a.shape, lambda b: (0, 0))
        return pl.BlockSpec(a.shape, lambda b: (0, 0, 0))

    in_specs = [
        pl.BlockSpec((1, S, E), lambda b: (b, 0, 0)),
        pl.BlockSpec((1, T, E), lambda b: (b, 0, 0)),
        pl.BlockSpec((1, 1, S), lambda b: (b, 0, 0)),
        pl.BlockSpec((1, 1, T), lambda b: (b, 0, 0)),
    ] + [full_spec(a) for a in weights]

    kernel = functools.partial(_fused_transformer_kernel,
                               num_heads=num_heads, num_layers=num_layers)
    logits_padded = pl.pallas_call(
        kernel,
        out_shape=jax.ShapeDtypeStruct((B, T, Vp), jnp.float32),
        grid=(B,),  # one batch element per grid step; shards across v7x's 2 TensorCores
        in_specs=in_specs,
        out_specs=pl.BlockSpec((1, T, Vp), lambda b: (b, 0, 0)),
        compiler_params=pltpu.CompilerParams(dimension_semantics=("parallel",)),
    )(src_emb, tgt_emb, src_bias, tgt_bias, *weights)

    return logits_padded[:, :, :vocab_out]


# ----------------------------- parameter init (kernel-ready layout) -----------------------------

def init_params(key, vocab_en, vocab_zh, E, H, L, F, max_seq):
    keys = iter(jax.random.split(key, 4096))
    Dh = E // H
    scale = 1.0 / math.sqrt(Dh)

    def w(shape, s=0.02):
        return jax.random.normal(next(keys), shape, jnp.float32) * s

    def zeros(shape):
        return jnp.zeros(shape, jnp.float32)

    def ones(shape):
        return jnp.ones(shape, jnp.float32)

    def self_attn():
        # pre-transposed [in, out], q/k/v fused into [E, 3E]; 1/sqrt(Dh) folded into q.
        wq, wk, wv = w((E, E)), w((E, E)), w((E, E))
        return jnp.concatenate([wq * scale, wk, wv], axis=1), zeros((1, 3 * E))

    def cross_attn():
        wq, wk, wv = w((E, E)), w((E, E)), w((E, E))
        return wq * scale, zeros((1, E)), jnp.concatenate([wk, wv], axis=1), zeros((1, 2 * E))

    def stack(field, layers):
        return jnp.stack([lp[field] for lp in layers], axis=0)

    enc_layers = []
    for _ in range(L):
        wqkv, bqkv = self_attn()
        enc_layers.append(dict(
            wqkv=wqkv, bqkv=bqkv, wo=w((E, E)), bo=zeros((1, E)),
            g1=ones((1, E)), bt1=zeros((1, E)),
            w1=w((E, F)), bf1=zeros((1, F)), w2=w((F, E)), bf2=zeros((1, E)),
            g2=ones((1, E)), bt2=zeros((1, E))))
    enc = {k: stack(k, enc_layers) for k in enc_layers[0]}

    dec_layers = []
    for _ in range(L):
        wqkv, bqkv = self_attn()
        cwq, cbq, cwkv, cbkv = cross_attn()
        dec_layers.append(dict(
            wqkv=wqkv, bqkv=bqkv, swo=w((E, E)), sbo=zeros((1, E)),
            cwq=cwq, cbq=cbq, cwkv=cwkv, cbkv=cbkv, cwo=w((E, E)), cbo=zeros((1, E)),
            g1=ones((1, E)), bt1=zeros((1, E)),
            g2=ones((1, E)), bt2=zeros((1, E)),
            g3=ones((1, E)), bt3=zeros((1, E)),
            w1=w((E, F)), bf1=zeros((1, F)), w2=w((F, E)), bf2=zeros((1, E))))
    dec = {k: stack(k, dec_layers) for k in dec_layers[0]}

    # fc_out padded to a lane-dense multiple of 128 columns (sliced back after the kernel)
    Vp = ((vocab_zh + 127) // 128) * 128
    fc_w = jnp.zeros((E, Vp), jnp.float32).at[:, :vocab_zh].set(w((E, vocab_zh)))
    fc_b = zeros((1, Vp))

    return dict(
        emb_en=w((vocab_en, E), 1.0), emb_zh=w((vocab_zh, E), 1.0),
        pos_en=w((max_seq, E), 1.0), pos_zh=w((max_seq, E), 1.0),
        enc=enc, dec=dec,
        enc_norm_g=ones((1, E)), enc_norm_b=zeros((1, E)),
        dec_norm_g=ones((1, E)), dec_norm_b=zeros((1, E)),
        fc_w=fc_w, fc_b=fc_b)


# ---------------------------------- main ----------------------------------

if __name__ == "__main__":
    VOCAB_EN, VOCAB_ZH = 50, 64
    EMBED, HEADS, LAYERS, FF = 32, 4, 2, 64
    MAX_SEQ = 104
    B, S_LEN, T_LEN = 2, 8, 8

    key = jax.random.PRNGKey(0)
    pkey, skey, tkey = jax.random.split(key, 3)
    params = init_params(pkey, VOCAB_EN, VOCAB_ZH, EMBED, HEADS, LAYERS, FF, MAX_SEQ)

    src = jax.random.randint(skey, (B, S_LEN), 0, VOCAB_EN, dtype=jnp.int32)
    tgt = jax.random.randint(tkey, (B, T_LEN), 0, VOCAB_ZH, dtype=jnp.int32)
    # True = padding position (PyTorch key_padding_mask convention)
    src_kpm = jnp.array([[False] * 6 + [True] * 2, [False] * 8], dtype=bool)
    tgt_kpm = jnp.array([[False] * 8, [False] * 7 + [True]], dtype=bool)

    fwd = jax.jit(functools.partial(transformer_forward, num_heads=HEADS,
                                    num_layers=LAYERS, vocab_out=VOCAB_ZH))
    logits = fwd(params, src, tgt, src_kpm, tgt_kpm)
    jax.block_until_ready(logits)

    assert logits.shape == (B, T_LEN, VOCAB_ZH), logits.shape
    assert bool(jnp.all(jnp.isfinite(logits)))
    # TODO(synk): dropout is modeled in eval mode (identity); training-mode dropout not implemented.
    print("KERNEL_OK")
</pallas_src>

<mosaic_0001>
module attributes {stable_mosaic.version = 11 : i64} {
  func.func @_fused_transformer_kernel(%arg0: i32, %arg1: memref<1x8x32xf32, #tpu.memory_space<vmem>>, %arg2: memref<1x8x32xf32, #tpu.memory_space<vmem>>, %arg3: memref<1x1x8xf32, #tpu.memory_space<vmem>>, %arg4: memref<1x1x8xf32, #tpu.memory_space<vmem>>, %arg5: memref<2x32x96xf32, #tpu.memory_space<vmem>>, %arg6: memref<2x1x96xf32, #tpu.memory_space<vmem>>, %arg7: memref<2x32x32xf32, #tpu.memory_space<vmem>>, %arg8: memref<2x1x32xf32, #tpu.memory_space<vmem>>, %arg9: memref<2x1x32xf32, #tpu.memory_space<vmem>>, %arg10: memref<2x1x32xf32, #tpu.memory_space<vmem>>, %arg11: memref<2x32x64xf32, #tpu.memory_space<vmem>>, %arg12: memref<2x1x64xf32, #tpu.memory_space<vmem>>, %arg13: memref<2x64x32xf32, #tpu.memory_space<vmem>>, %arg14: memref<2x1x32xf32, #tpu.memory_space<vmem>>, %arg15: memref<2x1x32xf32, #tpu.memory_space<vmem>>, %arg16: memref<2x1x32xf32, #tpu.memory_space<vmem>>, %arg17: memref<2x32x96xf32, #tpu.memory_space<vmem>>, %arg18: memref<2x1x96xf32, #tpu.memory_space<vmem>>, %arg19: memref<2x32x32xf32, #tpu.memory_space<vmem>>, %arg20: memref<2x1x32xf32, #tpu.memory_space<vmem>>, %arg21: memref<2x32x32xf32, #tpu.memory_space<vmem>>, %arg22: memref<2x1x32xf32, #tpu.memory_space<vmem>>, %arg23: memref<2x32x64xf32, #tpu.memory_space<vmem>>, %arg24: memref<2x1x64xf32, #tpu.memory_space<vmem>>, %arg25: memref<2x32x32xf32, #tpu.memory_space<vmem>>, %arg26: memref<2x1x32xf32, #tpu.memory_space<vmem>>, %arg27: memref<2x1x32xf32, #tpu.memory_space<vmem>>, %arg28: memref<2x1x32xf32, #tpu.memory_space<vmem>>, %arg29: memref<2x1x32xf32, #tpu.memory_space<vmem>>, %arg30: memref<2x1x32xf32, #tpu.memory_space<vmem>>, %arg31: memref<2x1x32xf32, #tpu.memory_space<vmem>>, %arg32: memref<2x1x32xf32, #tpu.memory_space<vmem>>, %arg33: memref<2x32x64xf32, #tpu.memory_space<vmem>>, %arg34: memref<2x1x64xf32, #tpu.memory_space<vmem>>, %arg35: memref<2x64x32xf32, #tpu.memory_space<vmem>>, %arg36: memref<2x1x32xf32, #tpu.memory_space<vmem>>, %arg37: memref<1x32xf32, #tpu.memory_space<vmem>>, %arg38: memref<1x32xf32, #tpu.memory_space<vmem>>, %arg39: memref<1x32xf32, #tpu.memory_space<vmem>>, %arg40: memref<1x32xf32, #tpu.memory_space<vmem>>, %arg41: memref<32x128xf32, #tpu.memory_space<vmem>>, %arg42: memref<1x128xf32, #tpu.memory_space<vmem>>, %arg43: memref<1x8x128xf32, #tpu.memory_space<vmem>>) attributes {dimension_semantics = [#tpu.dimension_semantics<parallel>], iteration_bounds = array<i64: 2>, scalar_prefetch = 0 : i64, scratch_operands = 0 : i64, tpu.core_type = #tpu.core_type<tc>, window_params = [{transform_indices = @transform_0, window_bounds = array<i64: 1, 8, 32>}, {transform_indices = @transform_1, window_bounds = array<i64: 1, 8, 32>}, {transform_indices = @transform_2, window_bounds = array<i64: 1, 1, 8>}, {transform_indices = @transform_3, window_bounds = array<i64: 1, 1, 8>}, {pipeline_mode = #tpu.pipeline_mode<synchronous>, transform_indices = @transform_4, window_bounds = array<i64: 2, 32, 96>}, {pipeline_mode = #tpu.pipeline_mode<synchronous>, transform_indices = @transform_5, window_bounds = array<i64: 2, 1, 96>}, {pipeline_mode = #tpu.pipeline_mode<synchronous>, transform_indices = @transform_6, window_bounds = array<i64: 2, 32, 32>}, {pipeline_mode = #tpu.pipeline_mode<synchronous>, transform_indices = @transform_7, window_bounds = array<i64: 2, 1, 32>}, {pipeline_mode = #tpu.pipeline_mode<synchronous>, transform_indices = @transform_8, window_bounds = array<i64: 2, 1, 32>}, {pipeline_mode = #tpu.pipeline_mode<synchronous>, transform_indices = @transform_9, window_bounds = array<i64: 2, 1, 32>}, {pipeline_mode = #tpu.pipeline_mode<synchronous>, transform_indices = @transform_10, window_bounds = array<i64: 2, 32, 64>}, {pipeline_mode = #tpu.pipeline_mode<synchronous>, transform_indices = @transform_11, window_bounds = array<i64: 2, 1, 64>}, {pipeline_mode = #tpu.pipeline_mode<synchronous>, transform_indices = @transform_12, window_bounds = array<i64: 2, 64, 32>}, {pipeline_mode = #tpu.pipeline_mode<synchronous>, transform_indices = @transform_13, window_bounds = array<i64: 2, 1, 32>}, {pipeline_mode = #tpu.pipeline_mode<synchronous>, transform_indices = @transform_14, window_bounds = array<i64: 2, 1, 32>}, {pipeline_mode = #tpu.pipeline_mode<synchronous>, transform_indices = @transform_15, window_bounds = array<i64: 2, 1, 32>}, {pipeline_mode = #tpu.pipeline_mode<synchronous>, transform_indices = @transform_16, window_bounds = array<i64: 2, 32, 96>}, {pipeline_mode = #tpu.pipeline_mode<synchronous>, transform_indices = @transform_17, window_bounds = array<i64: 2, 1, 96>}, {pipeline_mode = #tpu.pipeline_mode<synchronous>, transform_indices = @transform_18, window_bounds = array<i64: 2, 32, 32>}, {pipeline_mode = #tpu.pipeline_mode<synchronous>, transform_indices = @transform_19, window_bounds = array<i64: 2, 1, 32>}, {pipeline_mode = #tpu.pipeline_mode<synchronous>, transform_indices = @transform_20, window_bounds = array<i64: 2, 32, 32>}, {pipeline_mode = #tpu.pipeline_mode<synchronous>, transform_indices = @transform_21, window_bounds = array<i64: 2, 1, 32>}, {pipeline_mode = #tpu.pipeline_mode<synchronous>, transform_indices = @transform_22, window_bounds = array<i64: 2, 32, 64>}, {pipeline_mode = #tpu.pipeline_mode<synchronous>, transform_indices = @transform_23, window_bounds = array<i64: 2, 1, 64>}, {pipeline_mode = #tpu.pipeline_mode<synchronous>, transform_indices = @transform_24, window_bounds = array<i64: 2, 32, 32>}, {pipeline_mode = #tpu.pipeline_mode<synchronous>, transform_indices = @transform_25, window_bounds = array<i64: 2, 1, 32>}, {pipeline_mode = #tpu.pipeline_mode<synchronous>, transform_indices = @transform_26, window_bounds = array<i64: 2, 1, 32>}, {pipeline_mode = #tpu.pipeline_mode<synchronous>, transform_indices = @transform_27, window_bounds = array<i64: 2, 1, 32>}, {pipeline_mode = #tpu.pipeline_mode<synchronous>, transform_indices = @transform_28, window_bounds = array<i64: 2, 1, 32>}, {pipeline_mode = #tpu.pipeline_mode<synchronous>, transform_indices = @transform_29, window_bounds = array<i64: 2, 1, 32>}, {pipeline_mode = #tpu.pipeline_mode<synchronous>, transform_indices = @transform_30, window_bounds = array<i64: 2, 1, 32>}, {pipeline_mode = #tpu.pipeline_mode<synchronous>, transform_indices = @transform_31, window_bounds = array<i64: 2, 1, 32>}, {pipeline_mode = #tpu.pipeline_mode<synchronous>, transform_indices = @transform_32, window_bounds = array<i64: 2, 32, 64>}, {pipeline_mode = #tpu.pipeline_mode<synchronous>, transform_indices = @transform_33, window_bounds = array<i64: 2, 1, 64>}, {pipeline_mode = #tpu.pipeline_mode<synchronous>, transform_indices = @transform_34, window_bounds = array<i64: 2, 64, 32>}, {pipeline_mode = #tpu.pipeline_mode<synchronous>, transform_indices = @transform_35, window_bounds = array<i64: 2, 1, 32>}, {pipeline_mode = #tpu.pipeline_mode<synchronous>, transform_indices = @transform_36, window_bounds = array<i64: 1, 32>}, {pipeline_mode = #tpu.pipeline_mode<synchronous>, transform_indices = @transform_37, window_bounds = array<i64: 1, 32>}, {pipeline_mode = #tpu.pipeline_mode<synchronous>, transform_indices = @transform_38, window_bounds = array<i64: 1, 32>}, {pipeline_mode = #tpu.pipeline_mode<synchronous>, transform_indices = @transform_39, window_bounds = array<i64: 1, 32>}, {pipeline_mode = #tpu.pipeline_mode<synchronous>, transform_indices = @transform_40, window_bounds = array<i64: 32, 128>}, {pipeline_mode = #tpu.pipeline_mode<synchronous>, transform_indices = @transform_41, window_bounds = array<i64: 1, 128>}, {transform_indices = @transform_42, window_bounds = array<i64: 1, 8, 128>}]} {
    %c0 = arith.constant 0 : index
    %c0_0 = arith.constant 0 : index
    %c0_1 = arith.constant 0 : index
    %0 = vector.load %arg1[%c0, %c0_0, %c0_1] : memref<1x8x32xf32, #tpu.memory_space<vmem>>, vector<1x8x32xf32>
    %1 = vector.shape_cast %0 : vector<1x8x32xf32> to vector<8x32xf32>
    %c0_2 = arith.constant 0 : index
    %c0_3 = arith.constant 0 : index
    %c0_4 = arith.constant 0 : index
    %2 = vector.load %arg2[%c0_2, %c0_3, %c0_4] : memref<1x8x32xf32, #tpu.memory_space<vmem>>, vector<1x8x32xf32>
    %3 = vector.shape_cast %2 : vector<1x8x32xf32> to vector<8x32xf32>
    %c0_5 = arith.constant 0 : index
    %c0_6 = arith.constant 0 : index
    %c0_7 = arith.constant 0 : index
    %4 = vector.load %arg3[%c0_5, %c0_6, %c0_7] : memref<1x1x8xf32, #tpu.memory_space<vmem>>, vector<1x1x8xf32>
    %5 = vector.shape_cast %4 : vector<1x1x8xf32> to vector<1x8xf32>
    %c0_8 = arith.constant 0 : index
    %c0_9 = arith.constant 0 : index
    %c0_10 = arith.constant 0 : index
    %6 = vector.load %arg4[%c0_8, %c0_9, %c0_10] : memref<1x1x8xf32, #tpu.memory_space<vmem>>, vector<1x1x8xf32>
    %7 = vector.shape_cast %6 : vector<1x1x8xf32> to vector<1x8xf32>
    %8 = tpu.iota {dimensions = array<i32: 0>} : vector<8x8xi32>
    %9 = tpu.iota {dimensions = array<i32: 1>} : vector<8x8xi32>
    %10 = arith.cmpi sgt, %9, %8 : vector<8x8xi32>
    %cst = arith.constant -1.000000e+09 : f32
    %cst_11 = arith.constant 0.000000e+00 : f32
    %11 = vector.broadcast %cst : f32 to vector<8x8xf32>
    %12 = vector.broadcast %cst_11 : f32 to vector<8x8xf32>
    %13 = arith.select %10, %11, %12 : vector<8x8xi1>, vector<8x8xf32>
    %14 = vector.broadcast %7 : vector<1x8xf32> to vector<8x8xf32>
    %15 = arith.addf %13, %14 : vector<8x8xf32>
    %c0_12 = arith.constant 0 : index
    %c0_13 = arith.constant 0 : index
    %c0_14 = arith.constant 0 : index
    %16 = vector.load %arg5[%c0_12, %c0_13, %c0_14] : memref<2x32x96xf32, #tpu.memory_space<vmem>>, vector<1x32x96xf32>
    %17 = vector.shape_cast %16 : vector<1x32x96xf32> to vector<32x96xf32>
    %cst_15 = arith.constant dense<0.000000e+00> : vector<8x96xf32>
    %18 = tpu.matmul %1, %17, %cst_15 {dimension_numbers = #tpu.dot_dimension_numbers<[1], [0], [0], [1], [0, 0, 1, 1], [], []>} : vector<8x32xf32>, vector<32x96xf32>, vector<8x96xf32> -> vector<8x96xf32>
    %c0_16 = arith.constant 0 : index
    %c0_17 = arith.constant 0 : index
    %c0_18 = arith.constant 0 : index
    %19 = vector.load %arg6[%c0_16, %c0_17, %c0_18] : memref<2x1x96xf32, #tpu.memory_space<vmem>>, vector<1x1x96xf32>
    %20 = vector.shape_cast %19 : vector<1x1x96xf32> to vector<1x96xf32>
    %21 = vector.broadcast %20 : vector<1x96xf32> to vector<8x96xf32>
    %22 = arith.addf %18, %21 : vector<8x96xf32>
    %23 = vector.extract_strided_slice %22 {offsets = [0, 0], sizes = [8, 32], strides = [1, 1]} : vector<8x96xf32> to vector<8x32xf32>
    %24 = vector.extract_strided_slice %22 {offsets = [0, 32], sizes = [8, 32], strides = [1, 1]} : vector<8x96xf32> to vector<8x32xf32>
    %25 = vector.extract_strided_slice %22 {offsets = [0, 64], sizes = [8, 32], strides = [1, 1]} : vector<8x96xf32> to vector<8x32xf32>
    %c0_19 = arith.constant 0 : index
    %c0_20 = arith.constant 0 : index
    %c0_21 = arith.constant 0 : index
    %26 = vector.load %arg7[%c0_19, %c0_20, %c0_21] : memref<2x32x32xf32, #tpu.memory_space<vmem>>, vector<1x32x32xf32>
    %27 = vector.shape_cast %26 : vector<1x32x32xf32> to vector<32x32xf32>
    %c0_22 = arith.constant 0 : index
    %c0_23 = arith.constant 0 : index
    %c0_24 = arith.constant 0 : index
    %28 = vector.load %arg8[%c0_22, %c0_23, %c0_24] : memref<2x1x32xf32, #tpu.memory_space<vmem>>, vector<1x1x32xf32>
    %29 = vector.shape_cast %28 : vector<1x1x32xf32> to vector<1x32xf32>
    %30 = vector.extract_strided_slice %23 {offsets = [0, 0], sizes = [8, 8], strides = [1, 1]} : vector<8x32xf32> to vector<8x8xf32>
    %31 = vector.extract_strided_slice %24 {offsets = [0, 0], sizes = [8, 8], strides = [1, 1]} : vector<8x32xf32> to vector<8x8xf32>
    %cst_25 = arith.constant dense<0.000000e+00> : vector<8x8xf32>
    %32 = tpu.matmul %30, %31, %cst_25 {dimension_numbers = #tpu.dot_dimension_numbers<[1], [1], [0], [0], [0, 0, 1, 0], [], []>} : vector<8x8xf32>, vector<8x8xf32>, vector<8x8xf32> -> vector<8x8xf32>
    %33 = vector.broadcast %5 : vector<1x8xf32> to vector<8x8xf32>
    %34 = arith.addf %32, %33 : vector<8x8xf32>
    %cst_26 = arith.constant dense<0xFF800000> : vector<8xf32>
    %35 = vector.multi_reduction <maximumf>, %34, %cst_26 [1] : vector<8x8xf32> to vector<8xf32>
    %36 = vector.shape_cast %35 : vector<8xf32> to vector<8x1xf32>
    %37 = vector.broadcast %36 : vector<8x1xf32> to vector<8x8xf32>
    %38 = arith.subf %34, %37 : vector<8x8xf32>
    %39 = math.exp %38 : vector<8x8xf32>
    %cst_27 = arith.constant dense<0.000000e+00> : vector<8xf32>
    %40 = vector.multi_reduction <add>, %39, %cst_27 [1] : vector<8x8xf32> to vector<8xf32>
    %41 = vector.shape_cast %40 : vector<8xf32> to vector<8x1xf32>
    %42 = tpu.reciprocal %41 {approx = true} : vector<8x1xf32> -> vector<8x1xf32>
    %43 = vector.broadcast %42 : vector<8x1xf32> to vector<8x8xf32>
    %44 = arith.mulf %39, %43 : vector<8x8xf32>
    %45 = vector.extract_strided_slice %25 {offsets = [0, 0], sizes = [8, 8], strides = [1, 1]} : vector<8x32xf32> to vector<8x8xf32>
    %cst_28 = arith.constant dense<0.000000e+00> : vector<8x8xf32>
    %46 = tpu.matmul %44, %45, %cst_28 {dimension_numbers = #tpu.dot_dimension_numbers<[1], [0], [0], [1], [0, 0, 1, 1], [], []>} : vector<8x8xf32>, vector<8x8xf32>, vector<8x8xf32> -> vector<8x8xf32>
    %47 = vector.extract_strided_slice %27 {offsets = [0, 0], sizes = [8, 32], strides = [1, 1]} : vector<32x32xf32> to vector<8x32xf32>
    %cst_29 = arith.constant dense<0.000000e+00> : vector<8x32xf32>
    %48 = tpu.matmul %46, %47, %cst_29 {dimension_numbers = #tpu.dot_dimension_numbers<[1], [0], [0], [1], [0, 0, 1, 1], [], []>} : vector<8x8xf32>, vector<8x32xf32>, vector<8x32xf32> -> vector<8x32xf32>
    %49 = vector.broadcast %29 : vector<1x32xf32> to vector<8x32xf32>
    %50 = arith.addf %49, %48 : vector<8x32xf32>
    %51 = vector.extract_strided_slice %23 {offsets = [0, 8], sizes = [8, 8], strides = [1, 1]} : vector<8x32xf32> to vector<8x8xf32>
    %52 = vector.extract_strided_slice %24 {offsets = [0, 8], sizes = [8, 8], strides = [1, 1]} : vector<8x32xf32> to vector<8x8xf32>
    %cst_30 = arith.constant dense<0.000000e+00> : vector<8x8xf32>
    %53 = tpu.matmul %51, %52, %cst_30 {dimension_numbers = #tpu.dot_dimension_numbers<[1], [1], [0], [0], [0, 0, 1, 0], [], []>} : vector<8x8xf32>, vector<8x8xf32>, vector<8x8xf32> -> vector<8x8xf32>
    %54 = vector.broadcast %5 : vector<1x8xf32> to vector<8x8xf32>
    %55 = arith.addf %53, %54 : vector<8x8xf32>
    %cst_31 = arith.constant dense<0xFF800000> : vector<8xf32>
    %56 = vector.multi_reduction <maximumf>, %55, %cst_31 [1] : vector<8x8xf32> to vector<8xf32>
    %57 = vector.shape_cast %56 : vector<8xf32> to vector<8x1xf32>
    %58 = vector.broadcast %57 : vector<8x1xf32> to vector<8x8xf32>
    %59 = arith.subf %55, %58 : vector<8x8xf32>
    %60 = math.exp %59 : vector<8x8xf32>
    %cst_32 = arith.constant dense<0.000000e+00> : vector<8xf32>
    %61 = vector.multi_reduction <add>, %60, %cst_32 [1] : vector<8x8xf32> to vector<8xf32>
    %62 = vector.shape_cast %61 : vector<8xf32> to vector<8x1xf32>
    %63 = tpu.reciprocal %62 {approx = true} : vector<8x1xf32> -> vector<8x1xf32>
    %64 = vector.broadcast %63 : vector<8x1xf32> to vector<8x8xf32>
    %65 = arith.mulf %60, %64 : vector<8x8xf32>
    %66 = vector.extract_strided_slice %25 {offsets = [0, 8], sizes = [8, 8], strides = [1, 1]} : vector<8x32xf32> to vector<8x8xf32>
    %cst_33 = arith.constant dense<0.000000e+00> : vector<8x8xf32>
    %67 = tpu.matmul %65, %66, %cst_33 {dimension_numbers = #tpu.dot_dimension_numbers<[1], [0], [0], [1], [0, 0, 1, 1], [], []>} : vector<8x8xf32>, vector<8x8xf32>, vector<8x8xf32> -> vector<8x8xf32>
    %68 = vector.extract_strided_slice %27 {offsets = [8, 0], sizes = [8, 32], strides = [1, 1]} : vector<32x32xf32> to vector<8x32xf32>
    %cst_34 = arith.constant dense<0.000000e+00> : vector<8x32xf32>
    %69 = tpu.matmul %67, %68, %cst_34 {dimension_numbers = #tpu.dot_dimension_numbers<[1], [0], [0], [1], [0, 0, 1, 1], [], []>} : vector<8x8xf32>, vector<8x32xf32>, vector<8x32xf32> -> vector<8x32xf32>
    %70 = arith.addf %50, %69 : vector<8x32xf32>
    %71 = vector.extract_strided_slice %23 {offsets = [0, 16], sizes = [8, 8], strides = [1, 1]} : vector<8x32xf32> to vector<8x8xf32>
    %72 = vector.extract_strided_slice %24 {offsets = [0, 16], sizes = [8, 8], strides = [1, 1]} : vector<8x32xf32> to vector<8x8xf32>
    %cst_35 = arith.constant dense<0.000000e+00> : vector<8x8xf32>
    %73 = tpu.matmul %71, %72, %cst_35 {dimension_numbers = #tpu.dot_dimension_numbers<[1], [1], [0], [0], [0, 0, 1, 0], [], []>} : vector<8x8xf32>, vector<8x8xf32>, vector<8x8xf32> -> vector<8x8xf32>
    %74 = vector.broadcast %5 : vector<1x8xf32> to vector<8x8xf32>
    %75 = arith.addf %73, %74 : vector<8x8xf32>
    %cst_36 = arith.constant dense<0xFF800000> : vector<8xf32>
    %76 = vector.multi_reduction <maximumf>, %75, %cst_36 [1] : vector<8x8xf32> to vector<8xf32>
    %77 = vector.shape_cast %76 : vector<8xf32> to vector<8x1xf32>
    %78 = vector.broadcast %77 : vector<8x1xf32> to vector<8x8xf32>
    %79 = arith.subf %75, %78 : vector<8x8xf32>
    %80 = math.exp %79 : vector<8x8xf32>
    %cst_37 = arith.constant dense<0.000000e+00> : vector<8xf32>
    %81 = vector.multi_reduction <add>, %80, %cst_37 [1] : vector<8x8xf32> to vector<8xf32>
    %82 = vector.shape_cast %81 : vector<8xf32> to vector<8x1xf32>
    %83 = tpu.reciprocal %82 {approx = true} : vector<8x1xf32> -> vector<8x1xf32>
    %84 = vector.broadcast %83 : vector<8x1xf32> to vector<8x8xf32>
    %85 = arith.mulf %80, %84 : vector<8x8xf32>
    %86 = vector.extract_strided_slice %25 {offsets = [0, 16], sizes = [8, 8], strides = [1, 1]} : vector<8x32xf32> to vector<8x8xf32>
    %cst_38 = arith.constant dense<0.000000e+00> : vector<8x8xf32>
    %87 = tpu.matmul %85, %86, %cst_38 {dimension_numbers = #tpu.dot_dimension_numbers<[1], [0], [0], [1], [0, 0, 1, 1], [], []>} : vector<8x8xf32>, vector<8x8xf32>, vector<8x8xf32> -> vector<8x8xf32>
    %88 = vector.extract_strided_slice %27 {offsets = [16, 0], sizes = [8, 32], strides = [1, 1]} : vector<32x32xf32> to vector<8x32xf32>
    %cst_39 = arith.constant dense<0.000000e+00> : vector<8x32xf32>
    %89 = tpu.matmul %87, %88, %cst_39 {dimension_numbers = #tpu.dot_dimension_numbers<[1], [0], [0], [1], [0, 0, 1, 1], [], []>} : vector<8x8xf32>, vector<8x32xf32>, vector<8x32xf32> -> vector<8x32xf32>
    %90 = arith.addf %70, %89 : vector<8x32xf32>
    %91 = vector.extract_strided_slice %23 {offsets = [0, 24], sizes = [8, 8], strides = [1, 1]} : vector<8x32xf32> to vector<8x8xf32>
    %92 = vector.extract_strided_slice %24 {offsets = [0, 24], sizes = [8, 8], strides = [1, 1]} : vector<8x32xf32> to vector<8x8xf32>
    %cst_40 = arith.constant dense<0.000000e+00> : vector<8x8xf32>
    %93 = tpu.matmul %91, %92, %cst_40 {dimension_numbers = #tpu.dot_dimension_numbers<[1], [1], [0], [0], [0, 0, 1, 0], [], []>} : vector<8x8xf32>, vector<8x8xf32>, vector<8x8xf32> -> vector<8x8xf32>
    %94 = vector.broadcast %5 : vector<1x8xf32> to vector<8x8xf32>
    %95 = arith.addf %93, %94 : vector<8x8xf32>
    %cst_41 = arith.constant dense<0xFF800000> : vector<8xf32>
    %96 = vector.multi_reduction <maximumf>, %95, %cst_41 [1] : vector<8x8xf32> to vector<8xf32>
    %97 = vector.shape_cast %96 : vector<8xf32> to vector<8x1xf32>
    %98 = vector.broadcast %97 : vector<8x1xf32> to vector<8x8xf32>
    %99 = arith.subf %95, %98 : vector<8x8xf32>
    %100 = math.exp %99 : vector<8x8xf32>
    %cst_42 = arith.constant dense<0.000000e+00> : vector<8xf32>
    %101 = vector.multi_reduction <add>, %100, %cst_42 [1] : vector<8x8xf32> to vector<8xf32>
    %102 = vector.shape_cast %101 : vector<8xf32> to vector<8x1xf32>
    %103 = tpu.reciprocal %102 {approx = true} : vector<8x1xf32> -> vector<8x1xf32>
    %104 = vector.broadcast %103 : vector<8x1xf32> to vector<8x8xf32>
    %105 = arith.mulf %100, %104 : vector<8x8xf32>
    %106 = vector.extract_strided_slice %25 {offsets = [0, 24], sizes = [8, 8], strides = [1, 1]} : vector<8x32xf32> to vector<8x8xf32>
    %cst_43 = arith.constant dense<0.000000e+00> : vector<8x8xf32>
    %107 = tpu.matmul %105, %106, %cst_43 {dimension_numbers = #tpu.dot_dimension_numbers<[1], [0], [0], [1], [0, 0, 1, 1], [], []>} : vector<8x8xf32>, vector<8x8xf32>, vector<8x8xf32> -> vector<8x8xf32>
    %108 = vector.extract_strided_slice %27 {offsets = [24, 0], sizes = [8, 32], strides = [1, 1]} : vector<32x32xf32> to vector<8x32xf32>
    %cst_44 = arith.constant dense<0.000000e+00> : vector<8x32xf32>
    %109 = tpu.matmul %107, %108, %cst_44 {dimension_numbers = #tpu.dot_dimension_numbers<[1], [0], [0], [1], [0, 0, 1, 1], [], []>} : vector<8x8xf32>, vector<8x32xf32>, vector<8x32xf32> -> vector<8x32xf32>
    %110 = arith.addf %90, %109 : vector<8x32xf32>
    %111 = arith.addf %1, %110 : vector<8x32xf32>
    %c0_45 = arith.constant 0 : index
    %c0_46 = arith.constant 0 : index
    %c0_47 = arith.constant 0 : index
    %112 = vector.load %arg9[%c0_45, %c0_46, %c0_47] : memref<2x1x32xf32, #tpu.memory_space<vmem>>, vector<1x1x32xf32>
    %113 = vector.shape_cast %112 : vector<1x1x32xf32> to vector<1x32xf32>
    %c0_48 = arith.constant 0 : index
    %c0_49 = arith.constant 0 : index
    %c0_50 = arith.constant 0 : index
    %114 = vector.load %arg10[%c0_48, %c0_49, %c0_50] : memref<2x1x32xf32, #tpu.memory_space<vmem>>, vector<1x1x32xf32>
    %115 = vector.shape_cast %114 : vector<1x1x32xf32> to vector<1x32xf32>
    %cst_51 = arith.constant dense<0.000000e+00> : vector<8xf32>
    %116 = vector.multi_reduction <add>, %111, %cst_51 [1] : vector<8x32xf32> to vector<8xf32>
    %117 = vector.shape_cast %116 : vector<8xf32> to vector<8x1xf32>
    %cst_52 = arith.constant 3.200000e+01 : f32
    %118 = vector.broadcast %cst_52 : f32 to vector<8x1xf32>
    %119 = arith.divf %117, %118 : vector<8x1xf32>
    %120 = vector.broadcast %119 : vector<8x1xf32> to vector<8x32xf32>
    %121 = arith.subf %111, %120 : vector<8x32xf32>
    %122 = arith.mulf %121, %121 : vector<8x32xf32>
    %cst_53 = arith.constant dense<0.000000e+00> : vector<8xf32>
    %123 = vector.multi_reduction <add>, %122, %cst_53 [1] : vector<8x32xf32> to vector<8xf32>
    %124 = vector.shape_cast %123 : vector<8xf32> to vector<8x1xf32>
    %cst_54 = arith.constant 3.200000e+01 : f32
    %125 = vector.broadcast %cst_54 : f32 to vector<8x1xf32>
    %126 = arith.divf %124, %125 : vector<8x1xf32>
    %127 = vector.broadcast %119 : vector<8x1xf32> to vector<8x32xf32>
    %128 = arith.subf %111, %127 : vector<8x32xf32>
    %cst_55 = arith.constant 9.99999974E-6 : f32
    %129 = vector.broadcast %cst_55 : f32 to vector<8x1xf32>
    %130 = arith.addf %126, %129 : vector<8x1xf32>
    %131 = math.rsqrt %130 : vector<8x1xf32>
    %132 = vector.broadcast %131 : vector<8x1xf32> to vector<8x32xf32>
    %133 = arith.mulf %128, %132 : vector<8x32xf32>
    %134 = vector.broadcast %113 : vector<1x32xf32> to vector<8x32xf32>
    %135 = arith.mulf %133, %134 : vector<8x32xf32>
    %136 = vector.broadcast %115 : vector<1x32xf32> to vector<8x32xf32>
    %137 = arith.addf %135, %136 : vector<8x32xf32>
    %c0_56 = arith.constant 0 : index
    %c0_57 = arith.constant 0 : index
    %c0_58 = arith.constant 0 : index
    %138 = vector.load %arg11[%c0_56, %c0_57, %c0_58] : memref<2x32x64xf32, #tpu.memory_space<vmem>>, vector<1x32x64xf32>
    %139 = vector.shape_cast %138 : vector<1x32x64xf32> to vector<32x64xf32>
    %cst_59 = arith.constant dense<0.000000e+00> : vector<8x64xf32>
    %140 = tpu.matmul %137, %139, %cst_59 {dimension_numbers = #tpu.dot_dimension_numbers<[1], [0], [0], [1], [0, 0, 1, 1], [], []>} : vector<8x32xf32>, vector<32x64xf32>, vector<8x64xf32> -> vector<8x64xf32>
    %c0_60 = arith.constant 0 : index
    %c0_61 = arith.constant 0 : index
    %c0_62 = arith.constant 0 : index
    %141 = vector.load %arg12[%c0_60, %c0_61, %c0_62] : memref<2x1x64xf32, #tpu.memory_space<vmem>>, vector<1x1x64xf32>
    %142 = vector.shape_cast %141 : vector<1x1x64xf32> to vector<1x64xf32>
    %143 = vector.broadcast %142 : vector<1x64xf32> to vector<8x64xf32>
    %144 = arith.addf %140, %143 : vector<8x64xf32>
    %cst_63 = arith.constant 0.000000e+00 : f32
    %145 = vector.broadcast %cst_63 : f32 to vector<8x64xf32>
    %146 = arith.maximumf %144, %145 : vector<8x64xf32>
    %c0_64 = arith.constant 0 : index
    %c0_65 = arith.constant 0 : index
    %c0_66 = arith.constant 0 : index
    %147 = vector.load %arg13[%c0_64, %c0_65, %c0_66] : memref<2x64x32xf32, #tpu.memory_space<vmem>>, vector<1x64x32xf32>
    %148 = vector.shape_cast %147 : vector<1x64x32xf32> to vector<64x32xf32>
    %cst_67 = arith.constant dense<0.000000e+00> : vector<8x32xf32>
    %149 = tpu.matmul %146, %148, %cst_67 {dimension_numbers = #tpu.dot_dimension_numbers<[1], [0], [0], [1], [0, 0, 1, 1], [], []>} : vector<8x64xf32>, vector<64x32xf32>, vector<8x32xf32> -> vector<8x32xf32>
    %c0_68 = arith.constant 0 : index
    %c0_69 = arith.constant 0 : index
    %c0_70 = arith.constant 0 : index
    %150 = vector.load %arg14[%c0_68, %c0_69, %c0_70] : memref<2x1x32xf32, #tpu.memory_space<vmem>>, vector<1x1x32xf32>
    %151 = vector.shape_cast %150 : vector<1x1x32xf32> to vector<1x32xf32>
    %152 = vector.broadcast %151 : vector<1x32xf32> to vector<8x32xf32>
    %153 = arith.addf %149, %152 : vector<8x32xf32>
    %154 = arith.addf %137, %153 : vector<8x32xf32>
    %c0_71 = arith.constant 0 : index
    %c0_72 = arith.constant 0 : index
    %c0_73 = arith.constant 0 : index
    %155 = vector.load %arg15[%c0_71, %c0_72, %c0_73] : memref<2x1x32xf32, #tpu.memory_space<vmem>>, vector<1x1x32xf32>
    %156 = vector.shape_cast %155 : vector<1x1x32xf32> to vector<1x32xf32>
    %c0_74 = arith.constant 0 : index
    %c0_75 = arith.constant 0 : index
    %c0_76 = arith.constant 0 : index
    %157 = vector.load %arg16[%c0_74, %c0_75, %c0_76] : memref<2x1x32xf32, #tpu.memory_space<vmem>>, vector<1x1x32xf32>
    %158 = vector.shape_cast %157 : vector<1x1x32xf32> to vector<1x32xf32>
    %cst_77 = arith.constant dense<0.000000e+00> : vector<8xf32>
    %159 = vector.multi_reduction <add>, %154, %cst_77 [1] : vector<8x32xf32> to vector<8xf32>
    %160 = vector.shape_cast %159 : vector<8xf32> to vector<8x1xf32>
    %cst_78 = arith.constant 3.200000e+01 : f32
    %161 = vector.broadcast %cst_78 : f32 to vector<8x1xf32>
    %162 = arith.divf %160, %161 : vector<8x1xf32>
    %163 = vector.broadcast %162 : vector<8x1xf32> to vector<8x32xf32>
    %164 = arith.subf %154, %163 : vector<8x32xf32>
    %165 = arith.mulf %164, %164 : vector<8x32xf32>
    %cst_79 = arith.constant dense<0.000000e+00> : vector<8xf32>
    %166 = vector.multi_reduction <add>, %165, %cst_79 [1] : vector<8x32xf32> to vector<8xf32>
    %167 = vector.shape_cast %166 : vector<8xf32> to vector<8x1xf32>
    %cst_80 = arith.constant 3.200000e+01 : f32
    %168 = vector.broadcast %cst_80 : f32 to vector<8x1xf32>
    %169 = arith.divf %167, %168 : vector<8x1xf32>
    %170 = vector.broadcast %162 : vector<8x1xf32> to vector<8x32xf32>
    %171 = arith.subf %154, %170 : vector<8x32xf32>
    %cst_81 = arith.constant 9.99999974E-6 : f32
    %172 = vector.broadcast %cst_81 : f32 to vector<8x1xf32>
    %173 = arith.addf %169, %172 : vector<8x1xf32>
    %174 = math.rsqrt %173 : vector<8x1xf32>
    %175 = vector.broadcast %174 : vector<8x1xf32> to vector<8x32xf32>
    %176 = arith.mulf %171, %175 : vector<8x32xf32>
    %177 = vector.broadcast %156 : vector<1x32xf32> to vector<8x32xf32>
    %178 = arith.mulf %176, %177 : vector<8x32xf32>
    %179 = vector.broadcast %158 : vector<1x32xf32> to vector<8x32xf32>
    %180 = arith.addf %178, %179 : vector<8x32xf32>
    %c1 = arith.constant 1 : index
    %c0_82 = arith.constant 0 : index
    %c0_83 = arith.constant 0 : index
    %181 = vector.load %arg5[%c1, %c0_82, %c0_83] : memref<2x32x96xf32, #tpu.memory_space<vmem>>, vector<1x32x96xf32>
    %182 = vector.shape_cast %181 : vector<1x32x96xf32> to vector<32x96xf32>
    %cst_84 = arith.constant dense<0.000000e+00> : vector<8x96xf32>
    %183 = tpu.matmul %180, %182, %cst_84 {dimension_numbers = #tpu.dot_dimension_numbers<[1], [0], [0], [1], [0, 0, 1, 1], [], []>} : vector<8x32xf32>, vector<32x96xf32>, vector<8x96xf32> -> vector<8x96xf32>
    %c1_85 = arith.constant 1 : index
    %c0_86 = arith.constant 0 : index
    %c0_87 = arith.constant 0 : index
    %184 = vector.load %arg6[%c1_85, %c0_86, %c0_87] : memref<2x1x96xf32, #tpu.memory_space<vmem>>, vector<1x1x96xf32>
    %185 = vector.shape_cast %184 : vector<1x1x96xf32> to vector<1x96xf32>
    %186 = vector.broadcast %185 : vector<1x96xf32> to vector<8x96xf32>
    %187 = arith.addf %183, %186 : vector<8x96xf32>
    %188 = vector.extract_strided_slice %187 {offsets = [0, 0], sizes = [8, 32], strides = [1, 1]} : vector<8x96xf32> to vector<8x32xf32>
    %189 = vector.extract_strided_slice %187 {offsets = [0, 32], sizes = [8, 32], strides = [1, 1]} : vector<8x96xf32> to vector<8x32xf32>
    %190 = vector.extract_strided_slice %187 {offsets = [0, 64], sizes = [8, 32], strides = [1, 1]} : vector<8x96xf32> to vector<8x32xf32>
    %c1_88 = arith.constant 1 : index
    %c0_89 = arith.constant 0 : index
    %c0_90 = arith.constant 0 : index
    %191 = vector.load %arg7[%c1_88, %c0_89, %c0_90] : memref<2x32x32xf32, #tpu.memory_space<vmem>>, vector<1x32x32xf32>
    %192 = vector.shape_cast %191 : vector<1x32x32xf32> to vector<32x32xf32>
    %c1_91 = arith.constant 1 : index
    %c0_92 = arith.constant 0 : index
    %c0_93 = arith.constant 0 : index
    %193 = vector.load %arg8[%c1_91, %c0_92, %c0_93] : memref<2x1x32xf32, #tpu.memory_space<vmem>>, vector<1x1x32xf32>
    %194 = vector.shape_cast %193 : vector<1x1x32xf32> to vector<1x32xf32>
    %195 = vector.extract_strided_slice %188 {offsets = [0, 0], sizes = [8, 8], strides = [1, 1]} : vector<8x32xf32> to vector<8x8xf32>
    %196 = vector.extract_strided_slice %189 {offsets = [0, 0], sizes = [8, 8], strides = [1, 1]} : vector<8x32xf32> to vector<8x8xf32>
    %cst_94 = arith.constant dense<0.000000e+00> : vector<8x8xf32>
    %197 = tpu.matmul %195, %196, %cst_94 {dimension_numbers = #tpu.dot_dimension_numbers<[1], [1], [0], [0], [0, 0, 1, 0], [], []>} : vector<8x8xf32>, vector<8x8xf32>, vector<8x8xf32> -> vector<8x8xf32>
    %198 = vector.broadcast %5 : vector<1x8xf32> to vector<8x8xf32>
    %199 = arith.addf %197, %198 : vector<8x8xf32>
    %cst_95 = arith.constant dense<0xFF800000> : vector<8xf32>
    %200 = vector.multi_reduction <maximumf>, %199, %cst_95 [1] : vector<8x8xf32> to vector<8xf32>
    %201 = vector.shape_cast %200 : vector<8xf32> to vector<8x1xf32>
    %202 = vector.broadcast %201 : vector<8x1xf32> to vector<8x8xf32>
    %203 = arith.subf %199, %202 : vector<8x8xf32>
    %204 = math.exp %203 : vector<8x8xf32>
    %cst_96 = arith.constant dense<0.000000e+00> : vector<8xf32>
    %205 = vector.multi_reduction <add>, %204, %cst_96 [1] : vector<8x8xf32> to vector<8xf32>
    %206 = vector.shape_cast %205 : vector<8xf32> to vector<8x1xf32>
    %207 = tpu.reciprocal %206 {approx = true} : vector<8x1xf32> -> vector<8x1xf32>
    %208 = vector.broadcast %207 : vector<8x1xf32> to vector<8x8xf32>
    %209 = arith.mulf %204, %208 : vector<8x8xf32>
    %210 = vector.extract_strided_slice %190 {offsets = [0, 0], sizes = [8, 8], strides = [1, 1]} : vector<8x32xf32> to vector<8x8xf32>
    %cst_97 = arith.constant dense<0.000000e+00> : vector<8x8xf32>
    %211 = tpu.matmul %209, %210, %cst_97 {dimension_numbers = #tpu.dot_dimension_numbers<[1], [0], [0], [1], [0, 0, 1, 1], [], []>} : vector<8x8xf32>, vector<8x8xf32>, vector<8x8xf32> -> vector<8x8xf32>
    %212 = vector.extract_strided_slice %192 {offsets = [0, 0], sizes = [8, 32], strides = [1, 1]} : vector<32x32xf32> to vector<8x32xf32>
    %cst_98 = arith.constant dense<0.000000e+00> : vector<8x32xf32>
    %213 = tpu.matmul %211, %212, %cst_98 {dimension_numbers = #tpu.dot_dimension_numbers<[1], [0], [0], [1], [0, 0, 1, 1], [], []>} : vector<8x8xf32>, vector<8x32xf32>, vector<8x32xf32> -> vector<8x32xf32>
    %214 = vector.broadcast %194 : vector<1x32xf32> to vector<8x32xf32>
    %215 = arith.addf %214, %213 : vector<8x32xf32>
    %216 = vector.extract_strided_slice %188 {offsets = [0, 8], sizes = [8, 8], strides = [1, 1]} : vector<8x32xf32> to vector<8x8xf32>
    %217 = vector.extract_strided_slice %189 {offsets = [0, 8], sizes = [8, 8], strides = [1, 1]} : vector<8x32xf32> to vector<8x8xf32>
    %cst_99 = arith.constant dense<0.000000e+00> : vector<8x8xf32>
    %218 = tpu.matmul %216, %217, %cst_99 {dimension_numbers = #tpu.dot_dimension_numbers<[1], [1], [0], [0], [0, 0, 1, 0], [], []>} : vector<8x8xf32>, vector<8x8xf32>, vector<8x8xf32> -> vector<8x8xf32>
    %219 = vector.broadcast %5 : vector<1x8xf32> to vector<8x8xf32>
    %220 = arith.addf %218, %219 : vector<8x8xf32>
    %cst_100 = arith.constant dense<0xFF800000> : vector<8xf32>
    %221 = vector.multi_reduction <maximumf>, %220, %cst_100 [1] : vector<8x8xf32> to vector<8xf32>
    %222 = vector.shape_cast %221 : vector<8xf32> to vector<8x1xf32>
    %223 = vector.broadcast %222 : vector<8x1xf32> to vector<8x8xf32>
    %224 = arith.subf %220, %223 : vector<8x8xf32>
    %225 = math.exp %224 : vector<8x8xf32>
    %cst_101 = arith.constant dense<0.000000e+00> : vector<8xf32>
    %226 = vector.multi_reduction <add>, %225, %cst_101 [1] : vector<8x8xf32> to vector<8xf32>
    %227 = vector.shape_cast %226 : vector<8xf32> to vector<8x1xf32>
    %228 = tpu.reciprocal %227 {approx = true} : vector<8x1xf32> -> vector<8x1xf32>
    %229 = vector.broadcast %228 : vector<8x1xf32> to vector<8x8xf32>
    %230 = arith.mulf %225, %229 : vector<8x8xf32>
    %231 = vector.extract_strided_slice %190 {offsets = [0, 8], sizes = [8, 8], strides = [1, 1]} : vector<8x32xf32> to vector<8x8xf32>
    %cst_102 = arith.constant dense<0.000000e+00> : vector<8x8xf32>
    %232 = tpu.matmul %230, %231, %cst_102 {dimension_numbers = #tpu.dot_dimension_numbers<[1], [0], [0], [1], [0, 0, 1, 1], [], []>} : vector<8x8xf32>, vector<8x8xf32>, vector<8x8xf32> -> vector<8x8xf32>
    %233 = vector.extract_strided_slice %192 {offsets = [8, 0], sizes = [8, 32], strides = [1, 1]} : vector<32x32xf32> to vector<8x32xf32>
    %cst_103 = arith.constant dense<0.000000e+00> : vector<8x32xf32>
    %234 = tpu.matmul %232, %233, %cst_103 {dimension_numbers = #tpu.dot_dimension_numbers<[1], [0], [0], [1], [0, 0, 1, 1], [], []>} : vector<8x8xf32>, vector<8x32xf32>, vector<8x32xf32> -> vector<8x32xf32>
    %235 = arith.addf %215, %234 : vector<8x32xf32>
    %236 = vector.extract_strided_slice %188 {offsets = [0, 16], sizes = [8, 8], strides = [1, 1]} : vector<8x32xf32> to vector<8x8xf32>
    %237 = vector.extract_strided_slice %189 {offsets = [0, 16], sizes = [8, 8], strides = [1, 1]} : vector<8x32xf32> to vector<8x8xf32>
    %cst_104 = arith.constant dense<0.000000e+00> : vector<8x8xf32>
    %238 = tpu.matmul %236, %237, %cst_104 {dimension_numbers = #tpu.dot_dimension_numbers<[1], [1], [0], [0], [0, 0, 1, 0], [], []>} : vector<8x8xf32>, vector<8x8xf32>, vector<8x8xf32> -> vector<8x8xf32>
    %239 = vector.broadcast %5 : vector<1x8xf32> to vector<8x8xf32>
    %240 = arith.addf %238, %239 : vector<8x8xf32>
    %cst_105 = arith.constant dense<0xFF800000> : vector<8xf32>
    %241 = vector.multi_reduction <maximumf>, %240, %cst_105 [1] : vector<8x8xf32> to vector<8xf32>
    %242 = vector.shape_cast %241 : vector<8xf32> to vector<8x1xf32>
    %243 = vector.broadcast %242 : vector<8x1xf32> to vector<8x8xf32>
    %244 = arith.subf %240, %243 : vector<8x8xf32>
    %245 = math.exp %244 : vector<8x8xf32>
    %cst_106 = arith.constant dense<0.000000e+00> : vector<8xf32>
    %246 = vector.multi_reduction <add>, %245, %cst_106 [1] : vector<8x8xf32> to vector<8xf32>
    %247 = vector.shape_cast %246 : vector<8xf32> to vector<8x1xf32>
    %248 = tpu.reciprocal %247 {approx = true} : vector<8x1xf32> -> vector<8x1xf32>
    %249 = vector.broadcast %248 : vector<8x1xf32> to vector<8x8xf32>
    %250 = arith.mulf %245, %249 : vector<8x8xf32>
    %251 = vector.extract_strided_slice %190 {offsets = [0, 16], sizes = [8, 8], strides = [1, 1]} : vector<8x32xf32> to vector<8x8xf32>
    %cst_107 = arith.constant dense<0.000000e+00> : vector<8x8xf32>
    %252 = tpu.matmul %250, %251, %cst_107 {dimension_numbers = #tpu.dot_dimension_numbers<[1], [0], [0], [1], [0, 0, 1, 1], [], []>} : vector<8x8xf32>, vector<8x8xf32>, vector<8x8xf32> -> vector<8x8xf32>
    %253 = vector.extract_strided_slice %192 {offsets = [16, 0], sizes = [8, 32], strides = [1, 1]} : vector<32x32xf32> to vector<8x32xf32>
    %cst_108 = arith.constant dense<0.000000e+00> : vector<8x32xf32>
    %254 = tpu.matmul %252, %253, %cst_108 {dimension_numbers = #tpu.dot_dimension_numbers<[1], [0], [0], [1], [0, 0, 1, 1], [], []>} : vector<8x8xf32>, vector<8x32xf32>, vector<8x32xf32> -> vector<8x32xf32>
    %255 = arith.addf %235, %254 : vector<8x32xf32>
    %256 = vector.extract_strided_slice %188 {offsets = [0, 24], sizes = [8, 8], strides = [1, 1]} : vector<8x32xf32> to vector<8x8xf32>
    %257 = vector.extract_strided_slice %189 {offsets = [0, 24], sizes = [8, 8], strides = [1, 1]} : vector<8x32xf32> to vector<8x8xf32>
    %cst_109 = arith.constant dense<0.000000e+00> : vector<8x8xf32>
    %258 = tpu.matmul %256, %257, %cst_109 {dimension_numbers = #tpu.dot_dimension_numbers<[1], [1], [0], [0], [0, 0, 1, 0], [], []>} : vector<8x8xf32>, vector<8x8xf32>, vector<8x8xf32> -> vector<8x8xf32>
    %259 = vector.broadcast %5 : vector<1x8xf32> to vector<8x8xf32>
    %260 = arith.addf %258, %259 : vector<8x8xf32>
    %cst_110 = arith.constant dense<0xFF800000> : vector<8xf32>
    %261 = vector.multi_reduction <maximumf>, %260, %cst_110 [1] : vector<8x8xf32> to vector<8xf32>
    %262 = vector.shape_cast %261 : vector<8xf32> to vector<8x1xf32>
    %263 = vector.broadcast %262 : vector<8x1xf32> to vector<8x8xf32>
    %264 = arith.subf %260, %263 : vector<8x8xf32>
    %265 = math.exp %264 : vector<8x8xf32>
    %cst_111 = arith.constant dense<0.000000e+00> : vector<8xf32>
    %266 = vector.multi_reduction <add>, %265, %cst_111 [1] : vector<8x8xf32> to vector<8xf32>
    %267 = vector.shape_cast %266 : vector<8xf32> to vector<8x1xf32>
    %268 = tpu.reciprocal %267 {approx = true} : vector<8x1xf32> -> vector<8x1xf32>
    %269 = vector.broadcast %268 : vector<8x1xf32> to vector<8x8xf32>
    %270 = arith.mulf %265, %269 : vector<8x8xf32>
    %271 = vector.extract_strided_slice %190 {offsets = [0, 24], sizes = [8, 8], strides = [1, 1]} : vector<8x32xf32> to vector<8x8xf32>
    %cst_112 = arith.constant dense<0.000000e+00> : vector<8x8xf32>
    %272 = tpu.matmul %270, %271, %cst_112 {dimension_numbers = #tpu.dot_dimension_numbers<[1], [0], [0], [1], [0, 0, 1, 1], [], []>} : vector<8x8xf32>, vector<8x8xf32>, vector<8x8xf32> -> vector<8x8xf32>
    %273 = vector.extract_strided_slice %192 {offsets = [24, 0], sizes = [8, 32], strides = [1, 1]} : vector<32x32xf32> to vector<8x32xf32>
    %cst_113 = arith.constant dense<0.000000e+00> : vector<8x32xf32>
    %274 = tpu.matmul %272, %273, %cst_113 {dimension_numbers = #tpu.dot_dimension_numbers<[1], [0], [0], [1], [0, 0, 1, 1], [], []>} : vector<8x8xf32>, vector<8x32xf32>, vector<8x32xf32> -> vector<8x32xf32>
    %275 = arith.addf %255, %274 : vector<8x32xf32>
    %276 = arith.addf %180, %275 : vector<8x32xf32>
    %c1_114 = arith.constant 1 : index
    %c0_115 = arith.constant 0 : index
    %c0_116 = arith.constant 0 : index
    %277 = vector.load %arg9[%c1_114, %c0_115, %c0_116] : memref<2x1x32xf32, #tpu.memory_space<vmem>>, vector<1x1x32xf32>
    %278 = vector.shape_cast %277 : vector<1x1x32xf32> to vector<1x32xf32>
    %c1_117 = arith.constant 1 : index
    %c0_118 = arith.constant 0 : index
    %c0_119 = arith.constant 0 : index
    %279 = vector.load %arg10[%c1_117, %c0_118, %c0_119] : memref<2x1x32xf32, #tpu.memory_space<vmem>>, vector<1x1x32xf32>
    %280 = vector.shape_cast %279 : vector<1x1x32xf32> to vector<1x32xf32>
    %cst_120 = arith.constant dense<0.000000e+00> : vector<8xf32>
    %281 = vector.multi_reduction <add>, %276, %cst_120 [1] : vector<8x32xf32> to vector<8xf32>
    %282 = vector.shape_cast %281 : vector<8xf32> to vector<8x1xf32>
    %cst_121 = arith.constant 3.200000e+01 : f32
    %283 = vector.broadcast %cst_121 : f32 to vector<8x1xf32>
    %284 = arith.divf %282, %283 : vector<8x1xf32>
    %285 = vector.broadcast %284 : vector<8x1xf32> to vector<8x32xf32>
    %286 = arith.subf %276, %285 : vector<8x32xf32>
    %287 = arith.mulf %286, %286 : vector<8x32xf32>
    %cst_122 = arith.constant dense<0.000000e+00> : vector<8xf32>
    %288 = vector.multi_reduction <add>, %287, %cst_122 [1] : vector<8x32xf32> to vector<8xf32>
    %289 = vector.shape_cast %288 : vector<8xf32> to vector<8x1xf32>
    %cst_123 = arith.constant 3.200000e+01 : f32
    %290 = vector.broadcast %cst_123 : f32 to vector<8x1xf32>
    %291 = arith.divf %289, %290 : vector<8x1xf32>
    %292 = vector.broadcast %284 : vector<8x1xf32> to vector<8x32xf32>
    %293 = arith.subf %276, %292 : vector<8x32xf32>
    %cst_124 = arith.constant 9.99999974E-6 : f32
    %294 = vector.broadcast %cst_124 : f32 to vector<8x1xf32>
    %295 = arith.addf %291, %294 : vector<8x1xf32>
    %296 = math.rsqrt %295 : vector<8x1xf32>
    %297 = vector.broadcast %296 : vector<8x1xf32> to vector<8x32xf32>
    %298 = arith.mulf %293, %297 : vector<8x32xf32>
    %299 = vector.broadcast %278 : vector<1x32xf32> to vector<8x32xf32>
    %300 = arith.mulf %298, %299 : vector<8x32xf32>
    %301 = vector.broadcast %280 : vector<1x32xf32> to vector<8x32xf32>
    %302 = arith.addf %300, %301 : vector<8x32xf32>
    %c1_125 = arith.constant 1 : index
    %c0_126 = arith.constant 0 : index
    %c0_127 = arith.constant 0 : index
    %303 = vector.load %arg11[%c1_125, %c0_126, %c0_127] : memref<2x32x64xf32, #tpu.memory_space<vmem>>, vector<1x32x64xf32>
    %304 = vector.shape_cast %303 : vector<1x32x64xf32> to vector<32x64xf32>
    %cst_128 = arith.constant dense<0.000000e+00> : vector<8x64xf32>
    %305 = tpu.matmul %302, %304, %cst_128 {dimension_numbers = #tpu.dot_dimension_numbers<[1], [0], [0], [1], [0, 0, 1, 1], [], []>} : vector<8x32xf32>, vector<32x64xf32>, vector<8x64xf32> -> vector<8x64xf32>
    %c1_129 = arith.constant 1 : index
    %c0_130 = arith.constant 0 : index
    %c0_131 = arith.constant 0 : index
    %306 = vector.load %arg12[%c1_129, %c0_130, %c0_131] : memref<2x1x64xf32, #tpu.memory_space<vmem>>, vector<1x1x64xf32>
    %307 = vector.shape_cast %306 : vector<1x1x64xf32> to vector<1x64xf32>
    %308 = vector.broadcast %307 : vector<1x64xf32> to vector<8x64xf32>
    %309 = arith.addf %305, %308 : vector<8x64xf32>
    %cst_132 = arith.constant 0.000000e+00 : f32
    %310 = vector.broadcast %cst_132 : f32 to vector<8x64xf32>
    %311 = arith.maximumf %309, %310 : vector<8x64xf32>
    %c1_133 = arith.constant 1 : index
    %c0_134 = arith.constant 0 : index
    %c0_135 = arith.constant 0 : index
    %312 = vector.load %arg13[%c1_133, %c0_134, %c0_135] : memref<2x64x32xf32, #tpu.memory_space<vmem>>, vector<1x64x32xf32>
    %313 = vector.shape_cast %312 : vector<1x64x32xf32> to vector<64x32xf32>
    %cst_136 = arith.constant dense<0.000000e+00> : vector<8x32xf32>
    %314 = tpu.matmul %311, %313, %cst_136 {dimension_numbers = #tpu.dot_dimension_numbers<[1], [0], [0], [1], [0, 0, 1, 1], [], []>} : vector<8x64xf32>, vector<64x32xf32>, vector<8x32xf32> -> vector<8x32xf32>
    %c1_137 = arith.constant 1 : index
    %c0_138 = arith.constant 0 : index
    %c0_139 = arith.constant 0 : index
    %315 = vector.load %arg14[%c1_137, %c0_138, %c0_139] : memref<2x1x32xf32, #tpu.memory_space<vmem>>, vector<1x1x32xf32>
    %316 = vector.shape_cast %315 : vector<1x1x32xf32> to vector<1x32xf32>
    %317 = vector.broadcast %316 : vector<1x32xf32> to vector<8x32xf32>
    %318 = arith.addf %314, %317 : vector<8x32xf32>
    %319 = arith.addf %302, %318 : vector<8x32xf32>
    %c1_140 = arith.constant 1 : index
    %c0_141 = arith.constant 0 : index
    %c0_142 = arith.constant 0 : index
    %320 = vector.load %arg15[%c1_140, %c0_141, %c0_142] : memref<2x1x32xf32, #tpu.memory_space<vmem>>, vector<1x1x32xf32>
    %321 = vector.shape_cast %320 : vector<1x1x32xf32> to vector<1x32xf32>
    %c1_143 = arith.constant 1 : index
    %c0_144 = arith.constant 0 : index
    %c0_145 = arith.constant 0 : index
    %322 = vector.load %arg16[%c1_143, %c0_144, %c0_145] : memref<2x1x32xf32, #tpu.memory_space<vmem>>, vector<1x1x32xf32>
    %323 = vector.shape_cast %322 : vector<1x1x32xf32> to vector<1x32xf32>
    %cst_146 = arith.constant dense<0.000000e+00> : vector<8xf32>
    %324 = vector.multi_reduction <add>, %319, %cst_146 [1] : vector<8x32xf32> to vector<8xf32>
    %325 = vector.shape_cast %324 : vector<8xf32> to vector<8x1xf32>
    %cst_147 = arith.constant 3.200000e+01 : f32
    %326 = vector.broadcast %cst_147 : f32 to vector<8x1xf32>
    %327 = arith.divf %325, %326 : vector<8x1xf32>
    %328 = vector.broadcast %327 : vector<8x1xf32> to vector<8x32xf32>
    %329 = arith.subf %319, %328 : vector<8x32xf32>
    %330 = arith.mulf %329, %329 : vector<8x32xf32>
    %cst_148 = arith.constant dense<0.000000e+00> : vector<8xf32>
    %331 = vector.multi_reduction <add>, %330, %cst_148 [1] : vector<8x32xf32> to vector<8xf32>
    %332 = vector.shape_cast %331 : vector<8xf32> to vector<8x1xf32>
    %cst_149 = arith.constant 3.200000e+01 : f32
    %333 = vector.broadcast %cst_149 : f32 to vector<8x1xf32>
    %334 = arith.divf %332, %333 : vector<8x1xf32>
    %335 = vector.broadcast %327 : vector<8x1xf32> to vector<8x32xf32>
    %336 = arith.subf %319, %335 : vector<8x32xf32>
    %cst_150 = arith.constant 9.99999974E-6 : f32
    %337 = vector.broadcast %cst_150 : f32 to vector<8x1xf32>
    %338 = arith.addf %334, %337 : vector<8x1xf32>
    %339 = math.rsqrt %338 : vector<8x1xf32>
    %340 = vector.broadcast %339 : vector<8x1xf32> to vector<8x32xf32>
    %341 = arith.mulf %336, %340 : vector<8x32xf32>
    %342 = vector.broadcast %321 : vector<1x32xf32> to vector<8x32xf32>
    %343 = arith.mulf %341, %342 : vector<8x32xf32>
    %344 = vector.broadcast %323 : vector<1x32xf32> to vector<8x32xf32>
    %345 = arith.addf %343, %344 : vector<8x32xf32>
    %c0_151 = arith.constant 0 : index
    %c0_152 = arith.constant 0 : index
    %346 = vector.load %arg37[%c0_151, %c0_152] : memref<1x32xf32, #tpu.memory_space<vmem>>, vector<1x32xf32>
    %c0_153 = arith.constant 0 : index
    %c0_154 = arith.constant 0 : index
    %347 = vector.load %arg38[%c0_153, %c0_154] : memref<1x32xf32, #tpu.memory_space<vmem>>, vector<1x32xf32>
    %cst_155 = arith.constant dense<0.000000e+00> : vector<8xf32>
    %348 = vector.multi_reduction <add>, %345, %cst_155 [1] : vector<8x32xf32> to vector<8xf32>
    %349 = vector.shape_cast %348 : vector<8xf32> to vector<8x1xf32>
    %cst_156 = arith.constant 3.200000e+01 : f32
    %350 = vector.broadcast %cst_156 : f32 to vector<8x1xf32>
    %351 = arith.divf %349, %350 : vector<8x1xf32>
    %352 = vector.broadcast %351 : vector<8x1xf32> to vector<8x32xf32>
    %353 = arith.subf %345, %352 : vector<8x32xf32>
    %354 = arith.mulf %353, %353 : vector<8x32xf32>
    %cst_157 = arith.constant dense<0.000000e+00> : vector<8xf32>
    %355 = vector.multi_reduction <add>, %354, %cst_157 [1] : vector<8x32xf32> to vector<8xf32>
    %356 = vector.shape_cast %355 : vector<8xf32> to vector<8x1xf32>
    %cst_158 = arith.constant 3.200000e+01 : f32
    %357 = vector.broadcast %cst_158 : f32 to vector<8x1xf32>
    %358 = arith.divf %356, %357 : vector<8x1xf32>
    %359 = vector.broadcast %351 : vector<8x1xf32> to vector<8x32xf32>
    %360 = arith.subf %345, %359 : vector<8x32xf32>
    %cst_159 = arith.constant 9.99999974E-6 : f32
    %361 = vector.broadcast %cst_159 : f32 to vector<8x1xf32>
    %362 = arith.addf %358, %361 : vector<8x1xf32>
    %363 = math.rsqrt %362 : vector<8x1xf32>
    %364 = vector.broadcast %363 : vector<8x1xf32> to vector<8x32xf32>
    %365 = arith.mulf %360, %364 : vector<8x32xf32>
    %366 = vector.broadcast %346 : vector<1x32xf32> to vector<8x32xf32>
    %367 = arith.mulf %365, %366 : vector<8x32xf32>
    %368 = vector.broadcast %347 : vector<1x32xf32> to vector<8x32xf32>
    %369 = arith.addf %367, %368 : vector<8x32xf32>
    %c0_160 = arith.constant 0 : index
    %c0_161 = arith.constant 0 : index
    %c0_162 = arith.constant 0 : index
    %370 = vector.load %arg17[%c0_160, %c0_161, %c0_162] : memref<2x32x96xf32, #tpu.memory_space<vmem>>, vector<1x32x96xf32>
    %371 = vector.shape_cast %370 : vector<1x32x96xf32> to vector<32x96xf32>
    %cst_163 = arith.constant dense<0.000000e+00> : vector<8x96xf32>
    %372 = tpu.matmul %3, %371, %cst_163 {dimension_numbers = #tpu.dot_dimension_numbers<[1], [0], [0], [1], [0, 0, 1, 1], [], []>} : vector<8x32xf32>, vector<32x96xf32>, vector<8x96xf32> -> vector<8x96xf32>
    %c0_164 = arith.constant 0 : index
    %c0_165 = arith.constant 0 : index
    %c0_166 = arith.constant 0 : index
    %373 = vector.load %arg18[%c0_164, %c0_165, %c0_166] : memref<2x1x96xf32, #tpu.memory_space<vmem>>, vector<1x1x96xf32>
    %374 = vector.shape_cast %373 : vector<1x1x96xf32> to vector<1x96xf32>
    %375 = vector.broadcast %374 : vector<1x96xf32> to vector<8x96xf32>
    %376 = arith.addf %372, %375 : vector<8x96xf32>
    %377 = vector.extract_strided_slice %376 {offsets = [0, 0], sizes = [8, 32], strides = [1, 1]} : vector<8x96xf32> to vector<8x32xf32>
    %378 = vector.extract_strided_slice %376 {offsets = [0, 32], sizes = [8, 32], strides = [1, 1]} : vector<8x96xf32> to vector<8x32xf32>
    %379 = vector.extract_strided_slice %376 {offsets = [0, 64], sizes = [8, 32], strides = [1, 1]} : vector<8x96xf32> to vector<8x32xf32>
    %c0_167 = arith.constant 0 : index
    %c0_168 = arith.constant 0 : index
    %c0_169 = arith.constant 0 : index
    %380 = vector.load %arg19[%c0_167, %c0_168, %c0_169] : memref<2x32x32xf32, #tpu.memory_space<vmem>>, vector<1x32x32xf32>
    %381 = vector.shape_cast %380 : vector<1x32x32xf32> to vector<32x32xf32>
    %c0_170 = arith.constant 0 : index
    %c0_171 = arith.constant 0 : index
    %c0_172 = arith.constant 0 : index
    %382 = vector.load %arg20[%c0_170, %c0_171, %c0_172] : memref<2x1x32xf32, #tpu.memory_space<vmem>>, vector<1x1x32xf32>
    %383 = vector.shape_cast %382 : vector<1x1x32xf32> to vector<1x32xf32>
    %384 = vector.extract_strided_slice %377 {offsets = [0, 0], sizes = [8, 8], strides = [1, 1]} : vector<8x32xf32> to vector<8x8xf32>
    %385 = vector.extract_strided_slice %378 {offsets = [0, 0], sizes = [8, 8], strides = [1, 1]} : vector<8x32xf32> to vector<8x8xf32>
    %cst_173 = arith.constant dense<0.000000e+00> : vector<8x8xf32>
    %386 = tpu.matmul %384, %385, %cst_173 {dimension_numbers = #tpu.dot_dimension_numbers<[1], [1], [0], [0], [0, 0, 1, 0], [], []>} : vector<8x8xf32>, vector<8x8xf32>, vector<8x8xf32> -> vector<8x8xf32>
    %387 = arith.addf %386, %15 : vector<8x8xf32>
    %cst_174 = arith.constant dense<0xFF800000> : vector<8xf32>
    %388 = vector.multi_reduction <maximumf>, %387, %cst_174 [1] : vector<8x8xf32> to vector<8xf32>
    %389 = vector.shape_cast %388 : vector<8xf32> to vector<8x1xf32>
    %390 = vector.broadcast %389 : vector<8x1xf32> to vector<8x8xf32>
    %391 = arith.subf %387, %390 : vector<8x8xf32>
    %392 = math.exp %391 : vector<8x8xf32>
    %cst_175 = arith.constant dense<0.000000e+00> : vector<8xf32>
    %393 = vector.multi_reduction <add>, %392, %cst_175 [1] : vector<8x8xf32> to vector<8xf32>
    %394 = vector.shape_cast %393 : vector<8xf32> to vector<8x1xf32>
    %395 = tpu.reciprocal %394 {approx = true} : vector<8x1xf32> -> vector<8x1xf32>
    %396 = vector.broadcast %395 : vector<8x1xf32> to vector<8x8xf32>
    %397 = arith.mulf %392, %396 : vector<8x8xf32>
    %398 = vector.extract_strided_slice %379 {offsets = [0, 0], sizes = [8, 8], strides = [1, 1]} : vector<8x32xf32> to vector<8x8xf32>
    %cst_176 = arith.constant dense<0.000000e+00> : vector<8x8xf32>
    %399 = tpu.matmul %397, %398, %cst_176 {dimension_numbers = #tpu.dot_dimension_numbers<[1], [0], [0], [1], [0, 0, 1, 1], [], []>} : vector<8x8xf32>, vector<8x8xf32>, vector<8x8xf32> -> vector<8x8xf32>
    %400 = vector.extract_strided_slice %381 {offsets = [0, 0], sizes = [8, 32], strides = [1, 1]} : vector<32x32xf32> to vector<8x32xf32>
    %cst_177 = arith.constant dense<0.000000e+00> : vector<8x32xf32>
    %401 = tpu.matmul %399, %400, %cst_177 {dimension_numbers = #tpu.dot_dimension_numbers<[1], [0], [0], [1], [0, 0, 1, 1], [], []>} : vector<8x8xf32>, vector<8x32xf32>, vector<8x32xf32> -> vector<8x32xf32>
    %402 = vector.broadcast %383 : vector<1x32xf32> to vector<8x32xf32>
    %403 = arith.addf %402, %401 : vector<8x32xf32>
    %404 = vector.extract_strided_slice %377 {offsets = [0, 8], sizes = [8, 8], strides = [1, 1]} : vector<8x32xf32> to vector<8x8xf32>
    %405 = vector.extract_strided_slice %378 {offsets = [0, 8], sizes = [8, 8], strides = [1, 1]} : vector<8x32xf32> to vector<8x8xf32>
    %cst_178 = arith.constant dense<0.000000e+00> : vector<8x8xf32>
    %406 = tpu.matmul %404, %405, %cst_178 {dimension_numbers = #tpu.dot_dimension_numbers<[1], [1], [0], [0], [0, 0, 1, 0], [], []>} : vector<8x8xf32>, vector<8x8xf32>, vector<8x8xf32> -> vector<8x8xf32>
    %407 = arith.addf %406, %15 : vector<8x8xf32>
    %cst_179 = arith.constant dense<0xFF800000> : vector<8xf32>
    %408 = vector.multi_reduction <maximumf>, %407, %cst_179 [1] : vector<8x8xf32> to vector<8xf32>
    %409 = vector.shape_cast %408 : vector<8xf32> to vector<8x1xf32>
    %410 = vector.broadcast %409 : vector<8x1xf32> to vector<8x8xf32>
    %411 = arith.subf %407, %410 : vector<8x8xf32>
    %412 = math.exp %411 : vector<8x8xf32>
    %cst_180 = arith.constant dense<0.000000e+00> : vector<8xf32>
    %413 = vector.multi_reduction <add>, %412, %cst_180 [1] : vector<8x8xf32> to vector<8xf32>
    %414 = vector.shape_cast %413 : vector<8xf32> to vector<8x1xf32>
    %415 = tpu.reciprocal %414 {approx = true} : vector<8x1xf32> -> vector<8x1xf32>
    %416 = vector.broadcast %415 : vector<8x1xf32> to vector<8x8xf32>
    %417 = arith.mulf %412, %416 : vector<8x8xf32>
    %418 = vector.extract_strided_slice %379 {offsets = [0, 8], sizes = [8, 8], strides = [1, 1]} : vector<8x32xf32> to vector<8x8xf32>
    %cst_181 = arith.constant dense<0.000000e+00> : vector<8x8xf32>
    %419 = tpu.matmul %417, %418, %cst_181 {dimension_numbers = #tpu.dot_dimension_numbers<[1], [0], [0], [1], [0, 0, 1, 1], [], []>} : vector<8x8xf32>, vector<8x8xf32>, vector<8x8xf32> -> vector<8x8xf32>
    %420 = vector.extract_strided_slice %381 {offsets = [8, 0], sizes = [8, 32], strides = [1, 1]} : vector<32x32xf32> to vector<8x32xf32>
    %cst_182 = arith.constant dense<0.000000e+00> : vector<8x32xf32>
    %421 = tpu.matmul %419, %420, %cst_182 {dimension_numbers = #tpu.dot_dimension_numbers<[1], [0], [0], [1], [0, 0, 1, 1], [], []>} : vector<8x8xf32>, vector<8x32xf32>, vector<8x32xf32> -> vector<8x32xf32>
    %422 = arith.addf %403, %421 : vector<8x32xf32>
    %423 = vector.extract_strided_slice %377 {offsets = [0, 16], sizes = [8, 8], strides = [1, 1]} : vector<8x32xf32> to vector<8x8xf32>
    %424 = vector.extract_strided_slice %378 {offsets = [0, 16], sizes = [8, 8], strides = [1, 1]} : vector<8x32xf32> to vector<8x8xf32>
    %cst_183 = arith.constant dense<0.000000e+00> : vector<8x8xf32>
    %425 = tpu.matmul %423, %424, %cst_183 {dimension_numbers = #tpu.dot_dimension_numbers<[1], [1], [0], [0], [0, 0, 1, 0], [], []>} : vector<8x8xf32>, vector<8x8xf32>, vector<8x8xf32> -> vector<8x8xf32>
    %426 = arith.addf %425, %15 : vector<8x8xf32>
    %cst_184 = arith.constant dense<0xFF800000> : vector<8xf32>
    %427 = vector.multi_reduction <maximumf>, %426, %cst_184 [1] : vector<8x8xf32> to vector<8xf32>
    %428 = vector.shape_cast %427 : vector<8xf32> to vector<8x1xf32>
    %429 = vector.broadcast %428 : vector<8x1xf32> to vector<8x8xf32>
    %430 = arith.subf %426, %429 : vector<8x8xf32>
    %431 = math.exp %430 : vector<8x8xf32>
    %cst_185 = arith.constant dense<0.000000e+00> : vector<8xf32>
    %432 = vector.multi_reduction <add>, %431, %cst_185 [1] : vector<8x8xf32> to vector<8xf32>
    %433 = vector.shape_cast %432 : vector<8xf32> to vector<8x1xf32>
    %434 = tpu.reciprocal %433 {approx = true} : vector<8x1xf32> -> vector<8x1xf32>
    %435 = vector.broadcast %434 : vector<8x1xf32> to vector<8x8xf32>
    %436 = arith.mulf %431, %435 : vector<8x8xf32>
    %437 = vector.extract_strided_slice %379 {offsets = [0, 16], sizes = [8, 8], strides = [1, 1]} : vector<8x32xf32> to vector<8x8xf32>
    %cst_186 = arith.constant dense<0.000000e+00> : vector<8x8xf32>
    %438 = tpu.matmul %436, %437, %cst_186 {dimension_numbers = #tpu.dot_dimension_numbers<[1], [0], [0], [1], [0, 0, 1, 1], [], []>} : vector<8x8xf32>, vector<8x8xf32>, vector<8x8xf32> -> vector<8x8xf32>
    %439 = vector.extract_strided_slice %381 {offsets = [16, 0], sizes = [8, 32], strides = [1, 1]} : vector<32x32xf32> to vector<8x32xf32>
    %cst_187 = arith.constant dense<0.000000e+00> : vector<8x32xf32>
    %440 = tpu.matmul %438, %439, %cst_187 {dimension_numbers = #tpu.dot_dimension_numbers<[1], [0], [0], [1], [0, 0, 1, 1], [], []>} : vector<8x8xf32>, vector<8x32xf32>, vector<8x32xf32> -> vector<8x32xf32>
    %441 = arith.addf %422, %440 : vector<8x32xf32>
    %442 = vector.extract_strided_slice %377 {offsets = [0, 24], sizes = [8, 8], strides = [1, 1]} : vector<8x32xf32> to vector<8x8xf32>
    %443 = vector.extract_strided_slice %378 {offsets = [0, 24], sizes = [8, 8], strides = [1, 1]} : vector<8x32xf32> to vector<8x8xf32>
    %cst_188 = arith.constant dense<0.000000e+00> : vector<8x8xf32>
    %444 = tpu.matmul %442, %443, %cst_188 {dimension_numbers = #tpu.dot_dimension_numbers<[1], [1], [0], [0], [0, 0, 1, 0], [], []>} : vector<8x8xf32>, vector<8x8xf32>, vector<8x8xf32> -> vector<8x8xf32>
    %445 = arith.addf %444, %15 : vector<8x8xf32>
    %cst_189 = arith.constant dense<0xFF800000> : vector<8xf32>
    %446 = vector.multi_reduction <maximumf>, %445, %cst_189 [1] : vector<8x8xf32> to vector<8xf32>
    %447 = vector.shape_cast %446 : vector<8xf32> to vector<8x1xf32>
    %448 = vector.broadcast %447 : vector<8x1xf32> to vector<8x8xf32>
    %449 = arith.subf %445, %448 : vector<8x8xf32>
    %450 = math.exp %449 : vector<8x8xf32>
    %cst_190 = arith.constant dense<0.000000e+00> : vector<8xf32>
    %451 = vector.multi_reduction <add>, %450, %cst_190 [1] : vector<8x8xf32> to vector<8xf32>
    %452 = vector.shape_cast %451 : vector<8xf32> to vector<8x1xf32>
    %453 = tpu.reciprocal %452 {approx = true} : vector<8x1xf32> -> vector<8x1xf32>
    %454 = vector.broadcast %453 : vector<8x1xf32> to vector<8x8xf32>
    %455 = arith.mulf %450, %454 : vector<8x8xf32>
    %456 = vector.extract_strided_slice %379 {offsets = [0, 24], sizes = [8, 8], strides = [1, 1]} : vector<8x32xf32> to vector<8x8xf32>
    %cst_191 = arith.constant dense<0.000000e+00> : vector<8x8xf32>
    %457 = tpu.matmul %455, %456, %cst_191 {dimension_numbers = #tpu.dot_dimension_numbers<[1], [0], [0], [1], [0, 0, 1, 1], [], []>} : vector<8x8xf32>, vector<8x8xf32>, vector<8x8xf32> -> vector<8x8xf32>
    %458 = vector.extract_strided_slice %381 {offsets = [24, 0], sizes = [8, 32], strides = [1, 1]} : vector<32x32xf32> to vector<8x32xf32>
    %cst_192 = arith.constant dense<0.000000e+00> : vector<8x32xf32>
    %459 = tpu.matmul %457, %458, %cst_192 {dimension_numbers = #tpu.dot_dimension_numbers<[1], [0], [0], [1], [0, 0, 1, 1], [], []>} : vector<8x8xf32>, vector<8x32xf32>, vector<8x32xf32> -> vector<8x32xf32>
    %460 = arith.addf %441, %459 : vector<8x32xf32>
    %461 = arith.addf %3, %460 : vector<8x32xf32>
    %c0_193 = arith.constant 0 : index
    %c0_194 = arith.constant 0 : index
    %c0_195 = arith.constant 0 : index
    %462 = vector.load %arg27[%c0_193, %c0_194, %c0_195] : memref<2x1x32xf32, #tpu.memory_space<vmem>>, vector<1x1x32xf32>
    %463 = vector.shape_cast %462 : vector<1x1x32xf32> to vector<1x32xf32>
    %c0_196 = arith.constant 0 : index
    %c0_197 = arith.constant 0 : index
    %c0_198 = arith.constant 0 : index
    %464 = vector.load %arg28[%c0_196, %c0_197, %c0_198] : memref<2x1x32xf32, #tpu.memory_space<vmem>>, vector<1x1x32xf32>
    %465 = vector.shape_cast %464 : vector<1x1x32xf32> to vector<1x32xf32>
    %cst_199 = arith.constant dense<0.000000e+00> : vector<8xf32>
    %466 = vector.multi_reduction <add>, %461, %cst_199 [1] : vector<8x32xf32> to vector<8xf32>
    %467 = vector.shape_cast %466 : vector<8xf32> to vector<8x1xf32>
    %cst_200 = arith.constant 3.200000e+01 : f32
    %468 = vector.broadcast %cst_200 : f32 to vector<8x1xf32>
    %469 = arith.divf %467, %468 : vector<8x1xf32>
    %470 = vector.broadcast %469 : vector<8x1xf32> to vector<8x32xf32>
    %471 = arith.subf %461, %470 : vector<8x32xf32>
    %472 = arith.mulf %471, %471 : vector<8x32xf32>
    %cst_201 = arith.constant dense<0.000000e+00> : vector<8xf32>
    %473 = vector.multi_reduction <add>, %472, %cst_201 [1] : vector<8x32xf32> to vector<8xf32>
    %474 = vector.shape_cast %473 : vector<8xf32> to vector<8x1xf32>
    %cst_202 = arith.constant 3.200000e+01 : f32
    %475 = vector.broadcast %cst_202 : f32 to vector<8x1xf32>
    %476 = arith.divf %474, %475 : vector<8x1xf32>
    %477 = vector.broadcast %469 : vector<8x1xf32> to vector<8x32xf32>
    %478 = arith.subf %461, %477 : vector<8x32xf32>
    %cst_203 = arith.constant 9.99999974E-6 : f32
    %479 = vector.broadcast %cst_203 : f32 to vector<8x1xf32>
    %480 = arith.addf %476, %479 : vector<8x1xf32>
    %481 = math.rsqrt %480 : vector<8x1xf32>
    %482 = vector.broadcast %481 : vector<8x1xf32> to vector<8x32xf32>
    %483 = arith.mulf %478, %482 : vector<8x32xf32>
    %484 = vector.broadcast %463 : vector<1x32xf32> to vector<8x32xf32>
    %485 = arith.mulf %483, %484 : vector<8x32xf32>
    %486 = vector.broadcast %465 : vector<1x32xf32> to vector<8x32xf32>
    %487 = arith.addf %485, %486 : vector<8x32xf32>
    %c0_204 = arith.constant 0 : index
    %c0_205 = arith.constant 0 : index
    %c0_206 = arith.constant 0 : index
    %488 = vector.load %arg21[%c0_204, %c0_205, %c0_206] : memref<2x32x32xf32, #tpu.memory_space<vmem>>, vector<1x32x32xf32>
    %489 = vector.shape_cast %488 : vector<1x32x32xf32> to vector<32x32xf32>
    %cst_207 = arith.constant dense<0.000000e+00> : vector<8x32xf32>
    %490 = tpu.matmul %487, %489, %cst_207 {dimension_numbers = #tpu.dot_dimension_numbers<[1], [0], [0], [1], [0, 0, 1, 1], [], []>} : vector<8x32xf32>, vector<32x32xf32>, vector<8x32xf32> -> vector<8x32xf32>
    %c0_208 = arith.constant 0 : index
    %c0_209 = arith.constant 0 : index
    %c0_210 = arith.constant 0 : index
    %491 = vector.load %arg22[%c0_208, %c0_209, %c0_210] : memref<2x1x32xf32, #tpu.memory_space<vmem>>, vector<1x1x32xf32>
    %492 = vector.shape_cast %491 : vector<1x1x32xf32> to vector<1x32xf32>
    %493 = vector.broadcast %492 : vector<1x32xf32> to vector<8x32xf32>
    %494 = arith.addf %490, %493 : vector<8x32xf32>
    %c0_211 = arith.constant 0 : index
    %c0_212 = arith.constant 0 : index
    %c0_213 = arith.constant 0 : index
    %495 = vector.load %arg23[%c0_211, %c0_212, %c0_213] : memref<2x32x64xf32, #tpu.memory_space<vmem>>, vector<1x32x64xf32>
    %496 = vector.shape_cast %495 : vector<1x32x64xf32> to vector<32x64xf32>
    %cst_214 = arith.constant dense<0.000000e+00> : vector<8x64xf32>
    %497 = tpu.matmul %369, %496, %cst_214 {dimension_numbers = #tpu.dot_dimension_numbers<[1], [0], [0], [1], [0, 0, 1, 1], [], []>} : vector<8x32xf32>, vector<32x64xf32>, vector<8x64xf32> -> vector<8x64xf32>
    %c0_215 = arith.constant 0 : index
    %c0_216 = arith.constant 0 : index
    %c0_217 = arith.constant 0 : index
    %498 = vector.load %arg24[%c0_215, %c0_216, %c0_217] : memref<2x1x64xf32, #tpu.memory_space<vmem>>, vector<1x1x64xf32>
    %499 = vector.shape_cast %498 : vector<1x1x64xf32> to vector<1x64xf32>
    %500 = vector.broadcast %499 : vector<1x64xf32> to vector<8x64xf32>
    %501 = arith.addf %497, %500 : vector<8x64xf32>
    %502 = vector.extract_strided_slice %501 {offsets = [0, 0], sizes = [8, 32], strides = [1, 1]} : vector<8x64xf32> to vector<8x32xf32>
    %503 = vector.extract_strided_slice %501 {offsets = [0, 32], sizes = [8, 32], strides = [1, 1]} : vector<8x64xf32> to vector<8x32xf32>
    %c0_218 = arith.constant 0 : index
    %c0_219 = arith.constant 0 : index
    %c0_220 = arith.constant 0 : index
    %504 = vector.load %arg25[%c0_218, %c0_219, %c0_220] : memref<2x32x32xf32, #tpu.memory_space<vmem>>, vector<1x32x32xf32>
    %505 = vector.shape_cast %504 : vector<1x32x32xf32> to vector<32x32xf32>
    %c0_221 = arith.constant 0 : index
    %c0_222 = arith.constant 0 : index
    %c0_223 = arith.constant 0 : index
    %506 = vector.load %arg26[%c0_221, %c0_222, %c0_223] : memref<2x1x32xf32, #tpu.memory_space<vmem>>, vector<1x1x32xf32>
    %507 = vector.shape_cast %506 : vector<1x1x32xf32> to vector<1x32xf32>
    %508 = vector.extract_strided_slice %494 {offsets = [0, 0], sizes = [8, 8], strides = [1, 1]} : vector<8x32xf32> to vector<8x8xf32>
    %509 = vector.extract_strided_slice %502 {offsets = [0, 0], sizes = [8, 8], strides = [1, 1]} : vector<8x32xf32> to vector<8x8xf32>
    %cst_224 = arith.constant dense<0.000000e+00> : vector<8x8xf32>
    %510 = tpu.matmul %508, %509, %cst_224 {dimension_numbers = #tpu.dot_dimension_numbers<[1], [1], [0], [0], [0, 0, 1, 0], [], []>} : vector<8x8xf32>, vector<8x8xf32>, vector<8x8xf32> -> vector<8x8xf32>
    %cst_225 = arith.constant dense<0xFF800000> : vector<8xf32>
    %511 = vector.multi_reduction <maximumf>, %510, %cst_225 [1] : vector<8x8xf32> to vector<8xf32>
    %512 = vector.shape_cast %511 : vector<8xf32> to vector<8x1xf32>
    %513 = vector.broadcast %512 : vector<8x1xf32> to vector<8x8xf32>
    %514 = arith.subf %510, %513 : vector<8x8xf32>
    %515 = math.exp %514 : vector<8x8xf32>
    %cst_226 = arith.constant dense<0.000000e+00> : vector<8xf32>
    %516 = vector.multi_reduction <add>, %515, %cst_226 [1] : vector<8x8xf32> to vector<8xf32>
    %517 = vector.shape_cast %516 : vector<8xf32> to vector<8x1xf32>
    %518 = tpu.reciprocal %517 {approx = true} : vector<8x1xf32> -> vector<8x1xf32>
    %519 = vector.broadcast %518 : vector<8x1xf32> to vector<8x8xf32>
    %520 = arith.mulf %515, %519 : vector<8x8xf32>
    %521 = vector.extract_strided_slice %503 {offsets = [0, 0], sizes = [8, 8], strides = [1, 1]} : vector<8x32xf32> to vector<8x8xf32>
    %cst_227 = arith.constant dense<0.000000e+00> : vector<8x8xf32>
    %522 = tpu.matmul %520, %521, %cst_227 {dimension_numbers = #tpu.dot_dimension_numbers<[1], [0], [0], [1], [0, 0, 1, 1], [], []>} : vector<8x8xf32>, vector<8x8xf32>, vector<8x8xf32> -> vector<8x8xf32>
    %523 = vector.extract_strided_slice %505 {offsets = [0, 0], sizes = [8, 32], strides = [1, 1]} : vector<32x32xf32> to vector<8x32xf32>
    %cst_228 = arith.constant dense<0.000000e+00> : vector<8x32xf32>
    %524 = tpu.matmul %522, %523, %cst_228 {dimension_numbers = #tpu.dot_dimension_numbers<[1], [0], [0], [1], [0, 0, 1, 1], [], []>} : vector<8x8xf32>, vector<8x32xf32>, vector<8x32xf32> -> vector<8x32xf32>
    %525 = vector.broadcast %507 : vector<1x32xf32> to vector<8x32xf32>
    %526 = arith.addf %525, %524 : vector<8x32xf32>
    %527 = vector.extract_strided_slice %494 {offsets = [0, 8], sizes = [8, 8], strides = [1, 1]} : vector<8x32xf32> to vector<8x8xf32>
    %528 = vector.extract_strided_slice %502 {offsets = [0, 8], sizes = [8, 8], strides = [1, 1]} : vector<8x32xf32> to vector<8x8xf32>
    %cst_229 = arith.constant dense<0.000000e+00> : vector<8x8xf32>
    %529 = tpu.matmul %527, %528, %cst_229 {dimension_numbers = #tpu.dot_dimension_numbers<[1], [1], [0], [0], [0, 0, 1, 0], [], []>} : vector<8x8xf32>, vector<8x8xf32>, vector<8x8xf32> -> vector<8x8xf32>
    %cst_230 = arith.constant dense<0xFF800000> : vector<8xf32>
    %530 = vector.multi_reduction <maximumf>, %529, %cst_230 [1] : vector<8x8xf32> to vector<8xf32>
    %531 = vector.shape_cast %530 : vector<8xf32> to vector<8x1xf32>
    %532 = vector.broadcast %531 : vector<8x1xf32> to vector<8x8xf32>
    %533 = arith.subf %529, %532 : vector<8x8xf32>
    %534 = math.exp %533 : vector<8x8xf32>
    %cst_231 = arith.constant dense<0.000000e+00> : vector<8xf32>
    %535 = vector.multi_reduction <add>, %534, %cst_231 [1] : vector<8x8xf32> to vector<8xf32>
    %536 = vector.shape_cast %535 : vector<8xf32> to vector<8x1xf32>
    %537 = tpu.reciprocal %536 {approx = true} : vector<8x1xf32> -> vector<8x1xf32>
    %538 = vector.broadcast %537 : vector<8x1xf32> to vector<8x8xf32>
    %539 = arith.mulf %534, %538 : vector<8x8xf32>
    %540 = vector.extract_strided_slice %503 {offsets = [0, 8], sizes = [8, 8], strides = [1, 1]} : vector<8x32xf32> to vector<8x8xf32>
    %cst_232 = arith.constant dense<0.000000e+00> : vector<8x8xf32>
    %541 = tpu.matmul %539, %540, %cst_232 {dimension_numbers = #tpu.dot_dimension_numbers<[1], [0], [0], [1], [0, 0, 1, 1], [], []>} : vector<8x8xf32>, vector<8x8xf32>, vector<8x8xf32> -> vector<8x8xf32>
    %542 = vector.extract_strided_slice %505 {offsets = [8, 0], sizes = [8, 32], strides = [1, 1]} : vector<32x32xf32> to vector<8x32xf32>
    %cst_233 = arith.constant dense<0.000000e+00> : vector<8x32xf32>
    %543 = tpu.matmul %541, %542, %cst_233 {dimension_numbers = #tpu.dot_dimension_numbers<[1], [0], [0], [1], [0, 0, 1, 1], [], []>} : vector<8x8xf32>, vector<8x32xf32>, vector<8x32xf32> -> vector<8x32xf32>
    %544 = arith.addf %526, %543 : vector<8x32xf32>
    %545 = vector.extract_strided_slice %494 {offsets = [0, 16], sizes = [8, 8], strides = [1, 1]} : vector<8x32xf32> to vector<8x8xf32>
    %546 = vector.extract_strided_slice %502 {offsets = [0, 16], sizes = [8, 8], strides = [1, 1]} : vector<8x32xf32> to vector<8x8xf32>
    %cst_234 = arith.constant dense<0.000000e+00> : vector<8x8xf32>
    %547 = tpu.matmul %545, %546, %cst_234 {dimension_numbers = #tpu.dot_dimension_numbers<[1], [1], [0], [0], [0, 0, 1, 0], [], []>} : vector<8x8xf32>, vector<8x8xf32>, vector<8x8xf32> -> vector<8x8xf32>
    %cst_235 = arith.constant dense<0xFF800000> : vector<8xf32>
    %548 = vector.multi_reduction <maximumf>, %547, %cst_235 [1] : vector<8x8xf32> to vector<8xf32>
    %549 = vector.shape_cast %548 : vector<8xf32> to vector<8x1xf32>
    %550 = vector.broadcast %549 : vector<8x1xf32> to vector<8x8xf32>
    %551 = arith.subf %547, %550 : vector<8x8xf32>
    %552 = math.exp %551 : vector<8x8xf32>
    %cst_236 = arith.constant dense<0.000000e+00> : vector<8xf32>
    %553 = vector.multi_reduction <add>, %552, %cst_236 [1] : vector<8x8xf32> to vector<8xf32>
    %554 = vector.shape_cast %553 : vector<8xf32> to vector<8x1xf32>
    %555 = tpu.reciprocal %554 {approx = true} : vector<8x1xf32> -> vector<8x1xf32>
    %556 = vector.broadcast %555 : vector<8x1xf32> to vector<8x8xf32>
    %557 = arith.mulf %552, %556 : vector<8x8xf32>
    %558 = vector.extract_strided_slice %503 {offsets = [0, 16], sizes = [8, 8], strides = [1, 1]} : vector<8x32xf32> to vector<8x8xf32>
    %cst_237 = arith.constant dense<0.000000e+00> : vector<8x8xf32>
    %559 = tpu.matmul %557, %558, %cst_237 {dimension_numbers = #tpu.dot_dimension_numbers<[1], [0], [0], [1], [0, 0, 1, 1], [], []>} : vector<8x8xf32>, vector<8x8xf32>, vector<8x8xf32> -> vector<8x8xf32>
    %560 = vector.extract_strided_slice %505 {offsets = [16, 0], sizes = [8, 32], strides = [1, 1]} : vector<32x32xf32> to vector<8x32xf32>
    %cst_238 = arith.constant dense<0.000000e+00> : vector<8x32xf32>
    %561 = tpu.matmul %559, %560, %cst_238 {dimension_numbers = #tpu.dot_dimension_numbers<[1], [0], [0], [1], [0, 0, 1, 1], [], []>} : vector<8x8xf32>, vector<8x32xf32>, vector<8x32xf32> -> vector<8x32xf32>
    %562 = arith.addf %544, %561 : vector<8x32xf32>
    %563 = vector.extract_strided_slice %494 {offsets = [0, 24], sizes = [8, 8], strides = [1, 1]} : vector<8x32xf32> to vector<8x8xf32>
    %564 = vector.extract_strided_slice %502 {offsets = [0, 24], sizes = [8, 8], strides = [1, 1]} : vector<8x32xf32> to vector<8x8xf32>
    %cst_239 = arith.constant dense<0.000000e+00> : vector<8x8xf32>
    %565 = tpu.matmul %563, %564, %cst_239 {dimension_numbers = #tpu.dot_dimension_numbers<[1], [1], [0], [0], [0, 0, 1, 0], [], []>} : vector<8x8xf32>, vector<8x8xf32>, vector<8x8xf32> -> vector<8x8xf32>
    %cst_240 = arith.constant dense<0xFF800000> : vector<8xf32>
    %566 = vector.multi_reduction <maximumf>, %565, %cst_240 [1] : vector<8x8xf32> to vector<8xf32>
    %567 = vector.shape_cast %566 : vector<8xf32> to vector<8x1xf32>
    %568 = vector.broadcast %567 : vector<8x1xf32> to vector<8x8xf32>
    %569 = arith.subf %565, %568 : vector<8x8xf32>
    %570 = math.exp %569 : vector<8x8xf32>
    %cst_241 = arith.constant dense<0.000000e+00> : vector<8xf32>
    %571 = vector.multi_reduction <add>, %570, %cst_241 [1] : vector<8x8xf32> to vector<8xf32>
    %572 = vector.shape_cast %571 : vector<8xf32> to vector<8x1xf32>
    %573 = tpu.reciprocal %572 {approx = true} : vector<8x1xf32> -> vector<8x1xf32>
    %574 = vector.broadcast %573 : vector<8x1xf32> to vector<8x8xf32>
    %575 = arith.mulf %570, %574 : vector<8x8xf32>
    %576 = vector.extract_strided_slice %503 {offsets = [0, 24], sizes = [8, 8], strides = [1, 1]} : vector<8x32xf32> to vector<8x8xf32>
    %cst_242 = arith.constant dense<0.000000e+00> : vector<8x8xf32>
    %577 = tpu.matmul %575, %576, %cst_242 {dimension_numbers = #tpu.dot_dimension_numbers<[1], [0], [0], [1], [0, 0, 1, 1], [], []>} : vector<8x8xf32>, vector<8x8xf32>, vector<8x8xf32> -> vector<8x8xf32>
    %578 = vector.extract_strided_slice %505 {offsets = [24, 0], sizes = [8, 32], strides = [1, 1]} : vector<32x32xf32> to vector<8x32xf32>
    %cst_243 = arith.constant dense<0.000000e+00> : vector<8x32xf32>
    %579 = tpu.matmul %577, %578, %cst_243 {dimension_numbers = #tpu.dot_dimension_numbers<[1], [0], [0], [1], [0, 0, 1, 1], [], []>} : vector<8x8xf32>, vector<8x32xf32>, vector<8x32xf32> -> vector<8x32xf32>
    %580 = arith.addf %562, %579 : vector<8x32xf32>
    %581 = arith.addf %487, %580 : vector<8x32xf32>
    %c0_244 = arith.constant 0 : index
    %c0_245 = arith.constant 0 : index
    %c0_246 = arith.constant 0 : index
    %582 = vector.load %arg29[%c0_244, %c0_245, %c0_246] : memref<2x1x32xf32, #tpu.memory_space<vmem>>, vector<1x1x32xf32>
    %583 = vector.shape_cast %582 : vector<1x1x32xf32> to vector<1x32xf32>
    %c0_247 = arith.constant 0 : index
    %c0_248 = arith.constant 0 : index
    %c0_249 = arith.constant 0 : index
    %584 = vector.load %arg30[%c0_247, %c0_248, %c0_249] : memref<2x1x32xf32, #tpu.memory_space<vmem>>, vector<1x1x32xf32>
    %585 = vector.shape_cast %584 : vector<1x1x32xf32> to vector<1x32xf32>
    %cst_250 = arith.constant dense<0.000000e+00> : vector<8xf32>
    %586 = vector.multi_reduction <add>, %581, %cst_250 [1] : vector<8x32xf32> to vector<8xf32>
    %587 = vector.shape_cast %586 : vector<8xf32> to vector<8x1xf32>
    %cst_251 = arith.constant 3.200000e+01 : f32
    %588 = vector.broadcast %cst_251 : f32 to vector<8x1xf32>
    %589 = arith.divf %587, %588 : vector<8x1xf32>
    %590 = vector.broadcast %589 : vector<8x1xf32> to vector<8x32xf32>
    %591 = arith.subf %581, %590 : vector<8x32xf32>
    %592 = arith.mulf %591, %591 : vector<8x32xf32>
    %cst_252 = arith.constant dense<0.000000e+00> : vector<8xf32>
    %593 = vector.multi_reduction <add>, %592, %cst_252 [1] : vector<8x32xf32> to vector<8xf32>
    %594 = vector.shape_cast %593 : vector<8xf32> to vector<8x1xf32>
    %cst_253 = arith.constant 3.200000e+01 : f32
    %595 = vector.broadcast %cst_253 : f32 to vector<8x1xf32>
    %596 = arith.divf %594, %595 : vector<8x1xf32>
    %597 = vector.broadcast %589 : vector<8x1xf32> to vector<8x32xf32>
    %598 = arith.subf %581, %597 : vector<8x32xf32>
    %cst_254 = arith.constant 9.99999974E-6 : f32
    %599 = vector.broadcast %cst_254 : f32 to vector<8x1xf32>
    %600 = arith.addf %596, %599 : vector<8x1xf32>
    %601 = math.rsqrt %600 : vector<8x1xf32>
    %602 = vector.broadcast %601 : vector<8x1xf32> to vector<8x32xf32>
    %603 = arith.mulf %598, %602 : vector<8x32xf32>
    %604 = vector.broadcast %583 : vector<1x32xf32> to vector<8x32xf32>
    %605 = arith.mulf %603, %604 : vector<8x32xf32>
    %606 = vector.broadcast %585 : vector<1x32xf32> to vector<8x32xf32>
    %607 = arith.addf %605, %606 : vector<8x32xf32>
    %c0_255 = arith.constant 0 : index
    %c0_256 = arith.constant 0 : index
    %c0_257 = arith.constant 0 : index
    %608 = vector.load %arg33[%c0_255, %c0_256, %c0_257] : memref<2x32x64xf32, #tpu.memory_space<vmem>>, vector<1x32x64xf32>
    %609 = vector.shape_cast %608 : vector<1x32x64xf32> to vector<32x64xf32>
    %cst_258 = arith.constant dense<0.000000e+00> : vector<8x64xf32>
    %610 = tpu.matmul %607, %609, %cst_258 {dimension_numbers = #tpu.dot_dimension_numbers<[1], [0], [0], [1], [0, 0, 1, 1], [], []>} : vector<8x32xf32>, vector<32x64xf32>, vector<8x64xf32> -> vector<8x64xf32>
    %c0_259 = arith.constant 0 : index
    %c0_260 = arith.constant 0 : index
    %c0_261 = arith.constant 0 : index
    %611 = vector.load %arg34[%c0_259, %c0_260, %c0_261] : memref<2x1x64xf32, #tpu.memory_space<vmem>>, vector<1x1x64xf32>
    %612 = vector.shape_cast %611 : vector<1x1x64xf32> to vector<1x64xf32>
    %613 = vector.broadcast %612 : vector<1x64xf32> to vector<8x64xf32>
    %614 = arith.addf %610, %613 : vector<8x64xf32>
    %cst_262 = arith.constant 0.000000e+00 : f32
    %615 = vector.broadcast %cst_262 : f32 to vector<8x64xf32>
    %616 = arith.maximumf %614, %615 : vector<8x64xf32>
    %c0_263 = arith.constant 0 : index
    %c0_264 = arith.constant 0 : index
    %c0_265 = arith.constant 0 : index
    %617 = vector.load %arg35[%c0_263, %c0_264, %c0_265] : memref<2x64x32xf32, #tpu.memory_space<vmem>>, vector<1x64x32xf32>
    %618 = vector.shape_cast %617 : vector<1x64x32xf32> to vector<64x32xf32>
    %cst_266 = arith.constant dense<0.000000e+00> : vector<8x32xf32>
    %619 = tpu.matmul %616, %618, %cst_266 {dimension_numbers = #tpu.dot_dimension_numbers<[1], [0], [0], [1], [0, 0, 1, 1], [], []>} : vector<8x64xf32>, vector<64x32xf32>, vector<8x32xf32> -> vector<8x32xf32>
    %c0_267 = arith.constant 0 : index
    %c0_268 = arith.constant 0 : index
    %c0_269 = arith.constant 0 : index
    %620 = vector.load %arg36[%c0_267, %c0_268, %c0_269] : memref<2x1x32xf32, #tpu.memory_space<vmem>>, vector<1x1x32xf32>
    %621 = vector.shape_cast %620 : vector<1x1x32xf32> to vector<1x32xf32>
    %622 = vector.broadcast %621 : vector<1x32xf32> to vector<8x32xf32>
    %623 = arith.addf %619, %622 : vector<8x32xf32>
    %624 = arith.addf %607, %623 : vector<8x32xf32>
    %c0_270 = arith.constant 0 : index
    %c0_271 = arith.constant 0 : index
    %c0_272 = arith.constant 0 : index
    %625 = vector.load %arg31[%c0_270, %c0_271, %c0_272] : memref<2x1x32xf32, #tpu.memory_space<vmem>>, vector<1x1x32xf32>
    %626 = vector.shape_cast %625 : vector<1x1x32xf32> to vector<1x32xf32>
    %c0_273 = arith.constant 0 : index
    %c0_274 = arith.constant 0 : index
    %c0_275 = arith.constant 0 : index
    %627 = vector.load %arg32[%c0_273, %c0_274, %c0_275] : memref<2x1x32xf32, #tpu.memory_space<vmem>>, vector<1x1x32xf32>
    %628 = vector.shape_cast %627 : vector<1x1x32xf32> to vector<1x32xf32>
    %cst_276 = arith.constant dense<0.000000e+00> : vector<8xf32>
    %629 = vector.multi_reduction <add>, %624, %cst_276 [1] : vector<8x32xf32> to vector<8xf32>
    %630 = vector.shape_cast %629 : vector<8xf32> to vector<8x1xf32>
    %cst_277 = arith.constant 3.200000e+01 : f32
    %631 = vector.broadcast %cst_277 : f32 to vector<8x1xf32>
    %632 = arith.divf %630, %631 : vector<8x1xf32>
    %633 = vector.broadcast %632 : vector<8x1xf32> to vector<8x32xf32>
    %634 = arith.subf %624, %633 : vector<8x32xf32>
    %635 = arith.mulf %634, %634 : vector<8x32xf32>
    %cst_278 = arith.constant dense<0.000000e+00> : vector<8xf32>
    %636 = vector.multi_reduction <add>, %635, %cst_278 [1] : vector<8x32xf32> to vector<8xf32>
    %637 = vector.shape_cast %636 : vector<8xf32> to vector<8x1xf32>
    %cst_279 = arith.constant 3.200000e+01 : f32
    %638 = vector.broadcast %cst_279 : f32 to vector<8x1xf32>
    %639 = arith.divf %637, %638 : vector<8x1xf32>
    %640 = vector.broadcast %632 : vector<8x1xf32> to vector<8x32xf32>
    %641 = arith.subf %624, %640 : vector<8x32xf32>
    %cst_280 = arith.constant 9.99999974E-6 : f32
    %642 = vector.broadcast %cst_280 : f32 to vector<8x1xf32>
    %643 = arith.addf %639, %642 : vector<8x1xf32>
    %644 = math.rsqrt %643 : vector<8x1xf32>
    %645 = vector.broadcast %644 : vector<8x1xf32> to vector<8x32xf32>
    %646 = arith.mulf %641, %645 : vector<8x32xf32>
    %647 = vector.broadcast %626 : vector<1x32xf32> to vector<8x32xf32>
    %648 = arith.mulf %646, %647 : vector<8x32xf32>
    %649 = vector.broadcast %628 : vector<1x32xf32> to vector<8x32xf32>
    %650 = arith.addf %648, %649 : vector<8x32xf32>
    %c1_281 = arith.constant 1 : index
    %c0_282 = arith.constant 0 : index
    %c0_283 = arith.constant 0 : index
    %651 = vector.load %arg17[%c1_281, %c0_282, %c0_283] : memref<2x32x96xf32, #tpu.memory_space<vmem>>, vector<1x32x96xf32>
    %652 = vector.shape_cast %651 : vector<1x32x96xf32> to vector<32x96xf32>
    %cst_284 = arith.constant dense<0.000000e+00> : vector<8x96xf32>
    %653 = tpu.matmul %650, %652, %cst_284 {dimension_numbers = #tpu.dot_dimension_numbers<[1], [0], [0], [1], [0, 0, 1, 1], [], []>} : vector<8x32xf32>, vector<32x96xf32>, vector<8x96xf32> -> vector<8x96xf32>
    %c1_285 = arith.constant 1 : index
    %c0_286 = arith.constant 0 : index
    %c0_287 = arith.constant 0 : index
    %654 = vector.load %arg18[%c1_285, %c0_286, %c0_287] : memref<2x1x96xf32, #tpu.memory_space<vmem>>, vector<1x1x96xf32>
    %655 = vector.shape_cast %654 : vector<1x1x96xf32> to vector<1x96xf32>
    %656 = vector.broadcast %655 : vector<1x96xf32> to vector<8x96xf32>
    %657 = arith.addf %653, %656 : vector<8x96xf32>
    %658 = vector.extract_strided_slice %657 {offsets = [0, 0], sizes = [8, 32], strides = [1, 1]} : vector<8x96xf32> to vector<8x32xf32>
    %659 = vector.extract_strided_slice %657 {offsets = [0, 32], sizes = [8, 32], strides = [1, 1]} : vector<8x96xf32> to vector<8x32xf32>
    %660 = vector.extract_strided_slice %657 {offsets = [0, 64], sizes = [8, 32], strides = [1, 1]} : vector<8x96xf32> to vector<8x32xf32>
    %c1_288 = arith.constant 1 : index
    %c0_289 = arith.constant 0 : index
    %c0_290 = arith.constant 0 : index
    %661 = vector.load %arg19[%c1_288, %c0_289, %c0_290] : memref<2x32x32xf32, #tpu.memory_space<vmem>>, vector<1x32x32xf32>
    %662 = vector.shape_cast %661 : vector<1x32x32xf32> to vector<32x32xf32>
    %c1_291 = arith.constant 1 : index
    %c0_292 = arith.constant 0 : index
    %c0_293 = arith.constant 0 : index
    %663 = vector.load %arg20[%c1_291, %c0_292, %c0_293] : memref<2x1x32xf32, #tpu.memory_space<vmem>>, vector<1x1x32xf32>
    %664 = vector.shape_cast %663 : vector<1x1x32xf32> to vector<1x32xf32>
    %665 = vector.extract_strided_slice %658 {offsets = [0, 0], sizes = [8, 8], strides = [1, 1]} : vector<8x32xf32> to vector<8x8xf32>
    %666 = vector.extract_strided_slice %659 {offsets = [0, 0], sizes = [8, 8], strides = [1, 1]} : vector<8x32xf32> to vector<8x8xf32>
    %cst_294 = arith.constant dense<0.000000e+00> : vector<8x8xf32>
    %667 = tpu.matmul %665, %666, %cst_294 {dimension_numbers = #tpu.dot_dimension_numbers<[1], [1], [0], [0], [0, 0, 1, 0], [], []>} : vector<8x8xf32>, vector<8x8xf32>, vector<8x8xf32> -> vector<8x8xf32>
    %668 = arith.addf %667, %15 : vector<8x8xf32>
    %cst_295 = arith.constant dense<0xFF800000> : vector<8xf32>
    %669 = vector.multi_reduction <maximumf>, %668, %cst_295 [1] : vector<8x8xf32> to vector<8xf32>
    %670 = vector.shape_cast %669 : vector<8xf32> to vector<8x1xf32>
    %671 = vector.broadcast %670 : vector<8x1xf32> to vector<8x8xf32>
    %672 = arith.subf %668, %671 : vector<8x8xf32>
    %673 = math.exp %672 : vector<8x8xf32>
    %cst_296 = arith.constant dense<0.000000e+00> : vector<8xf32>
    %674 = vector.multi_reduction <add>, %673, %cst_296 [1] : vector<8x8xf32> to vector<8xf32>
    %675 = vector.shape_cast %674 : vector<8xf32> to vector<8x1xf32>
    %676 = tpu.reciprocal %675 {approx = true} : vector<8x1xf32> -> vector<8x1xf32>
    %677 = vector.broadcast %676 : vector<8x1xf32> to vector<8x8xf32>
    %678 = arith.mulf %673, %677 : vector<8x8xf32>
    %679 = vector.extract_strided_slice %660 {offsets = [0, 0], sizes = [8, 8], strides = [1, 1]} : vector<8x32xf32> to vector<8x8xf32>
    %cst_297 = arith.constant dense<0.000000e+00> : vector<8x8xf32>
    %680 = tpu.matmul %678, %679, %cst_297 {dimension_numbers = #tpu.dot_dimension_numbers<[1], [0], [0], [1], [0, 0, 1, 1], [], []>} : vector<8x8xf32>, vector<8x8xf32>, vector<8x8xf32> -> vector<8x8xf32>
    %681 = vector.extract_strided_slice %662 {offsets = [0, 0], sizes = [8, 32], strides = [1, 1]} : vector<32x32xf32> to vector<8x32xf32>
    %cst_298 = arith.constant dense<0.000000e+00> : vector<8x32xf32>
    %682 = tpu.matmul %680, %681, %cst_298 {dimension_numbers = #tpu.dot_dimension_numbers<[1], [0], [0], [1], [0, 0, 1, 1], [], []>} : vector<8x8xf32>, vector<8x32xf32>, vector<8x32xf32> -> vector<8x32xf32>
    %683 = vector.broadcast %664 : vector<1x32xf32> to vector<8x32xf32>
    %684 = arith.addf %683, %682 : vector<8x32xf32>
    %685 = vector.extract_strided_slice %658 {offsets = [0, 8], sizes = [8, 8], strides = [1, 1]} : vector<8x32xf32> to vector<8x8xf32>
    %686 = vector.extract_strided_slice %659 {offsets = [0, 8], sizes = [8, 8], strides = [1, 1]} : vector<8x32xf32> to vector<8x8xf32>
    %cst_299 = arith.constant dense<0.000000e+00> : vector<8x8xf32>
    %687 = tpu.matmul %685, %686, %cst_299 {dimension_numbers = #tpu.dot_dimension_numbers<[1], [1], [0], [0], [0, 0, 1, 0], [], []>} : vector<8x8xf32>, vector<8x8xf32>, vector<8x8xf32> -> vector<8x8xf32>
    %688 = arith.addf %687, %15 : vector<8x8xf32>
    %cst_300 = arith.constant dense<0xFF800000> : vector<8xf32>
    %689 = vector.multi_reduction <maximumf>, %688, %cst_300 [1] : vector<8x8xf32> to vector<8xf32>
    %690 = vector.shape_cast %689 : vector<8xf32> to vector<8x1xf32>
    %691 = vector.broadcast %690 : vector<8x1xf32> to vector<8x8xf32>
    %692 = arith.subf %688, %691 : vector<8x8xf32>
    %693 = math.exp %692 : vector<8x8xf32>
    %cst_301 = arith.constant dense<0.000000e+00> : vector<8xf32>
    %694 = vector.multi_reduction <add>, %693, %cst_301 [1] : vector<8x8xf32> to vector<8xf32>
    %695 = vector.shape_cast %694 : vector<8xf32> to vector<8x1xf32>
    %696 = tpu.reciprocal %695 {approx = true} : vector<8x1xf32> -> vector<8x1xf32>
    %697 = vector.broadcast %696 : vector<8x1xf32> to vector<8x8xf32>
    %698 = arith.mulf %693, %697 : vector<8x8xf32>
    %699 = vector.extract_strided_slice %660 {offsets = [0, 8], sizes = [8, 8], strides = [1, 1]} : vector<8x32xf32> to vector<8x8xf32>
    %cst_302 = arith.constant dense<0.000000e+00> : vector<8x8xf32>
    %700 = tpu.matmul %698, %699, %cst_302 {dimension_numbers = #tpu.dot_dimension_numbers<[1], [0], [0], [1], [0, 0, 1, 1], [], []>} : vector<8x8xf32>, vector<8x8xf32>, vector<8x8xf32> -> vector<8x8xf32>
    %701 = vector.extract_strided_slice %662 {offsets = [8, 0], sizes = [8, 32], strides = [1, 1]} : vector<32x32xf32> to vector<8x32xf32>
    %cst_303 = arith.constant dense<0.000000e+00> : vector<8x32xf32>
    %702 = tpu.matmul %700, %701, %cst_303 {dimension_numbers = #tpu.dot_dimension_numbers<[1], [0], [0], [1], [0, 0, 1, 1], [], []>} : vector<8x8xf32>, vector<8x32xf32>, vector<8x32xf32> -> vector<8x32xf32>
    %703 = arith.addf %684, %702 : vector<8x32xf32>
    %704 = vector.extract_strided_slice %658 {offsets = [0, 16], sizes = [8, 8], strides = [1, 1]} : vector<8x32xf32> to vector<8x8xf32>
    %705 = vector.extract_strided_slice %659 {offsets = [0, 16], sizes = [8, 8], strides = [1, 1]} : vector<8x32xf32> to vector<8x8xf32>
    %cst_304 = arith.constant dense<0.000000e+00> : vector<8x8xf32>
    %706 = tpu.matmul %704, %705, %cst_304 {dimension_numbers = #tpu.dot_dimension_numbers<[1], [1], [0], [0], [0, 0, 1, 0], [], []>} : vector<8x8xf32>, vector<8x8xf32>, vector<8x8xf32> -> vector<8x8xf32>
    %707 = arith.addf %706, %15 : vector<8x8xf32>
    %cst_305 = arith.constant dense<0xFF800000> : vector<8xf32>
    %708 = vector.multi_reduction <maximumf>, %707, %cst_305 [1] : vector<8x8xf32> to vector<8xf32>
    %709 = vector.shape_cast %708 : vector<8xf32> to vector<8x1xf32>
    %710 = vector.broadcast %709 : vector<8x1xf32> to vector<8x8xf32>
    %711 = arith.subf %707, %710 : vector<8x8xf32>
    %712 = math.exp %711 : vector<8x8xf32>
    %cst_306 = arith.constant dense<0.000000e+00> : vector<8xf32>
    %713 = vector.multi_reduction <add>, %712, %cst_306 [1] : vector<8x8xf32> to vector<8xf32>
    %714 = vector.shape_cast %713 : vector<8xf32> to vector<8x1xf32>
    %715 = tpu.reciprocal %714 {approx = true} : vector<8x1xf32> -> vector<8x1xf32>
    %716 = vector.broadcast %715 : vector<8x1xf32> to vector<8x8xf32>
    %717 = arith.mulf %712, %716 : vector<8x8xf32>
    %718 = vector.extract_strided_slice %660 {offsets = [0, 16], sizes = [8, 8], strides = [1, 1]} : vector<8x32xf32> to vector<8x8xf32>
    %cst_307 = arith.constant dense<0.000000e+00> : vector<8x8xf32>
    %719 = tpu.matmul %717, %718, %cst_307 {dimension_numbers = #tpu.dot_dimension_numbers<[1], [0], [0], [1], [0, 0, 1, 1], [], []>} : vector<8x8xf32>, vector<8x8xf32>, vector<8x8xf32> -> vector<8x8xf32>
    %720 = vector.extract_strided_slice %662 {offsets = [16, 0], sizes = [8, 32], strides = [1, 1]} : vector<32x32xf32> to vector<8x32xf32>
    %cst_308 = arith.constant dense<0.000000e+00> : vector<8x32xf32>
    %721 = tpu.matmul %719, %720, %cst_308 {dimension_numbers = #tpu.dot_dimension_numbers<[1], [0], [0], [1], [0, 0, 1, 1], [], []>} : vector<8x8xf32>, vector<8x32xf32>, vector<8x32xf32> -> vector<8x32xf32>
    %722 = arith.addf %703, %721 : vector<8x32xf32>
    %723 = vector.extract_strided_slice %658 {offsets = [0, 24], sizes = [8, 8], strides = [1, 1]} : vector<8x32xf32> to vector<8x8xf32>
    %724 = vector.extract_strided_slice %659 {offsets = [0, 24], sizes = [8, 8], strides = [1, 1]} : vector<8x32xf32> to vector<8x8xf32>
    %cst_309 = arith.constant dense<0.000000e+00> : vector<8x8xf32>
    %725 = tpu.matmul %723, %724, %cst_309 {dimension_numbers = #tpu.dot_dimension_numbers<[1], [1], [0], [0], [0, 0, 1, 0], [], []>} : vector<8x8xf32>, vector<8x8xf32>, vector<8x8xf32> -> vector<8x8xf32>
    %726 = arith.addf %725, %15 : vector<8x8xf32>
    %cst_310 = arith.constant dense<0xFF800000> : vector<8xf32>
    %727 = vector.multi_reduction <maximumf>, %726, %cst_310 [1] : vector<8x8xf32> to vector<8xf32>
    %728 = vector.shape_cast %727 : vector<8xf32> to vector<8x1xf32>
    %729 = vector.broadcast %728 : vector<8x1xf32> to vector<8x8xf32>
    %730 = arith.subf %726, %729 : vector<8x8xf32>
    %731 = math.exp %730 : vector<8x8xf32>
    %cst_311 = arith.constant dense<0.000000e+00> : vector<8xf32>
    %732 = vector.multi_reduction <add>, %731, %cst_311 [1] : vector<8x8xf32> to vector<8xf32>
    %733 = vector.shape_cast %732 : vector<8xf32> to vector<8x1xf32>
    %734 = tpu.reciprocal %733 {approx = true} : vector<8x1xf32> -> vector<8x1xf32>
    %735 = vector.broadcast %734 : vector<8x1xf32> to vector<8x8xf32>
    %736 = arith.mulf %731, %735 : vector<8x8xf32>
    %737 = vector.extract_strided_slice %660 {offsets = [0, 24], sizes = [8, 8], strides = [1, 1]} : vector<8x32xf32> to vector<8x8xf32>
    %cst_312 = arith.constant dense<0.000000e+00> : vector<8x8xf32>
    %738 = tpu.matmul %736, %737, %cst_312 {dimension_numbers = #tpu.dot_dimension_numbers<[1], [0], [0], [1], [0, 0, 1, 1], [], []>} : vector<8x8xf32>, vector<8x8xf32>, vector<8x8xf32> -> vector<8x8xf32>
    %739 = vector.extract_strided_slice %662 {offsets = [24, 0], sizes = [8, 32], strides = [1, 1]} : vector<32x32xf32> to vector<8x32xf32>
    %cst_313 = arith.constant dense<0.000000e+00> : vector<8x32xf32>
    %740 = tpu.matmul %738, %739, %cst_313 {dimension_numbers = #tpu.dot_dimension_numbers<[1], [0], [0], [1], [0, 0, 1, 1], [], []>} : vector<8x8xf32>, vector<8x32xf32>, vector<8x32xf32> -> vector<8x32xf32>
    %741 = arith.addf %722, %740 : vector<8x32xf32>
    %742 = arith.addf %650, %741 : vector<8x32xf32>
    %c1_314 = arith.constant 1 : index
    %c0_315 = arith.constant 0 : index
    %c0_316 = arith.constant 0 : index
    %743 = vector.load %arg27[%c1_314, %c0_315, %c0_316] : memref<2x1x32xf32, #tpu.memory_space<vmem>>, vector<1x1x32xf32>
    %744 = vector.shape_cast %743 : vector<1x1x32xf32> to vector<1x32xf32>
    %c1_317 = arith.constant 1 : index
    %c0_318 = arith.constant 0 : index
    %c0_319 = arith.constant 0 : index
    %745 = vector.load %arg28[%c1_317, %c0_318, %c0_319] : memref<2x1x32xf32, #tpu.memory_space<vmem>>, vector<1x1x32xf32>
    %746 = vector.shape_cast %745 : vector<1x1x32xf32> to vector<1x32xf32>
    %cst_320 = arith.constant dense<0.000000e+00> : vector<8xf32>
    %747 = vector.multi_reduction <add>, %742, %cst_320 [1] : vector<8x32xf32> to vector<8xf32>
    %748 = vector.shape_cast %747 : vector<8xf32> to vector<8x1xf32>
    %cst_321 = arith.constant 3.200000e+01 : f32
    %749 = vector.broadcast %cst_321 : f32 to vector<8x1xf32>
    %750 = arith.divf %748, %749 : vector<8x1xf32>
    %751 = vector.broadcast %750 : vector<8x1xf32> to vector<8x32xf32>
    %752 = arith.subf %742, %751 : vector<8x32xf32>
    %753 = arith.mulf %752, %752 : vector<8x32xf32>
    %cst_322 = arith.constant dense<0.000000e+00> : vector<8xf32>
    %754 = vector.multi_reduction <add>, %753, %cst_322 [1] : vector<8x32xf32> to vector<8xf32>
    %755 = vector.shape_cast %754 : vector<8xf32> to vector<8x1xf32>
    %cst_323 = arith.constant 3.200000e+01 : f32
    %756 = vector.broadcast %cst_323 : f32 to vector<8x1xf32>
    %757 = arith.divf %755, %756 : vector<8x1xf32>
    %758 = vector.broadcast %750 : vector<8x1xf32> to vector<8x32xf32>
    %759 = arith.subf %742, %758 : vector<8x32xf32>
    %cst_324 = arith.constant 9.99999974E-6 : f32
    %760 = vector.broadcast %cst_324 : f32 to vector<8x1xf32>
    %761 = arith.addf %757, %760 : vector<8x1xf32>
    %762 = math.rsqrt %761 : vector<8x1xf32>
    %763 = vector.broadcast %762 : vector<8x1xf32> to vector<8x32xf32>
    %764 = arith.mulf %759, %763 : vector<8x32xf32>
    %765 = vector.broadcast %744 : vector<1x32xf32> to vector<8x32xf32>
    %766 = arith.mulf %764, %765 : vector<8x32xf32>
    %767 = vector.broadcast %746 : vector<1x32xf32> to vector<8x32xf32>
    %768 = arith.addf %766, %767 : vector<8x32xf32>
    %c1_325 = arith.constant 1 : index
    %c0_326 = arith.constant 0 : index
    %c0_327 = arith.constant 0 : index
    %769 = vector.load %arg21[%c1_325, %c0_326, %c0_327] : memref<2x32x32xf32, #tpu.memory_space<vmem>>, vector<1x32x32xf32>
    %770 = vector.shape_cast %769 : vector<1x32x32xf32> to vector<32x32xf32>
    %cst_328 = arith.constant dense<0.000000e+00> : vector<8x32xf32>
    %771 = tpu.matmul %768, %770, %cst_328 {dimension_numbers = #tpu.dot_dimension_numbers<[1], [0], [0], [1], [0, 0, 1, 1], [], []>} : vector<8x32xf32>, vector<32x32xf32>, vector<8x32xf32> -> vector<8x32xf32>
    %c1_329 = arith.constant 1 : index
    %c0_330 = arith.constant 0 : index
    %c0_331 = arith.constant 0 : index
    %772 = vector.load %arg22[%c1_329, %c0_330, %c0_331] : memref<2x1x32xf32, #tpu.memory_space<vmem>>, vector<1x1x32xf32>
    %773 = vector.shape_cast %772 : vector<1x1x32xf32> to vector<1x32xf32>
    %774 = vector.broadcast %773 : vector<1x32xf32> to vector<8x32xf32>
    %775 = arith.addf %771, %774 : vector<8x32xf32>
    %c1_332 = arith.constant 1 : index
    %c0_333 = arith.constant 0 : index
    %c0_334 = arith.constant 0 : index
    %776 = vector.load %arg23[%c1_332, %c0_333, %c0_334] : memref<2x32x64xf32, #tpu.memory_space<vmem>>, vector<1x32x64xf32>
    %777 = vector.shape_cast %776 : vector<1x32x64xf32> to vector<32x64xf32>
    %cst_335 = arith.constant dense<0.000000e+00> : vector<8x64xf32>
    %778 = tpu.matmul %369, %777, %cst_335 {dimension_numbers = #tpu.dot_dimension_numbers<[1], [0], [0], [1], [0, 0, 1, 1], [], []>} : vector<8x32xf32>, vector<32x64xf32>, vector<8x64xf32> -> vector<8x64xf32>
    %c1_336 = arith.constant 1 : index
    %c0_337 = arith.constant 0 : index
    %c0_338 = arith.constant 0 : index
    %779 = vector.load %arg24[%c1_336, %c0_337, %c0_338] : memref<2x1x64xf32, #tpu.memory_space<vmem>>, vector<1x1x64xf32>
    %780 = vector.shape_cast %779 : vector<1x1x64xf32> to vector<1x64xf32>
    %781 = vector.broadcast %780 : vector<1x64xf32> to vector<8x64xf32>
    %782 = arith.addf %778, %781 : vector<8x64xf32>
    %783 = vector.extract_strided_slice %782 {offsets = [0, 0], sizes = [8, 32], strides = [1, 1]} : vector<8x64xf32> to vector<8x32xf32>
    %784 = vector.extract_strided_slice %782 {offsets = [0, 32], sizes = [8, 32], strides = [1, 1]} : vector<8x64xf32> to vector<8x32xf32>
    %c1_339 = arith.constant 1 : index
    %c0_340 = arith.constant 0 : index
    %c0_341 = arith.constant 0 : index
    %785 = vector.load %arg25[%c1_339, %c0_340, %c0_341] : memref<2x32x32xf32, #tpu.memory_space<vmem>>, vector<1x32x32xf32>
    %786 = vector.shape_cast %785 : vector<1x32x32xf32> to vector<32x32xf32>
    %c1_342 = arith.constant 1 : index
    %c0_343 = arith.constant 0 : index
    %c0_344 = arith.constant 0 : index
    %787 = vector.load %arg26[%c1_342, %c0_343, %c0_344] : memref<2x1x32xf32, #tpu.memory_space<vmem>>, vector<1x1x32xf32>
    %788 = vector.shape_cast %787 : vector<1x1x32xf32> to vector<1x32xf32>
    %789 = vector.extract_strided_slice %775 {offsets = [0, 0], sizes = [8, 8], strides = [1, 1]} : vector<8x32xf32> to vector<8x8xf32>
    %790 = vector.extract_strided_slice %783 {offsets = [0, 0], sizes = [8, 8], strides = [1, 1]} : vector<8x32xf32> to vector<8x8xf32>
    %cst_345 = arith.constant dense<0.000000e+00> : vector<8x8xf32>
    %791 = tpu.matmul %789, %790, %cst_345 {dimension_numbers = #tpu.dot_dimension_numbers<[1], [1], [0], [0], [0, 0, 1, 0], [], []>} : vector<8x8xf32>, vector<8x8xf32>, vector<8x8xf32> -> vector<8x8xf32>
    %cst_346 = arith.constant dense<0xFF800000> : vector<8xf32>
    %792 = vector.multi_reduction <maximumf>, %791, %cst_346 [1] : vector<8x8xf32> to vector<8xf32>
    %793 = vector.shape_cast %792 : vector<8xf32> to vector<8x1xf32>
    %794 = vector.broadcast %793 : vector<8x1xf32> to vector<8x8xf32>
    %795 = arith.subf %791, %794 : vector<8x8xf32>
    %796 = math.exp %795 : vector<8x8xf32>
    %cst_347 = arith.constant dense<0.000000e+00> : vector<8xf32>
    %797 = vector.multi_reduction <add>, %796, %cst_347 [1] : vector<8x8xf32> to vector<8xf32>
    %798 = vector.shape_cast %797 : vector<8xf32> to vector<8x1xf32>
    %799 = tpu.reciprocal %798 {approx = true} : vector<8x1xf32> -> vector<8x1xf32>
    %800 = vector.broadcast %799 : vector<8x1xf32> to vector<8x8xf32>
    %801 = arith.mulf %796, %800 : vector<8x8xf32>
    %802 = vector.extract_strided_slice %784 {offsets = [0, 0], sizes = [8, 8], strides = [1, 1]} : vector<8x32xf32> to vector<8x8xf32>
    %cst_348 = arith.constant dense<0.000000e+00> : vector<8x8xf32>
    %803 = tpu.matmul %801, %802, %cst_348 {dimension_numbers = #tpu.dot_dimension_numbers<[1], [0], [0], [1], [0, 0, 1, 1], [], []>} : vector<8x8xf32>, vector<8x8xf32>, vector<8x8xf32> -> vector<8x8xf32>
    %804 = vector.extract_strided_slice %786 {offsets = [0, 0], sizes = [8, 32], strides = [1, 1]} : vector<32x32xf32> to vector<8x32xf32>
    %cst_349 = arith.constant dense<0.000000e+00> : vector<8x32xf32>
    %805 = tpu.matmul %803, %804, %cst_349 {dimension_numbers = #tpu.dot_dimension_numbers<[1], [0], [0], [1], [0, 0, 1, 1], [], []>} : vector<8x8xf32>, vector<8x32xf32>, vector<8x32xf32> -> vector<8x32xf32>
    %806 = vector.broadcast %788 : vector<1x32xf32> to vector<8x32xf32>
    %807 = arith.addf %806, %805 : vector<8x32xf32>
    %808 = vector.extract_strided_slice %775 {offsets = [0, 8], sizes = [8, 8], strides = [1, 1]} : vector<8x32xf32> to vector<8x8xf32>
    %809 = vector.extract_strided_slice %783 {offsets = [0, 8], sizes = [8, 8], strides = [1, 1]} : vector<8x32xf32> to vector<8x8xf32>
    %cst_350 = arith.constant dense<0.000000e+00> : vector<8x8xf32>
    %810 = tpu.matmul %808, %809, %cst_350 {dimension_numbers = #tpu.dot_dimension_numbers<[1], [1], [0], [0], [0, 0, 1, 0], [], []>} : vector<8x8xf32>, vector<8x8xf32>, vector<8x8xf32> -> vector<8x8xf32>
    %cst_351 = arith.constant dense<0xFF800000> : vector<8xf32>
    %811 = vector.multi_reduction <maximumf>, %810, %cst_351 [1] : vector<8x8xf32> to vector<8xf32>
    %812 = vector.shape_cast %811 : vector<8xf32> to vector<8x1xf32>
    %813 = vector.broadcast %812 : vector<8x1xf32> to vector<8x8xf32>
    %814 = arith.subf %810, %813 : vector<8x8xf32>
    %815 = math.exp %814 : vector<8x8xf32>
    %cst_352 = arith.constant dense<0.000000e+00> : vector<8xf32>
    %816 = vector.multi_reduction <add>, %815, %cst_352 [1] : vector<8x8xf32> to vector<8xf32>
    %817 = vector.shape_cast %816 : vector<8xf32> to vector<8x1xf32>
    %818 = tpu.reciprocal %817 {approx = true} : vector<8x1xf32> -> vector<8x1xf32>
    %819 = vector.broadcast %818 : vector<8x1xf32> to vector<8x8xf32>
    %820 = arith.mulf %815, %819 : vector<8x8xf32>
    %821 = vector.extract_strided_slice %784 {offsets = [0, 8], sizes = [8, 8], strides = [1, 1]} : vector<8x32xf32> to vector<8x8xf32>
    %cst_353 = arith.constant dense<0.000000e+00> : vector<8x8xf32>
    %822 = tpu.matmul %820, %821, %cst_353 {dimension_numbers = #tpu.dot_dimension_numbers<[1], [0], [0], [1], [0, 0, 1, 1], [], []>} : vector<8x8xf32>, vector<8x8xf32>, vector<8x8xf32> -> vector<8x8xf32>
    %823 = vector.extract_strided_slice %786 {offsets = [8, 0], sizes = [8, 32], strides = [1, 1]} : vector<32x32xf32> to vector<8x32xf32>
    %cst_354 = arith.constant dense<0.000000e+00> : vector<8x32xf32>
    %824 = tpu.matmul %822, %823, %cst_354 {dimension_numbers = #tpu.dot_dimension_numbers<[1], [0], [0], [1], [0, 0, 1, 1], [], []>} : vector<8x8xf32>, vector<8x32xf32>, vector<8x32xf32> -> vector<8x32xf32>
    %825 = arith.addf %807, %824 : vector<8x32xf32>
    %826 = vector.extract_strided_slice %775 {offsets = [0, 16], sizes = [8, 8], strides = [1, 1]} : vector<8x32xf32> to vector<8x8xf32>
    %827 = vector.extract_strided_slice %783 {offsets = [0, 16], sizes = [8, 8], strides = [1, 1]} : vector<8x32xf32> to vector<8x8xf32>
    %cst_355 = arith.constant dense<0.000000e+00> : vector<8x8xf32>
    %828 = tpu.matmul %826, %827, %cst_355 {dimension_numbers = #tpu.dot_dimension_numbers<[1], [1], [0], [0], [0, 0, 1, 0], [], []>} : vector<8x8xf32>, vector<8x8xf32>, vector<8x8xf32> -> vector<8x8xf32>
    %cst_356 = arith.constant dense<0xFF800000> : vector<8xf32>
    %829 = vector.multi_reduction <maximumf>, %828, %cst_356 [1] : vector<8x8xf32> to vector<8xf32>
    %830 = vector.shape_cast %829 : vector<8xf32> to vector<8x1xf32>
    %831 = vector.broadcast %830 : vector<8x1xf32> to vector<8x8xf32>
    %832 = arith.subf %828, %831 : vector<8x8xf32>
    %833 = math.exp %832 : vector<8x8xf32>
    %cst_357 = arith.constant dense<0.000000e+00> : vector<8xf32>
    %834 = vector.multi_reduction <add>, %833, %cst_357 [1] : vector<8x8xf32> to vector<8xf32>
    %835 = vector.shape_cast %834 : vector<8xf32> to vector<8x1xf32>
    %836 = tpu.reciprocal %835 {approx = true} : vector<8x1xf32> -> vector<8x1xf32>
    %837 = vector.broadcast %836 : vector<8x1xf32> to vector<8x8xf32>
    %838 = arith.mulf %833, %837 : vector<8x8xf32>
    %839 = vector.extract_strided_slice %784 {offsets = [0, 16], sizes = [8, 8], strides = [1, 1]} : vector<8x32xf32> to vector<8x8xf32>
    %cst_358 = arith.constant dense<0.000000e+00> : vector<8x8xf32>
    %840 = tpu.matmul %838, %839, %cst_358 {dimension_numbers = #tpu.dot_dimension_numbers<[1], [0], [0], [1], [0, 0, 1, 1], [], []>} : vector<8x8xf32>, vector<8x8xf32>, vector<8x8xf32> -> vector<8x8xf32>
    %841 = vector.extract_strided_slice %786 {offsets = [16, 0], sizes = [8, 32], strides = [1, 1]} : vector<32x32xf32> to vector<8x32xf32>
    %cst_359 = arith.constant dense<0.000000e+00> : vector<8x32xf32>
    %842 = tpu.matmul %840, %841, %cst_359 {dimension_numbers = #tpu.dot_dimension_numbers<[1], [0], [0], [1], [0, 0, 1, 1], [], []>} : vector<8x8xf32>, vector<8x32xf32>, vector<8x32xf32> -> vector<8x32xf32>
    %843 = arith.addf %825, %842 : vector<8x32xf32>
    %844 = vector.extract_strided_slice %775 {offsets = [0, 24], sizes = [8, 8], strides = [1, 1]} : vector<8x32xf32> to vector<8x8xf32>
    %845 = vector.extract_strided_slice %783 {offsets = [0, 24], sizes = [8, 8], strides = [1, 1]} : vector<8x32xf32> to vector<8x8xf32>
    %cst_360 = arith.constant dense<0.000000e+00> : vector<8x8xf32>
    %846 = tpu.matmul %844, %845, %cst_360 {dimension_numbers = #tpu.dot_dimension_numbers<[1], [1], [0], [0], [0, 0, 1, 0], [], []>} : vector<8x8xf32>, vector<8x8xf32>, vector<8x8xf32> -> vector<8x8xf32>
    %cst_361 = arith.constant dense<0xFF800000> : vector<8xf32>
    %847 = vector.multi_reduction <maximumf>, %846, %cst_361 [1] : vector<8x8xf32> to vector<8xf32>
    %848 = vector.shape_cast %847 : vector<8xf32> to vector<8x1xf32>
    %849 = vector.broadcast %848 : vector<8x1xf32> to vector<8x8xf32>
    %850 = arith.subf %846, %849 : vector<8x8xf32>
    %851 = math.exp %850 : vector<8x8xf32>
    %cst_362 = arith.constant dense<0.000000e+00> : vector<8xf32>
    %852 = vector.multi_reduction <add>, %851, %cst_362 [1] : vector<8x8xf32> to vector<8xf32>
    %853 = vector.shape_cast %852 : vector<8xf32> to vector<8x1xf32>
    %854 = tpu.reciprocal %853 {approx = true} : vector<8x1xf32> -> vector<8x1xf32>
    %855 = vector.broadcast %854 : vector<8x1xf32> to vector<8x8xf32>
    %856 = arith.mulf %851, %855 : vector<8x8xf32>
    %857 = vector.extract_strided_slice %784 {offsets = [0, 24], sizes = [8, 8], strides = [1, 1]} : vector<8x32xf32> to vector<8x8xf32>
    %cst_363 = arith.constant dense<0.000000e+00> : vector<8x8xf32>
    %858 = tpu.matmul %856, %857, %cst_363 {dimension_numbers = #tpu.dot_dimension_numbers<[1], [0], [0], [1], [0, 0, 1, 1], [], []>} : vector<8x8xf32>, vector<8x8xf32>, vector<8x8xf32> -> vector<8x8xf32>
    %859 = vector.extract_strided_slice %786 {offsets = [24, 0], sizes = [8, 32], strides = [1, 1]} : vector<32x32xf32> to vector<8x32xf32>
    %cst_364 = arith.constant dense<0.000000e+00> : vector<8x32xf32>
    %860 = tpu.matmul %858, %859, %cst_364 {dimension_numbers = #tpu.dot_dimension_numbers<[1], [0], [0], [1], [0, 0, 1, 1], [], []>} : vector<8x8xf32>, vector<8x32xf32>, vector<8x32xf32> -> vector<8x32xf32>
    %861 = arith.addf %843, %860 : vector<8x32xf32>
    %862 = arith.addf %768, %861 : vector<8x32xf32>
    %c1_365 = arith.constant 1 : index
    %c0_366 = arith.constant 0 : index
    %c0_367 = arith.constant 0 : index
    %863 = vector.load %arg29[%c1_365, %c0_366, %c0_367] : memref<2x1x32xf32, #tpu.memory_space<vmem>>, vector<1x1x32xf32>
    %864 = vector.shape_cast %863 : vector<1x1x32xf32> to vector<1x32xf32>
    %c1_368 = arith.constant 1 : index
    %c0_369 = arith.constant 0 : index
    %c0_370 = arith.constant 0 : index
    %865 = vector.load %arg30[%c1_368, %c0_369, %c0_370] : memref<2x1x32xf32, #tpu.memory_space<vmem>>, vector<1x1x32xf32>
    %866 = vector.shape_cast %865 : vector<1x1x32xf32> to vector<1x32xf32>
    %cst_371 = arith.constant dense<0.000000e+00> : vector<8xf32>
    %867 = vector.multi_reduction <add>, %862, %cst_371 [1] : vector<8x32xf32> to vector<8xf32>
    %868 = vector.shape_cast %867 : vector<8xf32> to vector<8x1xf32>
    %cst_372 = arith.constant 3.200000e+01 : f32
    %869 = vector.broadcast %cst_372 : f32 to vector<8x1xf32>
    %870 = arith.divf %868, %869 : vector<8x1xf32>
    %871 = vector.broadcast %870 : vector<8x1xf32> to vector<8x32xf32>
    %872 = arith.subf %862, %871 : vector<8x32xf32>
    %873 = arith.mulf %872, %872 : vector<8x32xf32>
    %cst_373 = arith.constant dense<0.000000e+00> : vector<8xf32>
    %874 = vector.multi_reduction <add>, %873, %cst_373 [1] : vector<8x32xf32> to vector<8xf32>
    %875 = vector.shape_cast %874 : vector<8xf32> to vector<8x1xf32>
    %cst_374 = arith.constant 3.200000e+01 : f32
    %876 = vector.broadcast %cst_374 : f32 to vector<8x1xf32>
    %877 = arith.divf %875, %876 : vector<8x1xf32>
    %878 = vector.broadcast %870 : vector<8x1xf32> to vector<8x32xf32>
    %879 = arith.subf %862, %878 : vector<8x32xf32>
    %cst_375 = arith.constant 9.99999974E-6 : f32
    %880 = vector.broadcast %cst_375 : f32 to vector<8x1xf32>
    %881 = arith.addf %877, %880 : vector<8x1xf32>
    %882 = math.rsqrt %881 : vector<8x1xf32>
    %883 = vector.broadcast %882 : vector<8x1xf32> to vector<8x32xf32>
    %884 = arith.mulf %879, %883 : vector<8x32xf32>
    %885 = vector.broadcast %864 : vector<1x32xf32> to vector<8x32xf32>
    %886 = arith.mulf %884, %885 : vector<8x32xf32>
    %887 = vector.broadcast %866 : vector<1x32xf32> to vector<8x32xf32>
    %888 = arith.addf %886, %887 : vector<8x32xf32>
    %c1_376 = arith.constant 1 : index
    %c0_377 = arith.constant 0 : index
    %c0_378 = arith.constant 0 : index
    %889 = vector.load %arg33[%c1_376, %c0_377, %c0_378] : memref<2x32x64xf32, #tpu.memory_space<vmem>>, vector<1x32x64xf32>
    %890 = vector.shape_cast %889 : vector<1x32x64xf32> to vector<32x64xf32>
    %cst_379 = arith.constant dense<0.000000e+00> : vector<8x64xf32>
    %891 = tpu.matmul %888, %890, %cst_379 {dimension_numbers = #tpu.dot_dimension_numbers<[1], [0], [0], [1], [0, 0, 1, 1], [], []>} : vector<8x32xf32>, vector<32x64xf32>, vector<8x64xf32> -> vector<8x64xf32>
    %c1_380 = arith.constant 1 : index
    %c0_381 = arith.constant 0 : index
    %c0_382 = arith.constant 0 : index
    %892 = vector.load %arg34[%c1_380, %c0_381, %c0_382] : memref<2x1x64xf32, #tpu.memory_space<vmem>>, vector<1x1x64xf32>
    %893 = vector.shape_cast %892 : vector<1x1x64xf32> to vector<1x64xf32>
    %894 = vector.broadcast %893 : vector<1x64xf32> to vector<8x64xf32>
    %895 = arith.addf %891, %894 : vector<8x64xf32>
    %cst_383 = arith.constant 0.000000e+00 : f32
    %896 = vector.broadcast %cst_383 : f32 to vector<8x64xf32>
    %897 = arith.maximumf %895, %896 : vector<8x64xf32>
    %c1_384 = arith.constant 1 : index
    %c0_385 = arith.constant 0 : index
    %c0_386 = arith.constant 0 : index
    %898 = vector.load %arg35[%c1_384, %c0_385, %c0_386] : memref<2x64x32xf32, #tpu.memory_space<vmem>>, vector<1x64x32xf32>
    %899 = vector.shape_cast %898 : vector<1x64x32xf32> to vector<64x32xf32>
    %cst_387 = arith.constant dense<0.000000e+00> : vector<8x32xf32>
    %900 = tpu.matmul %897, %899, %cst_387 {dimension_numbers = #tpu.dot_dimension_numbers<[1], [0], [0], [1], [0, 0, 1, 1], [], []>} : vector<8x64xf32>, vector<64x32xf32>, vector<8x32xf32> -> vector<8x32xf32>
    %c1_388 = arith.constant 1 : index
    %c0_389 = arith.constant 0 : index
    %c0_390 = arith.constant 0 : index
    %901 = vector.load %arg36[%c1_388, %c0_389, %c0_390] : memref<2x1x32xf32, #tpu.memory_space<vmem>>, vector<1x1x32xf32>
    %902 = vector.shape_cast %901 : vector<1x1x32xf32> to vector<1x32xf32>
    %903 = vector.broadcast %902 : vector<1x32xf32> to vector<8x32xf32>
    %904 = arith.addf %900, %903 : vector<8x32xf32>
    %905 = arith.addf %888, %904 : vector<8x32xf32>
    %c1_391 = arith.constant 1 : index
    %c0_392 = arith.constant 0 : index
    %c0_393 = arith.constant 0 : index
    %906 = vector.load %arg31[%c1_391, %c0_392, %c0_393] : memref<2x1x32xf32, #tpu.memory_space<vmem>>, vector<1x1x32xf32>
    %907 = vector.shape_cast %906 : vector<1x1x32xf32> to vector<1x32xf32>
    %c1_394 = arith.constant 1 : index
    %c0_395 = arith.constant 0 : index
    %c0_396 = arith.constant 0 : index
    %908 = vector.load %arg32[%c1_394, %c0_395, %c0_396] : memref<2x1x32xf32, #tpu.memory_space<vmem>>, vector<1x1x32xf32>
    %909 = vector.shape_cast %908 : vector<1x1x32xf32> to vector<1x32xf32>
    %cst_397 = arith.constant dense<0.000000e+00> : vector<8xf32>
    %910 = vector.multi_reduction <add>, %905, %cst_397 [1] : vector<8x32xf32> to vector<8xf32>
    %911 = vector.shape_cast %910 : vector<8xf32> to vector<8x1xf32>
    %cst_398 = arith.constant 3.200000e+01 : f32
    %912 = vector.broadcast %cst_398 : f32 to vector<8x1xf32>
    %913 = arith.divf %911, %912 : vector<8x1xf32>
    %914 = vector.broadcast %913 : vector<8x1xf32> to vector<8x32xf32>
    %915 = arith.subf %905, %914 : vector<8x32xf32>
    %916 = arith.mulf %915, %915 : vector<8x32xf32>
    %cst_399 = arith.constant dense<0.000000e+00> : vector<8xf32>
    %917 = vector.multi_reduction <add>, %916, %cst_399 [1] : vector<8x32xf32> to vector<8xf32>
    %918 = vector.shape_cast %917 : vector<8xf32> to vector<8x1xf32>
    %cst_400 = arith.constant 3.200000e+01 : f32
    %919 = vector.broadcast %cst_400 : f32 to vector<8x1xf32>
    %920 = arith.divf %918, %919 : vector<8x1xf32>
    %921 = vector.broadcast %913 : vector<8x1xf32> to vector<8x32xf32>
    %922 = arith.subf %905, %921 : vector<8x32xf32>
    %cst_401 = arith.constant 9.99999974E-6 : f32
    %923 = vector.broadcast %cst_401 : f32 to vector<8x1xf32>
    %924 = arith.addf %920, %923 : vector<8x1xf32>
    %925 = math.rsqrt %924 : vector<8x1xf32>
    %926 = vector.broadcast %925 : vector<8x1xf32> to vector<8x32xf32>
    %927 = arith.mulf %922, %926 : vector<8x32xf32>
    %928 = vector.broadcast %907 : vector<1x32xf32> to vector<8x32xf32>
    %929 = arith.mulf %927, %928 : vector<8x32xf32>
    %930 = vector.broadcast %909 : vector<1x32xf32> to vector<8x32xf32>
    %931 = arith.addf %929, %930 : vector<8x32xf32>
    %c0_402 = arith.constant 0 : index
    %c0_403 = arith.constant 0 : index
    %932 = vector.load %arg39[%c0_402, %c0_403] : memref<1x32xf32, #tpu.memory_space<vmem>>, vector<1x32xf32>
    %c0_404 = arith.constant 0 : index
    %c0_405 = arith.constant 0 : index
    %933 = vector.load %arg40[%c0_404, %c0_405] : memref<1x32xf32, #tpu.memory_space<vmem>>, vector<1x32xf32>
    %cst_406 = arith.constant dense<0.000000e+00> : vector<8xf32>
    %934 = vector.multi_reduction <add>, %931, %cst_406 [1] : vector<8x32xf32> to vector<8xf32>
    %935 = vector.shape_cast %934 : vector<8xf32> to vector<8x1xf32>
    %cst_407 = arith.constant 3.200000e+01 : f32
    %936 = vector.broadcast %cst_407 : f32 to vector<8x1xf32>
    %937 = arith.divf %935, %936 : vector<8x1xf32>
    %938 = vector.broadcast %937 : vector<8x1xf32> to vector<8x32xf32>
    %939 = arith.subf %931, %938 : vector<8x32xf32>
    %940 = arith.mulf %939, %939 : vector<8x32xf32>
    %cst_408 = arith.constant dense<0.000000e+00> : vector<8xf32>
    %941 = vector.multi_reduction <add>, %940, %cst_408 [1] : vector<8x32xf32> to vector<8xf32>
    %942 = vector.shape_cast %941 : vector<8xf32> to vector<8x1xf32>
    %cst_409 = arith.constant 3.200000e+01 : f32
    %943 = vector.broadcast %cst_409 : f32 to vector<8x1xf32>
    %944 = arith.divf %942, %943 : vector<8x1xf32>
    %945 = vector.broadcast %937 : vector<8x1xf32> to vector<8x32xf32>
    %946 = arith.subf %931, %945 : vector<8x32xf32>
    %cst_410 = arith.constant 9.99999974E-6 : f32
    %947 = vector.broadcast %cst_410 : f32 to vector<8x1xf32>
    %948 = arith.addf %944, %947 : vector<8x1xf32>
    %949 = math.rsqrt %948 : vector<8x1xf32>
    %950 = vector.broadcast %949 : vector<8x1xf32> to vector<8x32xf32>
    %951 = arith.mulf %946, %950 : vector<8x32xf32>
    %952 = vector.broadcast %932 : vector<1x32xf32> to vector<8x32xf32>
    %953 = arith.mulf %951, %952 : vector<8x32xf32>
    %954 = vector.broadcast %933 : vector<1x32xf32> to vector<8x32xf32>
    %955 = arith.addf %953, %954 : vector<8x32xf32>
    %c0_411 = arith.constant 0 : index
    %c0_412 = arith.constant 0 : index
    %956 = vector.load %arg41[%c0_411, %c0_412] : memref<32x128xf32, #tpu.memory_space<vmem>>, vector<32x128xf32>
    %cst_413 = arith.constant dense<0.000000e+00> : vector<8x128xf32>
    %957 = tpu.matmul %955, %956, %cst_413 {dimension_numbers = #tpu.dot_dimension_numbers<[1], [0], [0], [1], [0, 0, 1, 1], [], []>} : vector<8x32xf32>, vector<32x128xf32>, vector<8x128xf32> -> vector<8x128xf32>
    %c0_414 = arith.constant 0 : index
    %c0_415 = arith.constant 0 : index
    %958 = vector.load %arg42[%c0_414, %c0_415] : memref<1x128xf32, #tpu.memory_space<vmem>>, vector<1x128xf32>
    %959 = vector.broadcast %958 : vector<1x128xf32> to vector<8x128xf32>
    %960 = arith.addf %957, %959 : vector<8x128xf32>
    %c0_416 = arith.constant 0 : index
    %c0_417 = arith.constant 0 : index
    %c0_418 = arith.constant 0 : index
    %961 = vector.load %arg43[%c0_416, %c0_417, %c0_418] : memref<1x8x128xf32, #tpu.memory_space<vmem>>, vector<1x8x128xf32>
    %962 = vector.shape_cast %961 : vector<1x8x128xf32> to vector<8x128xf32>
    %963 = vector.shape_cast %960 : vector<8x128xf32> to vector<1x8x128xf32>
    tpu.vector_store %arg43[%c0_416, %c0_417, %c0_418], %963 {strides = array<i32>} : memref<1x8x128xf32, #tpu.memory_space<vmem>>, vector<1x8x128xf32>,
    return
  }
  func.func @transform_0(%arg0: i32) -> (i32, i32, i32) {
    %c0_i32 = arith.constant 0 : i32
    %c0_i32_0 = arith.constant 0 : i32
    %c0_i32_1 = arith.constant 0 : i32
    return %arg0, %c0_i32, %c0_i32_0 : i32, i32, i32
  }
  func.func @transform_1(%arg0: i32) -> (i32, i32, i32) {
    %c0_i32 = arith.constant 0 : i32
    %c0_i32_0 = arith.constant 0 : i32
    %c0_i32_1 = arith.constant 0 : i32
    return %arg0, %c0_i32, %c0_i32_0 : i32, i32, i32
  }
  func.func @transform_2(%arg0: i32) -> (i32, i32, i32) {
    %c0_i32 = arith.constant 0 : i32
    %c0_i32_0 = arith.constant 0 : i32
    %c0_i32_1 = arith.constant 0 : i32
    return %arg0, %c0_i32, %c0_i32_0 : i32, i32, i32
  }
  func.func @transform_3(%arg0: i32) -> (i32, i32, i32) {
    %c0_i32 = arith.constant 0 : i32
    %c0_i32_0 = arith.constant 0 : i32
    %c0_i32_1 = arith.constant 0 : i32
    return %arg0, %c0_i32, %c0_i32_0 : i32, i32, i32
  }
  func.func @transform_4(%arg0: i32) -> (i32, i32, i32) {
    %c0_i32 = arith.constant 0 : i32
    %c0_i32_0 = arith.constant 0 : i32
    %c0_i32_1 = arith.constant 0 : i32
    %c0_i32_2 = arith.constant 0 : i32
    return %c0_i32, %c0_i32_0, %c0_i32_1 : i32, i32, i32
  }
  func.func @transform_5(%arg0: i32) -> (i32, i32, i32) {
    %c0_i32 = arith.constant 0 : i32
    %c0_i32_0 = arith.constant 0 : i32
    %c0_i32_1 = arith.constant 0 : i32
    %c0_i32_2 = arith.constant 0 : i32
    return %c0_i32, %c0_i32_0, %c0_i32_1 : i32, i32, i32
  }
  func.func @transform_6(%arg0: i32) -> (i32, i32, i32) {
    %c0_i32 = arith.constant 0 : i32
    %c0_i32_0 = arith.constant 0 : i32
    %c0_i32_1 = arith.constant 0 : i32
    %c0_i32_2 = arith.constant 0 : i32
    return %c0_i32, %c0_i32_0, %c0_i32_1 : i32, i32, i32
  }
  func.func @transform_7(%arg0: i32) -> (i32, i32, i32) {
    %c0_i32 = arith.constant 0 : i32
    %c0_i32_0 = arith.constant 0 : i32
    %c0_i32_1 = arith.constant 0 : i32
    %c0_i32_2 = arith.constant 0 : i32
    return %c0_i32, %c0_i32_0, %c0_i32_1 : i32, i32, i32
  }
  func.func @transform_8(%arg0: i32) -> (i32, i32, i32) {
    %c0_i32 = arith.constant 0 : i32
    %c0_i32_0 = arith.constant 0 : i32
    %c0_i32_1 = arith.constant 0 : i32
    %c0_i32_2 = arith.constant 0 : i32
    return %c0_i32, %c0_i32_0, %c0_i32_1 : i32, i32, i32
  }
  func.func @transform_9(%arg0: i32) -> (i32, i32, i32) {
    %c0_i32 = arith.constant 0 : i32
    %c0_i32_0 = arith.constant 0 : i32
    %c0_i32_1 = arith.constant 0 : i32
    %c0_i32_2 = arith.constant 0 : i32
    return %c0_i32, %c0_i32_0, %c0_i32_1 : i32, i32, i32
  }
  func.func @transform_10(%arg0: i32) -> (i32, i32, i32) {
    %c0_i32 = arith.constant 0 : i32
    %c0_i32_0 = arith.constant 0 : i32
    %c0_i32_1 = arith.constant 0 : i32
    %c0_i32_2 = arith.constant 0 : i32
    return %c0_i32, %c0_i32_0, %c0_i32_1 : i32, i32, i32
  }
  func.func @transform_11(%arg0: i32) -> (i32, i32, i32) {
    %c0_i32 = arith.constant 0 : i32
    %c0_i32_0 = arith.constant 0 : i32
    %c0_i32_1 = arith.constant 0 : i32
    %c0_i32_2 = arith.constant 0 : i32
    return %c0_i32, %c0_i32_0, %c0_i32_1 : i32, i32, i32
  }
  func.func @transform_12(%arg0: i32) -> (i32, i32, i32) {
    %c0_i32 = arith.constant 0 : i32
    %c0_i32_0 = arith.constant 0 : i32
    %c0_i32_1 = arith.constant 0 : i32
    %c0_i32_2 = arith.constant 0 : i32
    return %c0_i32, %c0_i32_0, %c0_i32_1 : i32, i32, i32
  }
  func.func @transform_13(%arg0: i32) -> (i32, i32, i32) {
    %c0_i32 = arith.constant 0 : i32
    %c0_i32_0 = arith.constant 0 : i32
    %c0_i32_1 = arith.constant 0 : i32
    %c0_i32_2 = arith.constant 0 : i32
    return %c0_i32, %c0_i32_0, %c0_i32_1 : i32, i32, i32
  }
  func.func @transform_14(%arg0: i32) -> (i32, i32, i32) {
    %c0_i32 = arith.constant 0 : i32
    %c0_i32_0 = arith.constant 0 : i32
    %c0_i32_1 = arith.constant 0 : i32
    %c0_i32_2 = arith.constant 0 : i32
    return %c0_i32, %c0_i32_0, %c0_i32_1 : i32, i32, i32
  }
  func.func @transform_15(%arg0: i32) -> (i32, i32, i32) {
    %c0_i32 = arith.constant 0 : i32
    %c0_i32_0 = arith.constant 0 : i32
    %c0_i32_1 = arith.constant 0 : i32
    %c0_i32_2 = arith.constant 0 : i32
    return %c0_i32, %c0_i32_0, %c0_i32_1 : i32, i32, i32
  }
  func.func @transform_16(%arg0: i32) -> (i32, i32, i32) {
    %c0_i32 = arith.constant 0 : i32
    %c0_i32_0 = arith.constant 0 : i32
    %c0_i32_1 = arith.constant 0 : i32
    %c0_i32_2 = arith.constant 0 : i32
    return %c0_i32, %c0_i32_0, %c0_i32_1 : i32, i32, i32
  }
  func.func @transform_17(%arg0: i32) -> (i32, i32, i32) {
    %c0_i32 = arith.constant 0 : i32
    %c0_i32_0 = arith.constant 0 : i32
    %c0_i32_1 = arith.constant 0 : i32
    %c0_i32_2 = arith.constant 0 : i32
    return %c0_i32, %c0_i32_0, %c0_i32_1 : i32, i32, i32
  }
  func.func @transform_18(%arg0: i32) -> (i32, i32, i32) {
    %c0_i32 = arith.constant 0 : i32
    %c0_i32_0 = arith.constant 0 : i32
    %c0_i32_1 = arith.constant 0 : i32
    %c0_i32_2 = arith.constant 0 : i32
    return %c0_i32, %c0_i32_0, %c0_i32_1 : i32, i32, i32
  }
  func.func @transform_19(%arg0: i32) -> (i32, i32, i32) {
    %c0_i32 = arith.constant 0 : i32
    %c0_i32_0 = arith.constant 0 : i32
    %c0_i32_1 = arith.constant 0 : i32
    %c0_i32_2 = arith.constant 0 : i32
    return %c0_i32, %c0_i32_0, %c0_i32_1 : i32, i32, i32
  }
  func.func @transform_20(%arg0: i32) -> (i32, i32, i32) {
    %c0_i32 = arith.constant 0 : i32
    %c0_i32_0 = arith.constant 0 : i32
    %c0_i32_1 = arith.constant 0 : i32
    %c0_i32_2 = arith.constant 0 : i32
    return %c0_i32, %c0_i32_0, %c0_i32_1 : i32, i32, i32
  }
  func.func @transform_21(%arg0: i32) -> (i32, i32, i32) {
    %c0_i32 = arith.constant 0 : i32
    %c0_i32_0 = arith.constant 0 : i32
    %c0_i32_1 = arith.constant 0 : i32
    %c0_i32_2 = arith.constant 0 : i32
    return %c0_i32, %c0_i32_0, %c0_i32_1 : i32, i32, i32
  }
  func.func @transform_22(%arg0: i32) -> (i32, i32, i32) {
    %c0_i32 = arith.constant 0 : i32
    %c0_i32_0 = arith.constant 0 : i32
    %c0_i32_1 = arith.constant 0 : i32
    %c0_i32_2 = arith.constant 0 : i32
    return %c0_i32, %c0_i32_0, %c0_i32_1 : i32, i32, i32
  }
  func.func @transform_23(%arg0: i32) -> (i32, i32, i32) {
    %c0_i32 = arith.constant 0 : i32
    %c0_i32_0 = arith.constant 0 : i32
    %c0_i32_1 = arith.constant 0 : i32
    %c0_i32_2 = arith.constant 0 : i32
    return %c0_i32, %c0_i32_0, %c0_i32_1 : i32, i32, i32
  }
  func.func @transform_24(%arg0: i32) -> (i32, i32, i32) {
    %c0_i32 = arith.constant 0 : i32
    %c0_i32_0 = arith.constant 0 : i32
    %c0_i32_1 = arith.constant 0 : i32
    %c0_i32_2 = arith.constant 0 : i32
    return %c0_i32, %c0_i32_0, %c0_i32_1 : i32, i32, i32
  }
  func.func @transform_25(%arg0: i32) -> (i32, i32, i32) {
    %c0_i32 = arith.constant 0 : i32
    %c0_i32_0 = arith.constant 0 : i32
    %c0_i32_1 = arith.constant 0 : i32
    %c0_i32_2 = arith.constant 0 : i32
    return %c0_i32, %c0_i32_0, %c0_i32_1 : i32, i32, i32
  }
  func.func @transform_26(%arg0: i32) -> (i32, i32, i32) {
    %c0_i32 = arith.constant 0 : i32
    %c0_i32_0 = arith.constant 0 : i32
    %c0_i32_1 = arith.constant 0 : i32
    %c0_i32_2 = arith.constant 0 : i32
    return %c0_i32, %c0_i32_0, %c0_i32_1 : i32, i32, i32
  }
  func.func @transform_27(%arg0: i32) -> (i32, i32, i32) {
    %c0_i32 = arith.constant 0 : i32
    %c0_i32_0 = arith.constant 0 : i32
    %c0_i32_1 = arith.constant 0 : i32
    %c0_i32_2 = arith.constant 0 : i32
    return %c0_i32, %c0_i32_0, %c0_i32_1 : i32, i32, i32
  }
  func.func @transform_28(%arg0: i32) -> (i32, i32, i32) {
    %c0_i32 = arith.constant 0 : i32
    %c0_i32_0 = arith.constant 0 : i32
    %c0_i32_1 = arith.constant 0 : i32
    %c0_i32_2 = arith.constant 0 : i32
    return %c0_i32, %c0_i32_0, %c0_i32_1 : i32, i32, i32
  }
  func.func @transform_29(%arg0: i32) -> (i32, i32, i32) {
    %c0_i32 = arith.constant 0 : i32
    %c0_i32_0 = arith.constant 0 : i32
    %c0_i32_1 = arith.constant 0 : i32
    %c0_i32_2 = arith.constant 0 : i32
    return %c0_i32, %c0_i32_0, %c0_i32_1 : i32, i32, i32
  }
  func.func @transform_30(%arg0: i32) -> (i32, i32, i32) {
    %c0_i32 = arith.constant 0 : i32
    %c0_i32_0 = arith.constant 0 : i32
    %c0_i32_1 = arith.constant 0 : i32
    %c0_i32_2 = arith.constant 0 : i32
    return %c0_i32, %c0_i32_0, %c0_i32_1 : i32, i32, i32
  }
  func.func @transform_31(%arg0: i32) -> (i32, i32, i32) {
    %c0_i32 = arith.constant 0 : i32
    %c0_i32_0 = arith.constant 0 : i32
    %c0_i32_1 = arith.constant 0 : i32
    %c0_i32_2 = arith.constant 0 : i32
    return %c0_i32, %c0_i32_0, %c0_i32_1 : i32, i32, i32
  }
  func.func @transform_32(%arg0: i32) -> (i32, i32, i32) {
    %c0_i32 = arith.constant 0 : i32
    %c0_i32_0 = arith.constant 0 : i32
    %c0_i32_1 = arith.constant 0 : i32
    %c0_i32_2 = arith.constant 0 : i32
    return %c0_i32, %c0_i32_0, %c0_i32_1 : i32, i32, i32
  }
  func.func @transform_33(%arg0: i32) -> (i32, i32, i32) {
    %c0_i32 = arith.constant 0 : i32
    %c0_i32_0 = arith.constant 0 : i32
    %c0_i32_1 = arith.constant 0 : i32
    %c0_i32_2 = arith.constant 0 : i32
    return %c0_i32, %c0_i32_0, %c0_i32_1 : i32, i32, i32
  }
  func.func @transform_34(%arg0: i32) -> (i32, i32, i32) {
    %c0_i32 = arith.constant 0 : i32
    %c0_i32_0 = arith.constant 0 : i32
    %c0_i32_1 = arith.constant 0 : i32
    %c0_i32_2 = arith.constant 0 : i32
    return %c0_i32, %c0_i32_0, %c0_i32_1 : i32, i32, i32
  }
  func.func @transform_35(%arg0: i32) -> (i32, i32, i32) {
    %c0_i32 = arith.constant 0 : i32
    %c0_i32_0 = arith.constant 0 : i32
    %c0_i32_1 = arith.constant 0 : i32
    %c0_i32_2 = arith.constant 0 : i32
    return %c0_i32, %c0_i32_0, %c0_i32_1 : i32, i32, i32
  }
  func.func @transform_36(%arg0: i32) -> (i32, i32) {
    %c0_i32 = arith.constant 0 : i32
    %c0_i32_0 = arith.constant 0 : i32
    %c0_i32_1 = arith.constant 0 : i32
    return %c0_i32, %c0_i32_0 : i32, i32
  }
  func.func @transform_37(%arg0: i32) -> (i32, i32) {
    %c0_i32 = arith.constant 0 : i32
    %c0_i32_0 = arith.constant 0 : i32
    %c0_i32_1 = arith.constant 0 : i32
    return %c0_i32, %c0_i32_0 : i32, i32
  }
  func.func @transform_38(%arg0: i32) -> (i32, i32) {
    %c0_i32 = arith.constant 0 : i32
    %c0_i32_0 = arith.constant 0 : i32
    %c0_i32_1 = arith.constant 0 : i32
    return %c0_i32, %c0_i32_0 : i32, i32
  }
  func.func @transform_39(%arg0: i32) -> (i32, i32) {
    %c0_i32 = arith.constant 0 : i32
    %c0_i32_0 = arith.constant 0 : i32
    %c0_i32_1 = arith.constant 0 : i32
    return %c0_i32, %c0_i32_0 : i32, i32
  }
  func.func @transform_40(%arg0: i32) -> (i32, i32) {
    %c0_i32 = arith.constant 0 : i32
    %c0_i32_0 = arith.constant 0 : i32
    %c0_i32_1 = arith.constant 0 : i32
    return %c0_i32, %c0_i32_0 : i32, i32
  }
  func.func @transform_41(%arg0: i32) -> (i32, i32) {
    %c0_i32 = arith.constant 0 : i32
    %c0_i32_0 = arith.constant 0 : i32
    %c0_i32_1 = arith.constant 0 : i32
    return %c0_i32, %c0_i32_0 : i32, i32
  }
  func.func @transform_42(%arg0: i32) -> (i32, i32, i32) {
    %c0_i32 = arith.constant 0 : i32
    %c0_i32_0 = arith.constant 0 : i32
    %c0_i32_1 = arith.constant 0 : i32
    return %arg0, %c0_i32, %c0_i32_0 : i32, i32, i32
  }
}

</mosaic_0001>

<bundles_post_ra>
// kernel: transformer_forward.1
= control target key start
LH: loop header
LB: loop body
LE: loop exit
PB: predicated region body
PF: predicated region fallthrough
CT: control target
= control target key end

     0   :  { %s10584_s6 = smov 1   ;;  %s10585_s10 = smov 2   ;;  %s11805_s0 = inlined_call_operand.smem [shape: u32[43], index: -1, kind: input, shape index: {}] }
   0x1   :  { %s10649_s5 = sld [smem:[%s11805_s0]]   ;;  %s10586_s14 = smov 3  }
   0x2   :  { %s10654_s9 = sld [smem:[%s11805_s0 + %s10584_s6]]   ;;  %s10587_s18 = smov 4  }
   0x3   :  { %s10659_s13 = sld [smem:[%s11805_s0 + %s10585_s10]]   ;;  %s10588_s22 = smov 5  }
   0x4   :  { %s10664_s17 = sld [smem:[%s11805_s0 + %s10586_s14]]   ;;  %s10589_s26 = smov 6  }
   0x5   :  { %s10669_s21 = sld [smem:[%s11805_s0 + %s10587_s18]]   ;;  %s10590_s30 = smov 7  }
   0x6   :  { %s10674_s25 = sld [smem:[%s11805_s0 + %s10588_s22]]   ;;  %s10591_s4 = smov 8  }
   0x7   :  { %11873 = sst [smem:[#allocation5_spill]] %s10649_s5  ;;  %s10592_s10 = smov 9  }
   0x8   :  { %11874 = sst [smem:[#allocation6_spill]] %s10654_s9  ;;  %s10593_s15 = smov 10  }
   0x9   :  { %11875 = sst [smem:[#allocation7_spill]] %s10659_s13  ;;  %s10594_s20 = smov 11  }
   0xa   :  { %11876 = sst [smem:[#allocation8_spill]] %s10664_s17  ;;  %s10596_s1 = smov 13  }
   0xb   :  { %11877 = sst [smem:[#allocation9_spill]] %s10669_s21  ;;  %s10597_s7 = smov 14  }
   0xc   :  { %11878 = sst [smem:[#allocation10_spill]] %s10674_s25  ;;  %s10599_s22 = smov 16  }
   0xd   :  { %s10679_s29 = sld [smem:[%s11805_s0 + %s10589_s26]]   ;;  %s10595_s26 = smov 12  }
   0xe   :  { %s10684_s3 = sld [smem:[%s11805_s0 + %s10590_s30]]   ;;  %s10600_s28 = smov 17  }
   0xf   :  { %s10689_s8 = sld [smem:[%s11805_s0 + %s10591_s4]]  }
  0x10   :  { %s10694_s14 = sld [smem:[%s11805_s0 + %s10592_s10]]  }
  0x11   :  { %s10699_s19 = sld [smem:[%s11805_s0 + %s10593_s15]]   ;;  %s10598_s15 = smov 15  }
  0x12   :  { %s10704_s24 = sld [smem:[%s11805_s0 + %s10594_s20]]  }
  0x13   :  { %11879 = sst [smem:[#allocation11_spill]] %s10679_s29 }
  0x14   :  { %11880 = sst [smem:[#allocation12_spill]] %s10684_s3 }
  0x15   :  { %11881 = sst [smem:[#allocation13_spill]] %s10689_s8 }
  0x16   :  { %11882 = sst [smem:[#allocation14_spill]] %s10694_s14 }
  0x17   :  { %11883 = sst [smem:[#allocation15_spill]] %s10699_s19 }
  0x18   :  { %11884 = sst [smem:[#allocation16_spill]] %s10704_s24 }
  0x19   :  { %s10709_s30 = sld [smem:[%s11805_s0 + %s10595_s26]]  }
  0x1a   :  { %s10714_s6 = sld [smem:[%s11805_s0 + %s10596_s1]]  }
  0x1b   :  { %s10719_s12 = sld [smem:[%s11805_s0 + %s10597_s7]]   ;;  %s10601_s7 = smov 18  }
  0x1c   :  { %s10724_s20 = sld [smem:[%s11805_s0 + %s10598_s15]]   ;;  %s10602_s15 = smov 19  }
  0x1d   :  { %s10729_s27 = sld [smem:[%s11805_s0 + %s10599_s22]]   ;;  %s10603_s22 = smov 20  }
  0x1e   :  { %s10734_s4 = sld [smem:[%s11805_s0 + %s10600_s28]]   ;;  %s10604_s28 = smov 21  }
  0x1f   :  { %11885 = sst [smem:[#allocation17_spill]] %s10709_s30 }
  0x20   :  { %11886 = sst [smem:[#allocation18_spill]] %s10714_s6 }
  0x21   :  { %11887 = sst [smem:[#allocation19_spill]] %s10719_s12 }
  0x22   :  { %11888 = sst [smem:[#allocation20_spill]] %s10724_s20 }
  0x23   :  { %11889 = sst [smem:[#allocation21_spill]] %s10729_s27 }
  0x24   :  { %11890 = sst [smem:[#allocation22_spill]] %s10734_s4 }
  0x25   :  { %s10739_s17 = sld [smem:[%s11805_s0 + %s10601_s7]]   ;;  %s10605_s7 = smov 22  }
  0x26   :  { %s10744_s9 = sld [smem:[%s11805_s0 + %s10602_s15]]   ;;  %s10606_s15 = smov 23  }
  0x27   :  { %s10749_s27 = sld [smem:[%s11805_s0 + %s10603_s22]]   ;;  %s10607_s22 = smov 24  }
  0x28   :  { %s10754_s4 = sld [smem:[%s11805_s0 + %s10604_s28]]   ;;  %s10608_s28 = smov 25  }
  0x2b   :  { %11891 = sst [smem:[#allocation23_spill]] %s10739_s17 }
  0x2c   :  { %11892 = sst [smem:[#allocation24_spill]] %s10744_s9 }
  0x2d   :  { %11893 = sst [smem:[#allocation25_spill]] %s10749_s27 }
  0x2e   :  { %11894 = sst [smem:[#allocation26_spill]] %s10754_s4 }
  0x2f   :  { %s10759_s17 = sld [smem:[%s11805_s0 + %s10605_s7]]   ;;  %s10609_s7 = smov 26  }
  0x30   :  { %s10764_s9 = sld [smem:[%s11805_s0 + %s10606_s15]]   ;;  %s10610_s15 = smov 27  }
  0x31   :  { %s10769_s27 = sld [smem:[%s11805_s0 + %s10607_s22]]   ;;  %s10611_s22 = smov 28  }
  0x32   :  { %s10774_s4 = sld [smem:[%s11805_s0 + %s10608_s28]]   ;;  %s10612_s28 = smov 29  }
  0x35   :  { %11895 = sst [smem:[#allocation27_spill]] %s10759_s17 }
  0x36   :  { %11896 = sst [smem:[#allocation28_spill]] %s10764_s9 }
  0x37   :  { %11897 = sst [smem:[#allocation29_spill]] %s10769_s27 }
  0x38   :  { %11898 = sst [smem:[#allocation30_spill]] %s10774_s4 }
  0x39   :  { %s10779_s17 = sld [smem:[%s11805_s0 + %s10609_s7]]   ;;  %s10613_s7 = smov 30  }
  0x3a   :  { %s10784_s9 = sld [smem:[%s11805_s0 + %s10610_s15]]   ;;  %s10614_s15 = smov 31  }
  0x3b   :  { %s10789_s27 = sld [smem:[%s11805_s0 + %s10611_s22]]   ;;  %s10615_s22 = smov 32  }
  0x3c   :  { %s10794_s4 = sld [smem:[%s11805_s0 + %s10612_s28]]   ;;  %s10616_s28 = smov 33  }
  0x3f   :  { %11899 = sst [smem:[#allocation31_spill]] %s10779_s17 }
  0x40   :  { %11900 = sst [smem:[#allocation32_spill]] %s10784_s9 }
  0x41   :  { %11901 = sst [smem:[#allocation33_spill]] %s10789_s27 }
  0x42   :  { %11902 = sst [smem:[#allocation34_spill]] %s10794_s4 }
  0x43   :  { %s10799_s17 = sld [smem:[%s11805_s0 + %s10613_s7]]   ;;  %s10617_s7 = smov 34  }
  0x44   :  { %s10804_s9 = sld [smem:[%s11805_s0 + %s10614_s15]]   ;;  %s10618_s15 = smov 35  }
  0x45   :  { %s10809_s27 = sld [smem:[%s11805_s0 + %s10615_s22]]   ;;  %s10619_s22 = smov 36  }
  0x46   :  { %s10814_s4 = sld [smem:[%s11805_s0 + %s10616_s28]]   ;;  %s10620_s28 = smov 37  }
  0x49   :  { %11903 = sst [smem:[#allocation35_spill]] %s10799_s17 }
  0x4a   :  { %11904 = sst [smem:[#allocation36_spill]] %s10804_s9 }
  0x4b   :  { %11905 = sst [smem:[#allocation37_spill]] %s10809_s27 }
  0x4c   :  { %11906 = sst [smem:[#allocation38_spill]] %s10814_s4 }
  0x4d   :  { %s10819_s17 = sld [smem:[%s11805_s0 + %s10617_s7]]   ;;  %s10621_s7 = smov 38  }
  0x4e   :  { %s10824_s9 = sld [smem:[%s11805_s0 + %s10618_s15]]   ;;  %s10622_s15 = smov 39  }
  0x4f   :  { %s10829_s27 = sld [smem:[%s11805_s0 + %s10619_s22]]   ;;  %s10623_s22 = smov 40  }
  0x50   :  { %s10834_s4 = sld [smem:[%s11805_s0 + %s10620_s28]]   ;;  %s10624_s28 = smov 41  }
  0x53   :  { %11907 = sst [smem:[#allocation39_spill]] %s10819_s17 }
  0x54   :  { %11908 = sst [smem:[#allocation40_spill]] %s10824_s9 }
  0x55   :  { %11909 = sst [smem:[#allocation41_spill]] %s10829_s27 }
  0x56   :  { %11910 = sst [smem:[#allocation42_spill]] %s10834_s4 }
  0x57   :  { %s10839_s17 = sld [smem:[%s11805_s0 + %s10621_s7]]   ;;  %s10625_s7 = smov 42  }
  0x58   :  { %s10844_s9 = sld [smem:[%s11805_s0 + %s10622_s15]]  }
  0x59   :  { %s10849_s27 = sld [smem:[%s11805_s0 + %s10623_s22]]  }
  0x5a   :  { %s10854_s4 = sld [smem:[%s11805_s0 + %s10624_s28]]  }
  0x5d   :  { %11911 = sst [smem:[#allocation43_spill]] %s10839_s17 }
  0x5e   :  { %11912 = sst [smem:[#allocation44_spill]] %s10844_s9 }
  0x5f   :  { %11913 = sst [smem:[#allocation45_spill]] %s10849_s27 }
  0x60   :  { %11914 = sst [smem:[#allocation46_spill]] %s10854_s4 }
  0x61   :  { %s10859_s17 = sld [smem:[%s11805_s0 + %s10625_s7]]  }
  0x67   :  { %11915 = sst [smem:[#allocation47_spill]] %s10859_s17 }
  0x68   :  { %90 = vsyncpa [#allocation3], 0 }
  0x69   :  { %92 = vsyncpa [#allocation3 + $0x1], 0  ;;  %s10861_s15 = smov 0   ;;  %s10863_s16 = smov 0  }
  0x6a   :  { %s10865_s18 = smov 0   ;;  %s10867_s22 = smov 0  }
  0x6b LB: > { %s11916_s30 = sld [smem:[#allocation17_spill]]  ;;  %s11917_s24 = sld [smem:[#allocation16_spill]]  ;;  %s10582_s22 = sphi %s10867_s22, %s11996_s22   ;;  %s10578_s18 = sphi %s10865_s18, %s11999_s18   ;;  %s10574_s16 = sphi %s10863_s16, %s11998_s16   ;;  %s10570_s15 = sphi %s10861_s15, %s11997_s15  }
  0x6c   : > { %s11918_s20 = sld [smem:[#allocation20_spill]]  ;;  %s11919_s12 = sld [smem:[#allocation19_spill]] }
  0x6d   : > { %s11920_s6 = sld [smem:[#allocation18_spill]]  ;;  %s11921_s14 = sld [smem:[#allocation14_spill]] }
  0x6e   : > { %s11922_s8 = sld [smem:[#allocation13_spill]]  ;;  %s11923_s19 = sld [smem:[#allocation15_spill]] }
  0x6f   : > { %s11924_s29 = sld [smem:[#allocation11_spill]]  ;;  %s11925_s3 = sld [smem:[#allocation12_spill]] }
  0x70   : > { %s11926_s25 = sld [smem:[#allocation10_spill]]  ;;  %s11927_s21 = sld [smem:[#allocation9_spill]] }
  0x71   : > { %11928 = sst [smem:[#allocation48_spill]] %s10570_s15  ;;  %s10882_s0 = sadd.s32 4294967295, %s10582_s22  }
  0x72   : > { %11929 = sst [smem:[#allocation49_spill]] %s10574_s16  ;;  %s9109_s23 = sadd.s32 4294967294, %s10582_s22  }
  0x73   : > { %11930 = sst [smem:[#allocation50_spill]] %s10578_s18  ;;  %s10886_s26 = sadd.s32 1, %s10582_s22  }
  0x74   : > { %11931 = sst [smem:[#allocation51_spill]] %s10582_s22  ;;  %s1007_s28 = sadd.s32 1, %s10578_s18 }
  0x75   : > { %11932 = sst [smem:[#allocation52_spill]] %s10882_s0  ;;  %s1004_s1 = ssub.s32 %s10582_s22, %s10886_s26 }
  0x76   : > { %11933 = sst [smem:[#allocation53_spill]] %s10886_s26  ;;  %p1017_p0 = scmp.ne.s32.totalorder %s10578_s18, %s10574_s16 }
  0x77   : > { %p1005_p1 = scmp.eq.s32.totalorder %s1004_s1, 0  ;;  %p1018_p2 = scmp.eq.s32.totalorder %s10882_s0, 1 }
  0x78   : > { %p1023_p3 = scmp.ne.s32.totalorder %s10574_s16, %s10570_s15  ;;  %p1024_p4 = scmp.eq.s32.totalorder %s9109_s23, 1 }
  0x79   : > { %s10897_s2 = scalar_select %p1005_p1, %s10578_s18, %s1007_s28  }
  0x7a   : > { %p10899_p5 = por %p1018_p2, %p1017_p0  ;;  %p10903_p6 = por %p1024_p4, %p1023_p3 }
  0x7b   : > { %11934 = sst [smem:[#allocation54_spill]] %s10897_s2  ;;  %p9112_p7 = scmp.ge.s32.totalorder %s10582_s22, 1 }
  0x7c   : > { %s11935_s7 = scalar_select %p10899_p5, 1, 0 }
  0x7d   : > { %s11937_s10 = scalar_select %p10903_p6, 1, 0 }
  0x7e   : > { %11936 = sst [smem:[#allocation55_spill]] %s11935_s7  ;;  %p1182_p8 = scmp.lt.s32.totalorder %s10582_s22, 3 }
  0x7f   : > { %11938 = sst [smem:[#allocation56_spill]] %s11937_s10 }
  0x80   : > { %p1183_p9 = pnand %p9112_p7, %p1182_p8 }
  0x81   : > { %v1324_v0 = vld [vmem:[%s11927_s21] sm:$0xff] (!%p1183_p9)  ;;  %v1325_v1 = vld [vmem:[%s11927_s21 + $0x8] sm:$0xff] (!%p1183_p9)  ;;  %v1326_v2 = vld [vmem:[%s11927_s21 + $0x10] sm:$0xff] (!%p1183_p9)  ;;  %s11939_s5 = sld [smem:[#allocation5_spill]] (!%p1183_p9)  ;;  %v10626_v3 = vmov (!%p1183_p9), 0.0|0.0   ;;  %vm10627_vm0 = vmmov (!%p1183_p9), 0  }
  0x82   : > { %1186 = sbr.rel (%p1183_p9) target bundleno = 21856 (0x5560), region = 188  ;;  %10179 = vmatprep.subr.bf16.mxu0 (!%p1183_p9), %v10626_v3  ;;  %v10180_v4 = vpack.c.bf16 (!%p1183_p9), %v1325_v1, %v1324_v0  ;;  %v1327_v5 = vld [vmem:[%s11927_s21 + $0x18] sm:$0xff] (!%p1183_p9)  ;;  %v10628_v6 = vmov (!%p1183_p9), 0.0   ;;  %p1293_p10 = scmp.lt.s32.totalorder (!%p1183_p9), %s10882_s0, 1  ;;  %vm1335_vm1 = vcmask (!%p1183_p9), 261120   ;;  %vm1423_vm2 = vcmask (!%p1183_p9), 64512  }
  0x83   : > { %9608 = vmatprep.mubr.msk.f32.mxu0 (!%p1183_p9), %vm10627_vm0, %v10628_v6  ;;  %9611 = vmatprep.subr.mxu1 (!%p1183_p9), %v10628_v6  ;;  %v10183_v7 = vpack.c.bf16 (!%p1183_p9), %v1327_v5, %v1326_v2  ;;  %v9117_v9 = vld [vmem:[%s11926_s25] ss:$0 sm:$0xff] (!%p1183_p9)  ;;  %s11940_s13 = sld [smem:[#allocation7_spill]] (!%p1183_p9)  ;;  %s11827_s1 = smov (!%p1183_p9), 64   ;;  %v1410_v50 = vld [vmem:[%s11924_s29 + $0x8] sm:$0xff] (!%p1183_p9)  ;;  %vm2513_vm3 = vcmask (!%p1183_p9), 523264  }
  0x84   : > { %9613 = vmatprep.mubr.msk.f32.mxu1 (!%p1183_p9), %vm10627_vm0, %v10628_v6  ;;  %10181 = vmatpush3.bf16.msra.mxu0 (!%p1183_p9), %v10180_v4  ;;  %v1409_v25 = vld [vmem:[%s11924_s29] sm:$0xff] (!%p1183_p9)  ;;  %s11948_s2 = smov (!%p1183_p9), 48   ;;  %s11949_s18 = smov (!%p1183_p9), 72  }
  0x85   : > { %10182 = vmatprep.subr.bf16.mxu0 (!%p1183_p9), %v10626_v3  ;;  %v9124_v63 = vld [vmem:[%s11925_s3] ss:$0 sm:$0xff] (!%p1183_p9)  ;;  %s11950_s26 = smov (!%p1183_p9), 104   ;;  %s11968_s15 = sld [smem:[#allocation30_spill]] (!%p1183_p9) }
  0x86   : > { %s11972_s22 = sld [smem:[#allocation39_spill]] (!%p1183_p9)  ;;  %s11974_s4 = sld [smem:[#allocation33_spill]] (!%p1183_p9) }
  0x87   : > { %s11977_s16 = sld [smem:[#allocation40_spill]] (!%p1183_p9) }
  0x88   : > { %10184 = vmatpush3.bf16.msra.mxu0 (!%p1183_p9), %v10183_v7 }
  0x89   : > { %s10921_s11 = scalar_select %p1293_p10, %s10882_s0, 1  ;;  %9621 = vmatprep.subr.mxu0 %v10628_v6 }
  0x8b   : > { %s11826_s23 = sshll.u32 %s10921_s11, 3  ;;  %s11969_s7 = smov %s11968_s15 }
  0x8c   : > { %s1296_s28 = scalar_lea.vmem %s11939_s5, %s11826_s23  ;;  %s11829_s23 = smov 88  }
  0x8d   : > { %v10928_v8 = vld [vmem:[%s1296_s28] sm:$0xff]  ;;  %s11831_s28 = smov 96   ;;  %s11944_s5 = smov 120  }
  0x8e   : > { %9609 = vmatmul.mubr.msk.f32.vlgmr.msra.gmra.mrb[0].mxu0 %vm1335_vm1, %v10928_v8  ;;  %s11973_s0 = smov %s11972_s22 }
  0x8f   : > { %9623 = vmatprep.mubr.msk.f32.mxu0 %vm10627_vm0, %v10628_v6  ;;  %9622 = vmatpush3.msra.mxu0 %v1409_v25 }
  0x90   : > { %9631 = vmatprep.subr.mxu0 %v10628_v6 }
 0x161   : > { %v1405_v10 = vpop.f32.mrb[0].mxu0 }
 0x162   : > { %v10936_v11 = vadd.f32 %v9117_v9, %v1405_v10  ;;  %v9610_v12 = vpop.f32.mrb[1].mxu0 }
 0x164   : > { %1509 = vrot.lane.b32.xlu1 %v10936_v11, %s11827_s1  ;;  %1421 = vrot.lane.b32.xlu0 %v10936_v11, %s11831_s28  ;;  %s1303_s1 = scalar_lea.vmem %s11940_s13, %s10921_s11  ;;  %s11833_s28 = smov 80  }
 0x165   : > { %v10953_v15 = vld [vmem:[%s1303_s1] ss:$0 sm:$0xff]  ;;  %s11839_s1 = smov 120   ;;  %s11945_s13 = smov 56  }
 0x168   : > { %1667 = vrot.lane.b32.xlu1 %v10936_v11, %s11829_s23  ;;  %s11837_s23 = smov 56  }
 0x1d6   : > { %v1422_v13 = vpop.permute.xlu0 %1421  ;;  %v1510_v14 = vpop.permute.xlu1 %1509 }
 0x1d7   : > { %9612 = vmatpush3.xpose.msk.msra.mxu1 %vm1423_vm2, %v1422_v13  ;;  %v1411_v13 = vld [vmem:[%s11924_s29 + $0x10] sm:$0xff] }
 0x1d8   : > { %9616 = vmatprep.subr.mxu1 %v10628_v6 }
 0x1da   : > { %9614 = vmatmul.mubr.msk.f32.vlgmr.msra.gmra.mrb[0].mxu1 %vm1423_vm2, %v10936_v11  ;;  %v1668_v26 = vpop.permute.xlu1 %1667 }
 0x1db   : > { %9617 = vmatpush3.msra.mxu1 %v1510_v14  ;;  %9618 = vmatprep.mubr.msk.f32.mxu1 %vm10627_vm0, %v10628_v6 }
 0x1dc   : > { %9626 = vmatprep.subr.mxu1 %v10628_v6 }
 0x2ad   : > { %v1494_v16 = vpop.f32.mrb[0].mxu1 }
 0x2ae   : > { %v1495_v17 = vadd.f32 %v10953_v15, %v1494_v16  ;;  %v9615_v18 = vpop.f32.mrb[1].mxu1 }
 0x2b0   : > { %v1498_v19 = vsel %vm1423_vm2, %v1495_v17, -inf }
 0x2b1   : > { %1499 = vmax.xlane.f32.xlu0 %v1498_v19 }
 0x2c7   : > { %1754 = vrot.lane.b32.xlu0 %v10936_v11, %s11837_s23  ;;  %s11845_s23 = smov 72  }
 0x2cb   : > { %1906 = vrot.lane.b32.xlu0 %v10936_v11, %s11833_s28  ;;  %s11835_s28 = smov 112  }
 0x33e   : > { %v1500_v20 = vpop.xlane.xlu0 %1499 }
 0x33f   : > { %v1501_v21 = vsub.f32 %v1495_v17, %v1500_v20 }
 0x341   : > { %v1502_v22 = vmul.f32 1.442695, %v1501_v21 }
 0x342   : > { %v1755_v32 = vpop.permute.xlu0 %1754 }
 0x343   : > { %10400 = vpow2.f32 %v1502_v22 }
 0x346   : > { %v1907_v45 = vpop.permute.xlu0 %1906 }
 0x34d   : > { %v10401_v23 = vpop.eup %10400 }
 0x34e   : > { %v1504_v24 = vsel %vm1423_vm2, %v10401_v23, 0.0 }
 0x34f   : > { %1505 = vadd.xlane.f32.xlu1 %v1504_v24 }
 0x360   : > { %1665 = vrot.lane.b32.xlu1 %v10936_v11, %s11839_s1  ;;  %s11841_s1 = smov 104  }
 0x3dc   : > { %v1506_v27 = vpop.xlane.xlu1 %1505 }
 0x3dd   : > { %10402 = vrcp.f32 %v1506_v27 }
 0x3e0   : > { %v1666_v30 = vpop.permute.xlu1 %1665 }
 0x3e7   : > { %v10403_v28 = vpop.eup %10402 }
 0x3e8   : > { %v1508_v29 = vmul.f32 %v10403_v28, %v10401_v23 }
 0x3ea   : > { %9619 = vmatmul.mubr.msk.f32.vlgmr.msra.gmra.mrb[2].mxu1 %vm1423_vm2, %v1508_v29 }
 0x3eb   : > { %9627 = vmatpush3.xpose.msk.msra.mxu1 %vm1423_vm2, %v1668_v26  ;;  %9628 = vmatprep.mubr.msk.f32.mxu1 %vm10627_vm0, %v10628_v6  ;;  %v1412_v26 = vld [vmem:[%s11924_s29 + $0x18] sm:$0xff] }
 0x3ec   : > { %9636 = vmatprep.subr.mxu1 %v10628_v6 }
 0x3ee   : > { %9629 = vmatmul.mubr.msk.f32.vlgmr.msra.gmra.mrb[4].mxu1 %vm1423_vm2, %v1666_v30 }
 0x3ef   : > { %9638 = vmatprep.mubr.msk.f32.mxu1 %vm10627_vm0, %v10628_v6  ;;  %9637 = vmatpush3.msra.mxu1 %v1410_v50  ;;  %v2498_v50 = vld [vmem:[%s11916_s30] sm:$0xff] }
 0x3f0   : > { %9646 = vmatprep.subr.mxu1 %v10628_v6 }
 0x4bd   : > { %v1581_v31 = vpop.f32.mrb[2].mxu1 }
 0x4be   : > { %v9620_v33 = vpop.f32.mrb[3].mxu1  ;;  %9624 = vmatmul.mubr.msk.f32.vlgmr.msra.gmra.mrb[2].mxu0 %vm1423_vm2, %v1581_v31 }
 0x4bf   : > { %9632 = vmatpush3.msra.mxu0 %v1755_v32  ;;  %9633 = vmatprep.mubr.msk.f32.mxu0 %vm10627_vm0, %v10628_v6 }
 0x4c0   : > { %9641 = vmatprep.subr.mxu0 %v10628_v6 }
 0x4c1   : > { %v1739_v34 = vpop.f32.mrb[4].mxu1 }
 0x4c2   : > { %v1740_v35 = vadd.f32 %v10953_v15, %v1739_v34  ;;  %v9630_v36 = vpop.f32.mrb[5].mxu1 }
 0x4c4   : > { %v1743_v37 = vsel %vm1423_vm2, %v1740_v35, -inf }
 0x4c5   : > { %1744 = vmax.xlane.f32.xlu1 %v1743_v37 }
 0x552   : > { %v1745_v38 = vpop.xlane.xlu1 %1744 }
 0x553   : > { %v1746_v39 = vsub.f32 %v1740_v35, %v1745_v38 }
 0x555   : > { %v1747_v40 = vmul.f32 1.442695, %v1746_v39 }
 0x557   : > { %10404 = vpow2.f32 %v1747_v40 }
 0x561   : > { %v10405_v41 = vpop.eup %10404 }
 0x562   : > { %v1749_v42 = vsel %vm1423_vm2, %v10405_v41, 0.0 }
 0x563   : > { %1750 = vadd.xlane.f32.xlu0 %v1749_v42 }
 0x579   : > { %1904 = vrot.lane.b32.xlu0 %v10936_v11, %s11835_s28  ;;  %s11847_s28 = smov 48  }
 0x591   : > { %v1654_v43 = vpop.f32.mrb[2].mxu0 }
 0x592   : > { %v9625_v44 = vpop.f32.mrb[3].mxu0  ;;  %v1664_v0 = vadd.f32 %v9124_v63, %v1654_v43  ;;  %v9137_v63 = vld [vmem:[%s11922_s8] ss:$0 sm:$0xff] }
 0x5f0   : > { %v1751_v46 = vpop.xlane.xlu0 %1750 }
 0x5f1   : > { %10406 = vrcp.f32 %v1751_v46  ;;  %v2414_v46 = vld [vmem:[%s11923_s19 + $0x8] sm:$0xff] }
 0x5f4   : > { %v1905_v49 = vpop.permute.xlu0 %1904 }
 0x5fb   : > { %v10407_v47 = vpop.eup %10406 }
 0x5fc   : > { %v1753_v48 = vmul.f32 %v10407_v47, %v10405_v41 }
 0x5fe   : > { %9634 = vmatmul.mubr.msk.f32.vlgmr.msra.gmra.mrb[4].mxu0 %vm1423_vm2, %v1753_v48  ;;  %v2416_v48 = vld [vmem:[%s11923_s19 + $0x18] sm:$0xff] }
 0x5ff   : > { %9642 = vmatpush3.xpose.msk.msra.mxu0 %vm1423_vm2, %v1907_v45  ;;  %9643 = vmatprep.mubr.msk.f32.mxu0 %vm10627_vm0, %v10628_v6  ;;  %v2413_v45 = vld [vmem:[%s11923_s19] sm:$0xff] }
 0x600   : > { %9651 = vmatprep.subr.mxu0 %v10628_v6  ;;  %v10186_v47 = vpack.c.bf16 %v2414_v46, %v2413_v45 }
 0x602   : > { %9644 = vmatmul.mubr.msk.f32.vlgmr.msra.gmra.mrb[6].mxu0 %vm1423_vm2, %v1905_v49 }
 0x603   : > { %9653 = vmatprep.mubr.msk.f32.mxu0 %vm10627_vm0, %v10628_v6  ;;  %9652 = vmatpush3.msra.mxu0 %v1411_v13 }
 0x604   : > { %9661 = vmatprep.subr.mxu0 %v10628_v6 }
 0x6d1   : > { %v1826_v51 = vpop.f32.mrb[4].mxu0 }
 0x6d2   : > { %v9635_v52 = vpop.f32.mrb[5].mxu0  ;;  %9639 = vmatmul.mubr.msk.f32.vlgmr.msra.gmra.mrb[6].mxu1 %vm1423_vm2, %v1826_v51  ;;  %v2499_v51 = vld [vmem:[%s11916_s30 + $0x8] sm:$0xff] }
 0x6d3   : > { %9648 = vmatprep.mubr.msk.f32.mxu1 %vm10627_vm0, %v10628_v6  ;;  %v2500_v52 = vld [vmem:[%s11916_s30 + $0x10] sm:$0xff] }
 0x6d5   : > { %v1978_v53 = vpop.f32.mrb[6].mxu0 }
 0x6d6   : > { %v1979_v54 = vadd.f32 %v10953_v15, %v1978_v53  ;;  %v9645_v55 = vpop.f32.mrb[7].mxu0  ;;  %v10192_v53 = vpack.c.bf16 %v2499_v51, %v2498_v50 }
 0x6d8   : > { %v1982_v56 = vsel %vm1423_vm2, %v1979_v54, -inf }
 0x6d9   : > { %1983 = vmax.xlane.f32.xlu1 %v1982_v56  ;;  %v2502_v56 = vld [vmem:[%s11916_s30 + $0x20] sm:$0xff] }
 0x6ea   : > { %1993 = vrot.lane.b32.xlu1 %v10936_v11, %s11847_s28  ;;  %s11943_s28 = smov 88  }
 0x6ee   : > { %2145 = vrot.lane.b32.xlu1 %v10936_v11, %s11845_s23  ;;  %s11942_s23 = smov 64  }
 0x6f2   : > { %2143 = vrot.lane.b32.xlu1 %v10936_v11, %s11841_s1  ;;  %s11843_s1 = smov 40  }
 0x766   : > { %v1984_v57 = vpop.xlane.xlu1 %1983 }
 0x767   : > { %v1985_v58 = vsub.f32 %v1979_v54, %v1984_v57  ;;  %v2501_v54 = vld [vmem:[%s11916_s30 + $0x18] sm:$0xff]  ;;  %v2503_v57 = vld [vmem:[%s11916_s30 + $0x28] sm:$0xff] }
 0x768   : > { %v10195_v55 = vpack.c.bf16 %v2501_v54, %v2500_v52 }
 0x769   : > { %v1986_v59 = vmul.f32 1.442695, %v1985_v58  ;;  %v10198_v58 = vpack.c.bf16 %v2503_v57, %v2502_v56  ;;  %v9152_v56 = vld [vmem:[%s11924_s29 + $0x20] sm:$0xff] }
 0x76a   : > { %v1994_v60 = vpop.permute.xlu1 %1993 }
 0x76b   : > { %10408 = vpow2.f32 %v1986_v59  ;;  %9647 = vmatpush3.msra.mxu1 %v1994_v60 }
 0x76c   : > { %9656 = vmatprep.subr.mxu1 %v10628_v6 }
 0x76e   : > { %v2146_v9 = vpop.permute.xlu1 %2145 }
 0x772   : > { %v2144_v12 = vpop.permute.xlu1 %2143 }
 0x775   : > { %v10409_v61 = vpop.eup %10408 }
 0x776   : > { %v1988_v62 = vsel %vm1423_vm2, %v10409_v61, 0.0 }
 0x777   : > { %1989 = vadd.xlane.f32.xlu0 %v1988_v62 }
 0x7a5   : > { %v1899_v1 = vpop.f32.mrb[6].mxu1 }
 0x7a6   : > { %v1903_v2 = vadd.f32 %v1899_v1, %v1664_v0  ;;  %v9640_v4 = vpop.f32.mrb[7].mxu1  ;;  %v9138_v1 = vld [vmem:[%s11921_s14] ss:$0 sm:$0xff] }
 0x804   : > { %v1990_v5 = vpop.xlane.xlu0 %1989 }
 0x805   : > { %10410 = vrcp.f32 %v1990_v5  ;;  %v2504_v5 = vld [vmem:[%s11916_s30 + $0x30] sm:$0xff] }
 0x80f   : > { %v10411_v7 = vpop.eup %10410 }
 0x810   : > { %v1992_v10 = vmul.f32 %v10411_v7, %v10409_v61  ;;  %v2505_v7 = vld [vmem:[%s11916_s30 + $0x38] sm:$0xff] }
 0x812   : > { %9649 = vmatmul.mubr.msk.f32.vlgmr.msra.gmra.mrb[8].mxu1 %vm1423_vm2, %v1992_v10  ;;  %v9139_v10 = vld [vmem:[%s11917_s24] ss:$0 sm:$0xff] }
 0x813   : > { %9657 = vmatpush3.xpose.msk.msra.mxu1 %vm1423_vm2, %v2146_v9  ;;  %9658 = vmatprep.mubr.msk.f32.mxu1 %vm10627_vm0, %v10628_v6  ;;  %v10201_v9 = vpack.c.bf16 %v2505_v7, %v2504_v5 }
 0x814   : > { %9666 = vmatprep.subr.mxu1 %v10628_v6 }
 0x816   : > { %9659 = vmatmul.mubr.msk.f32.vlgmr.msra.gmra.mrb[10].mxu1 %vm1423_vm2, %v2144_v12 }
 0x817   : > { %9668 = vmatprep.mubr.msk.f32.mxu1 %vm10627_vm0, %v10628_v6  ;;  %9667 = vmatpush3.msra.mxu1 %v1412_v26 }
 0x818   : > { %10191 = vmatprep.subr.bf16.mxu1 %v10626_v3 }
 0x8e5   : > { %v2065_v14 = vpop.f32.mrb[8].mxu1 }
 0x8e6   : > { %v9650_v16 = vpop.f32.mrb[9].mxu1  ;;  %9654 = vmatmul.mubr.msk.f32.vlgmr.msra.gmra.mrb[8].mxu0 %vm1423_vm2, %v2065_v14 }
 0x8e7   : > { %9663 = vmatprep.mubr.msk.f32.mxu0 %vm10627_vm0, %v10628_v6 }
 0x8e9   : > { %v2217_v17 = vpop.f32.mrb[10].mxu1 }
 0x8ea   : > { %v2218_v18 = vadd.f32 %v10953_v15, %v2217_v17  ;;  %v9660_v19 = vpop.f32.mrb[11].mxu1  ;;  %v9141_v17 = vld [vmem:[%s11920_s6] ss:$0 sm:$0xff] }
 0x8ec   : > { %v2221_v20 = vsel %vm1423_vm2, %v2218_v18, -inf }
 0x8ed   : > { %2222 = vmax.xlane.f32.xlu1 %v2221_v20 }
 0x97a   : > { %v2223_v21 = vpop.xlane.xlu1 %2222 }
 0x97b   : > { %v2224_v22 = vsub.f32 %v2218_v18, %v2223_v21 }
 0x97d   : > { %v2225_v23 = vmul.f32 1.442695, %v2224_v22 }
 0x97f   : > { %10412 = vpow2.f32 %v2225_v23 }
 0x989   : > { %v10413_v24 = vpop.eup %10412 }
 0x98a   : > { %v2227_v25 = vsel %vm1423_vm2, %v10413_v24, 0.0 }
 0x98b   : > { %2228 = vadd.xlane.f32.xlu0 %v2227_v25 }
 0x9a1   : > { %2232 = vrot.lane.b32.xlu0 %v10936_v11, %s11843_s1  ;;  %s11941_s1 = smov 96  }
 0x9b9   : > { %v2138_v27 = vpop.f32.mrb[8].mxu0 }
 0x9ba   : > { %v2142_v28 = vadd.f32 %v2138_v27, %v1903_v2  ;;  %v9655_v29 = vpop.f32.mrb[9].mxu0 }
 0x9bb   : > { %v9146_v29 = vld [vmem:[%s11927_s21 + $0x28] sm:$0xff] }
 0xa18   : > { %v2229_v30 = vpop.xlane.xlu0 %2228 }
 0xa19   : > { %10414 = vrcp.f32 %v2229_v30 }
 0xa1c   : > { %v2233_v31 = vpop.permute.xlu0 %2232 }
 0xa1d   : > { %9662 = vmatpush3.msra.mxu0 %v2233_v31  ;;  %v9147_v31 = vld [vmem:[%s11927_s21 + $0x30] sm:$0xff] }
 0xa1e   : > { %10185 = vmatprep.subr.bf16.mxu0 %v10626_v3 }
 0xa23   : > { %v10415_v32 = vpop.eup %10414 }
 0xa24   : > { %v2231_v33 = vmul.f32 %v10415_v32, %v10413_v24  ;;  %v9148_v32 = vld [vmem:[%s11927_s21 + $0x38] sm:$0xff] }
 0xa26   : > { %9664 = vmatmul.mubr.msk.f32.vlgmr.msra.gmra.mrb[10].mxu0 %vm1423_vm2, %v2231_v33  ;;  %v10207_v33 = vpack.c.bf16 %v9148_v32, %v9147_v31 }
 0xa27   : > { %9679 = vmatprep.mubr.msk.f32.mxu0 %vm10627_vm0, %v10628_v6  ;;  %10187 = vmatpush3.bf16.msra.mxu0 %v10186_v47 }
 0xa28   : > { %10188 = vmatprep.subr.bf16.mxu0 %v10626_v3 }
 0xaf9   : > { %v2304_v11 = vpop.f32.mrb[10].mxu0 }
 0xafa   : > { %v9665_v34 = vpop.f32.mrb[11].mxu0  ;;  %9669 = vmatmul.mubr.msk.f32.vlgmr.msra.gmra.mrb[12].mxu1 %vm1423_vm2, %v2304_v11 }
 0xafb   : > { %9698 = vmatprep.mubr.msk.f32.mxu1 %vm10627_vm0, %v10628_v6  ;;  %10193 = vmatpush3.bf16.msra.mxu1 %v10192_v53 }
 0xafc   : > { %10194 = vmatprep.subr.bf16.mxu1 %v10626_v3 }
 0xaff   : > { %10196 = vmatpush3.bf16.msra.mxu1 %v10195_v55 }
 0xb00   : > { %10197 = vmatprep.subr.bf16.mxu1 %v10626_v3 }
 0xb03   : > { %10199 = vmatpush3.bf16.msra.mxu1 %v10198_v58 }
 0xb04   : > { %10200 = vmatprep.subr.bf16.mxu1 %v10626_v3 }
 0xb07   : > { %10202 = vmatpush3.bf16.msra.mxu1 %v10201_v9 }
 0xb08   : > { %9717 = vmatprep.subr.mxu1 %v10628_v6 }
 0xbcd   : > { %v2377_v35 = vpop.f32.mrb[12].mxu1 }
 0xbce   : > { %v2381_v36 = vadd.f32 %v2377_v35, %v2142_v28  ;;  %v9670_v37 = vpop.f32.mrb[13].mxu1  ;;  %v9145_v28 = vld [vmem:[%s11927_s21 + $0x20] sm:$0xff]  ;;  %s11946_s21 = smov 80  }
 0xbcf   : > { %v10204_v30 = vpack.c.bf16 %v9146_v29, %v9145_v28  ;;  %v9143_v37 = vld [vmem:[%s11919_s12] ss:$0 sm:$0xff] }
 0xbd0   : > { %v2382_v38 = vadd.f32 %v2381_v36, %v10928_v8  ;;  %v2415_v8 = vld [vmem:[%s11923_s19 + $0x10] sm:$0xff] }
 0xbd1   : > { %v10189_v49 = vpack.c.bf16 %v2416_v48, %v2415_v8 }
 0xbd2   : > { %v2385_v39 = vsel %vm1335_vm1, %v2382_v38, 0.0 }
 0xbd3   : > { %2386 = vadd.xlane.f32.xlu0 %v2385_v39  ;;  %10190 = vmatpush3.bf16.msra.mxu0 %v10189_v49  ;;  %v9144_v39 = vld [vmem:[%s11918_s20] ss:$0 sm:$0xff] }
 0xbd4   : > { %10203 = vmatprep.subr.bf16.mxu0 %v10626_v3 }
 0xc60   : > { %v2387_v40 = vpop.xlane.xlu0 %2386 }
 0xc61   : > { %v2389_v41 = vmul.f32 0.03125, %v2387_v40 }
 0xc63   : > { %v2390_v42 = vsub.f32 %v2382_v38, %v2389_v41 }
 0xc65   : > { %v2391_v43 = vmul.f32 %v2390_v42, %v2390_v42 }
 0xc67   : > { %v2392_v44 = vsel %vm1335_vm1, %v2391_v43, 0.0 }
 0xc68   : > { %2393 = vadd.xlane.f32.xlu1 %v2392_v44 }
 0xcf5   : > { %v2394_v59 = vpop.xlane.xlu1 %2393 }
 0xcf6   : > { %v2395_v60 = vmul.f32 0.03125, %v2394_v59 }
 0xcf8   : > { %v2396_v61 = vadd.f32 1e-05, %v2395_v60 }
 0xcfa   : > { %10416 = vrsqrt.f32 %v2396_v61 }
 0xd04   : > { %v10417_v62 = vpop.eup %10416 }
 0xd05   : > { %v2398_v0 = vmul.f32 %v10417_v62, %v2390_v42  ;;  %v9150_v42 = vld [vmem:[%s11926_s25 + $0x1] ss:$0 sm:$0xff]  ;;  %s11947_s25 = smov 112  }
 0xd07   : > { %v2405_v2 = vmul.f32 %v9137_v63, %v2398_v0 }
 0xd09   : > { %v2412_v4 = vadd.f32 %v9138_v1, %v2405_v2 }
 0xd0b   : > { %9680 = vmatmul.mubr.msk.f32.vlgmr.msra.gmra.mrb[12].mxu0 %vm1335_vm1, %v2412_v4 }
 0xd0c   : > { %9709 = vmatprep.mubr.msk.f32.mxu0 %vm10627_vm0, %v10628_v6  ;;  %10205 = vmatpush3.bf16.msra.mxu0 %v10204_v30 }
 0xd0d   : > { %10206 = vmatprep.subr.bf16.mxu0 %v10626_v3 }
 0xd10   : > { %10208 = vmatpush3.bf16.msra.mxu0 %v10207_v33 }
 0xd11   : > { %9712 = vmatprep.subr.mxu0 %v10628_v6 }
 0xdde   : > { %v2493_v12 = vpop.f32.mrb[12].mxu0 }
 0xddf   : > { %v2494_v13 = vadd.f32 %v9139_v10, %v2493_v12  ;;  %v9681_v14 = vpop.f32.mrb[13].mxu0 }
 0xde1   : > { %v2497_v16 = vmax.f32 %v2494_v13, 0.0 }
 0xde3   : > { %9699 = vmatmul.mubr.msk.f32.vlgmr.msra.gmra.mrb[14].mxu1 %vm2513_vm3, %v2497_v16 }
 0xde4   : > { %9719 = vmatprep.mubr.msk.f32.mxu1 %vm10627_vm0, %v10628_v6 }
 0xeb6   : > { %v2583_v18 = vpop.f32.mrb[14].mxu1 }
 0xeb7   : > { %v2584_v19 = vadd.f32 %v9141_v17, %v2583_v18  ;;  %v9700_v20 = vpop.f32.mrb[15].mxu1 }
 0xeb9   : > { %v2587_v21 = vadd.f32 %v2584_v19, %v2412_v4 }
 0xebb   : > { %v2590_v22 = vsel %vm1335_vm1, %v2587_v21, 0.0 }
 0xebc   : > { %2591 = vadd.xlane.f32.xlu1 %v2590_v22  ;;  %v9153_v22 = vld [vmem:[%s11924_s29 + $0x28] sm:$0xff] }
 0xf49   : > { %v2592_v23 = vpop.xlane.xlu1 %2591 }
 0xf4a   : > { %v2593_v24 = vmul.f32 0.03125, %v2592_v23 }
 0xf4c   : > { %v2594_v25 = vsub.f32 %v2587_v21, %v2593_v24 }
 0xf4e   : > { %v2595_v26 = vmul.f32 %v2594_v25, %v2594_v25 }
 0xf50   : > { %v2596_v27 = vsel %vm1335_vm1, %v2595_v26, 0.0 }
 0xf51   : > { %2597 = vadd.xlane.f32.xlu1 %v2596_v27 }
 0xfde   : > { %v2598_v11 = vpop.xlane.xlu1 %2597 }
 0xfdf   : > { %v2599_v34 = vmul.f32 0.03125, %v2598_v11 }
 0xfe1   : > { %v2600_v35 = vadd.f32 1e-05, %v2599_v34  ;;  %v9161_v34 = vld [vmem:[%s11925_s3 + $0x1] ss:$0 sm:$0xff]  ;;  %s11951_s3 = smov 40  }
 0xfe3   : > { %10418 = vrsqrt.f32 %v2600_v35 }
 0xfed   : > { %v10419_v36 = vpop.eup %10418 }
 0xfee   : > { %v2602_v38 = vmul.f32 %v10419_v36, %v2594_v25 }
 0xff0   : > { %v2609_v40 = vmul.f32 %v9143_v37, %v2602_v38 }
 0xff2   : > { %v11075_v41 = vadd.f32 %v9144_v39, %v2609_v40 }
 0xff4   : > { %9710 = vmatmul.mubr.msk.f32.vlgmr.msra.gmra.mrb[14].mxu0 %vm1335_vm1, %v11075_v41 }
 0xff5   : > { %9714 = vmatprep.mubr.msk.f32.mxu0 %vm10627_vm0, %v10628_v6 }
0x10c7   : > { %v2699_v43 = vpop.f32.mrb[14].mxu0 }
0x10c8   : > { %v11082_v44 = vadd.f32 %v9150_v42, %v2699_v43  ;;  %v9711_v45 = vpop.f32.mrb[15].mxu0 }
0x10ca   : > { %2711 = vrot.lane.b32.xlu1 %v11082_v44, %s11941_s1 }
0x113c   : > { %v2712_v46 = vpop.permute.xlu1 %2711 }
0x113d   : > { %9713 = vmatpush3.xpose.msk.msra.mxu0 %vm1423_vm2, %v2712_v46  ;;  %v9154_v46 = vld [vmem:[%s11924_s29 + $0x30] sm:$0xff] }
0x113e   : > { %9722 = vmatprep.subr.mxu0 %v10628_v6 }
0x1140   : > { %9715 = vmatmul.mubr.msk.f32.vlgmr.msra.gmra.mrb[16].mxu0 %vm1423_vm2, %v11082_v44 }
0x1141   : > { %9724 = vmatprep.mubr.msk.f32.mxu0 %vm10627_vm0, %v10628_v6  ;;  %9723 = vmatpush3.msra.mxu0 %v9152_v56 }
0x1142   : > { %9732 = vmatprep.subr.mxu0 %v10628_v6 }
0x1213   : > { %v2783_v47 = vpop.f32.mrb[16].mxu0 }
0x1214   : > { %v2784_v8 = vadd.f32 %v10953_v15, %v2783_v47  ;;  %v9716_v48 = vpop.f32.mrb[17].mxu0 }
0x1216   : > { %v2787_v49 = vsel %vm1423_vm2, %v2784_v8, -inf }
0x1217   : > { %2788 = vmax.xlane.f32.xlu0 %v2787_v49 }
0x122d   : > { %2798 = vrot.lane.b32.xlu0 %v11082_v44, %s11942_s23 }
0x1231   : > { %2956 = vrot.lane.b32.xlu0 %v11082_v44, %s11943_s28 }
0x1235   : > { %2954 = vrot.lane.b32.xlu0 %v11082_v44, %s11944_s5 }
0x12a4   : > { %v2789_v50 = vpop.xlane.xlu0 %2788 }
0x12a5   : > { %v2790_v51 = vsub.f32 %v2784_v8, %v2789_v50 }
0x12a7   : > { %v2791_v52 = vmul.f32 1.442695, %v2790_v51 }
0x12a8   : > { %v2799_v53 = vpop.permute.xlu0 %2798 }
0x12a9   : > { %10420 = vpow2.f32 %v2791_v52  ;;  %9718 = vmatpush3.msra.mxu1 %v2799_v53 }
0x12aa   : > { %9727 = vmatprep.subr.mxu1 %v10628_v6 }
0x12ac   : > { %v2957_v59 = vpop.permute.xlu0 %2956 }
0x12b0   : > { %v2955_v61 = vpop.permute.xlu0 %2954 }
0x12b3   : > { %v10421_v54 = vpop.eup %10420 }
0x12b4   : > { %v2793_v55 = vsel %vm1423_vm2, %v10421_v54, 0.0 }
0x12b5   : > { %2794 = vadd.xlane.f32.xlu1 %v2793_v55 }
0x12c6   : > { %3043 = vrot.lane.b32.xlu1 %v11082_v44, %s11945_s13 }
0x12ca   : > { %3195 = vrot.lane.b32.xlu1 %v11082_v44, %s11946_s21 }
0x1342   : > { %v2795_v57 = vpop.xlane.xlu1 %2794 }
0x1343   : > { %10422 = vrcp.f32 %v2795_v57  ;;  %v9155_v57 = vld [vmem:[%s11924_s29 + $0x38] sm:$0xff]  ;;  %s11952_s29 = sld [smem:[#allocation21_spill]] }
0x1346   : > { %v3044_v63 = vpop.permute.xlu1 %3043 }
0x134a   : > { %v3196_v17 = vpop.permute.xlu1 %3195 }
0x134d   : > { %v10423_v58 = vpop.eup %10422 }
0x134e   : > { %v2797_v60 = vmul.f32 %v10423_v58, %v10421_v54 }
0x1350   : > { %9720 = vmatmul.mubr.msk.f32.vlgmr.msra.gmra.mrb[16].mxu1 %vm1423_vm2, %v2797_v60 }
0x1351   : > { %9728 = vmatpush3.xpose.msk.msra.mxu1 %vm1423_vm2, %v2957_v59  ;;  %9729 = vmatprep.mubr.msk.f32.mxu1 %vm10627_vm0, %v10628_v6 }
0x1352   : > { %9737 = vmatprep.subr.mxu1 %v10628_v6 }
0x1354   : > { %9730 = vmatmul.mubr.msk.f32.vlgmr.msra.gmra.mrb[18].mxu1 %vm1423_vm2, %v2955_v61 }
0x1355   : > { %9739 = vmatprep.mubr.msk.f32.mxu1 %vm10627_vm0, %v10628_v6  ;;  %9738 = vmatpush3.msra.mxu1 %v9153_v22  ;;  %v9186_v22 = vld [vmem:[%s11916_s30 + $0x48] sm:$0xff] }
0x1356   : > { %9747 = vmatprep.subr.mxu1 %v10628_v6 }
0x1423   : > { %v2870_v62 = vpop.f32.mrb[16].mxu1 }
0x1424   : > { %v9721_v0 = vpop.f32.mrb[17].mxu1  ;;  %9725 = vmatmul.mubr.msk.f32.vlgmr.msra.gmra.mrb[18].mxu0 %vm1423_vm2, %v2870_v62 }
0x1425   : > { %9733 = vmatpush3.msra.mxu0 %v3044_v63  ;;  %9734 = vmatprep.mubr.msk.f32.mxu0 %vm10627_vm0, %v10628_v6 }
0x1426   : > { %9742 = vmatprep.subr.mxu0 %v10628_v6 }
0x1427   : > { %v3028_v1 = vpop.f32.mrb[18].mxu1 }
0x1428   : > { %v3029_v2 = vadd.f32 %v10953_v15, %v3028_v1  ;;  %v9731_v4 = vpop.f32.mrb[19].mxu1 }
0x142a   : > { %v3032_v5 = vsel %vm1423_vm2, %v3029_v2, -inf }
0x142b   : > { %3033 = vmax.xlane.f32.xlu0 %v3032_v5 }
0x14b8   : > { %v3034_v7 = vpop.xlane.xlu0 %3033 }
0x14b9   : > { %v3035_v9 = vsub.f32 %v3029_v2, %v3034_v7 }
0x14bb   : > { %v3036_v10 = vmul.f32 1.442695, %v3035_v9 }
0x14bd   : > { %10424 = vpow2.f32 %v3036_v10 }
0x14c7   : > { %v10425_v12 = vpop.eup %10424 }
0x14c8   : > { %v3038_v13 = vsel %vm1423_vm2, %v10425_v12, 0.0 }
0x14c9   : > { %3039 = vadd.xlane.f32.xlu1 %v3038_v13 }
0x14da   : > { %3193 = vrot.lane.b32.xlu1 %v11082_v44, %s11947_s25 }
0x14f7   : > { %v2943_v14 = vpop.f32.mrb[18].mxu0 }
0x14f8   : > { %v9726_v16 = vpop.f32.mrb[19].mxu0  ;;  %v2953_v35 = vadd.f32 %v9161_v34, %v2943_v14 }
0x14f9   : > { %v9178_v16 = vld [vmem:[%s11923_s19 + $0x20] sm:$0xff] }
0x1556   : > { %v3040_v18 = vpop.xlane.xlu1 %3039 }
0x1557   : > { %10426 = vrcp.f32 %v3040_v18 }
0x155a   : > { %v3194_v21 = vpop.permute.xlu1 %3193 }
0x1561   : > { %v10427_v19 = vpop.eup %10426 }
0x1562   : > { %v3042_v20 = vmul.f32 %v10427_v19, %v10425_v12  ;;  %v9181_v19 = vld [vmem:[%s11923_s19 + $0x38] sm:$0xff] }
0x1564   : > { %9735 = vmatmul.mubr.msk.f32.vlgmr.msra.gmra.mrb[20].mxu0 %vm1423_vm2, %v3042_v20 }
0x1565   : > { %9743 = vmatpush3.xpose.msk.msra.mxu0 %vm1423_vm2, %v3196_v17  ;;  %9744 = vmatprep.mubr.msk.f32.mxu0 %vm10627_vm0, %v10628_v6  ;;  %v9179_v17 = vld [vmem:[%s11923_s19 + $0x28] sm:$0xff] }
0x1566   : > { %9752 = vmatprep.subr.mxu0 %v10628_v6  ;;  %v10210_v18 = vpack.c.bf16 %v9179_v17, %v9178_v16 }
0x1568   : > { %9745 = vmatmul.mubr.msk.f32.vlgmr.msra.gmra.mrb[22].mxu0 %vm1423_vm2, %v3194_v21  ;;  %v9185_v21 = vld [vmem:[%s11916_s30 + $0x40] sm:$0xff] }
0x1569   : > { %9754 = vmatprep.mubr.msk.f32.mxu0 %vm10627_vm0, %v10628_v6  ;;  %9753 = vmatpush3.msra.mxu0 %v9154_v46 }
0x156a   : > { %9762 = vmatprep.subr.mxu0 %v10628_v6 }
0x1637   : > { %v3115_v23 = vpop.f32.mrb[20].mxu0 }
0x1638   : > { %v9736_v24 = vpop.f32.mrb[21].mxu0  ;;  %9740 = vmatmul.mubr.msk.f32.vlgmr.msra.gmra.mrb[20].mxu1 %vm1423_vm2, %v3115_v23  ;;  %v9187_v23 = vld [vmem:[%s11916_s30 + $0x50] sm:$0xff] }
0x1639   : > { %9749 = vmatprep.mubr.msk.f32.mxu1 %vm10627_vm0, %v10628_v6  ;;  %v10216_v24 = vpack.c.bf16 %v9186_v22, %v9185_v21 }
0x163b   : > { %v3267_v25 = vpop.f32.mrb[22].mxu0 }
0x163c   : > { %v3268_v26 = vadd.f32 %v10953_v15, %v3267_v25  ;;  %v9746_v27 = vpop.f32.mrb[23].mxu0  ;;  %v9188_v25 = vld [vmem:[%s11916_s30 + $0x58] sm:$0xff] }
0x163d   : > { %v9189_v27 = vld [vmem:[%s11916_s30 + $0x60] sm:$0xff] }
0x163e   : > { %v3271_v28 = vsel %vm1423_vm2, %v3268_v26, -inf }
0x163f   : > { %3272 = vmax.xlane.f32.xlu0 %v3271_v28  ;;  %v9190_v28 = vld [vmem:[%s11916_s30 + $0x68] sm:$0xff] }
0x1655   : > { %3282 = vrot.lane.b32.xlu0 %v11082_v44, %s11948_s2 }
0x1659   : > { %3434 = vrot.lane.b32.xlu0 %v11082_v44, %s11949_s18 }
0x165d   : > { %3432 = vrot.lane.b32.xlu0 %v11082_v44, %s11950_s26 }
0x16cc   : > { %v3273_v29 = vpop.xlane.xlu0 %3272 }
0x16cd   : > { %v3274_v30 = vsub.f32 %v3268_v26, %v3273_v29  ;;  %v10219_v26 = vpack.c.bf16 %v9188_v25, %v9187_v23  ;;  %v10222_v29 = vpack.c.bf16 %v9190_v28, %v9189_v27 }
0x16cf   : > { %v3275_v31 = vmul.f32 1.442695, %v3274_v30 }
0x16d0   : > { %v3283_v32 = vpop.permute.xlu0 %3282 }
0x16d1   : > { %10428 = vpow2.f32 %v3275_v31  ;;  %9748 = vmatpush3.msra.mxu1 %v3283_v32 }
0x16d2   : > { %9757 = vmatprep.subr.mxu1 %v10628_v6 }
0x16d4   : > { %v3435_v42 = vpop.permute.xlu0 %3434 }
0x16d8   : > { %v3433_v45 = vpop.permute.xlu0 %3432 }
0x16db   : > { %v10429_v33 = vpop.eup %10428 }
0x16dc   : > { %v3277_v11 = vsel %vm1423_vm2, %v10429_v33, 0.0 }
0x16dd   : > { %3278 = vadd.xlane.f32.xlu1 %v3277_v11  ;;  %v9176_v11 = vld [vmem:[%s11922_s8 + $0x1] ss:$0 sm:$0xff]  ;;  %s11954_s8 = sshll.u32 %s10921_s11, 3 }
0x170b   : > { %v3188_v36 = vpop.f32.mrb[20].mxu1 }
0x170c   : > { %v3192_v37 = vadd.f32 %v3188_v36, %v2953_v35  ;;  %v9741_v38 = vpop.f32.mrb[21].mxu1  ;;  %v3941_v35 = vld [vmem:[%s11952_s29] sm:$0xff]  ;;  %v3942_v36 = vld [vmem:[%s11952_s29 + $0x8] sm:$0xff] }
0x176a   : > { %v3279_v39 = vpop.xlane.xlu1 %3278 }
0x176b   : > { %10430 = vrcp.f32 %v3279_v39  ;;  %v10228_v39 = vpack.c.bf16 %v3942_v36, %v3941_v35 }
0x1775   : > { %v10431_v40 = vpop.eup %10430 }
0x1776   : > { %v3281_v43 = vmul.f32 %v10431_v40, %v10429_v33 }
0x1778   : > { %9750 = vmatmul.mubr.msk.f32.vlgmr.msra.gmra.mrb[22].mxu1 %vm1423_vm2, %v3281_v43  ;;  %v3944_v43 = vld [vmem:[%s11952_s29 + $0x18] sm:$0xff] }
0x1779   : > { %9758 = vmatpush3.xpose.msk.msra.mxu1 %vm1423_vm2, %v3435_v42  ;;  %9759 = vmatprep.mubr.msk.f32.mxu1 %vm10627_vm0, %v10628_v6  ;;  %v3943_v42 = vld [vmem:[%s11952_s29 + $0x10] sm:$0xff] }
0x177a   : > { %9767 = vmatprep.subr.mxu1 %v10628_v6 }
0x177c   : > { %9760 = vmatmul.mubr.msk.f32.vlgmr.msra.gmra.mrb[24].mxu1 %vm1423_vm2, %v3433_v45  ;;  %v10231_v45 = vpack.c.bf16 %v3944_v43, %v3943_v42 }
0x177d   : > { %9769 = vmatprep.mubr.msk.f32.mxu1 %vm10627_vm0, %v10628_v6  ;;  %9768 = vmatpush3.msra.mxu1 %v9155_v57 }
0x177e   : > { %10215 = vmatprep.subr.bf16.mxu1 %v10626_v3 }
0x184b   : > { %v3354_v47 = vpop.f32.mrb[22].mxu1 }
0x184c   : > { %v9751_v8 = vpop.f32.mrb[23].mxu1  ;;  %9755 = vmatmul.mubr.msk.f32.vlgmr.msra.gmra.mrb[24].mxu0 %vm1423_vm2, %v3354_v47  ;;  %v9191_v47 = vld [vmem:[%s11916_s30 + $0x70] sm:$0xff] }
0x184d   : > { %9764 = vmatprep.mubr.msk.f32.mxu0 %vm10627_vm0, %v10628_v6  ;;  %v9192_v8 = vld [vmem:[%s11916_s30 + $0x78] sm:$0xff]  ;;  %s11967_s30 = sld [smem:[#allocation29_spill]] }
0x184f   : > { %v3506_v48 = vpop.f32.mrb[24].mxu1 }
0x1850   : > { %v3507_v49 = vadd.f32 %v10953_v15, %v3506_v48  ;;  %v9761_v50 = vpop.f32.mrb[25].mxu1  ;;  %v10225_v48 = vpack.c.bf16 %v9192_v8, %v9191_v47 }
0x1852   : > { %v3510_v51 = vsel %vm1423_vm2, %v3507_v49, -inf }
0x1853   : > { %3511 = vmax.xlane.f32.xlu0 %v3510_v51 }
0x18e0   : > { %v3512_v52 = vpop.xlane.xlu0 %3511 }
0x18e1   : > { %v3513_v53 = vsub.f32 %v3507_v49, %v3512_v52  ;;  %v9183_v49 = vld [vmem:[%s11917_s24 + $0x1] ss:$0 sm:$0xff]  ;;  %s11964_s24 = sld [smem:[#allocation32_spill]] }
0x18e3   : > { %v3514_v54 = vmul.f32 1.442695, %v3513_v53 }
0x18e5   : > { %10432 = vpow2.f32 %v3514_v54 }
0x18ef   : > { %v10433_v55 = vpop.eup %10432 }
0x18f0   : > { %v3516_v56 = vsel %vm1423_vm2, %v10433_v55, 0.0 }
0x18f1   : > { %3517 = vadd.xlane.f32.xlu1 %v3516_v56 }
0x1902   : > { %3521 = vrot.lane.b32.xlu1 %v11082_v44, %s11951_s3 }
0x191f   : > { %v3427_v15 = vpop.f32.mrb[24].mxu0 }
0x1920   : > { %v3431_v58 = vadd.f32 %v3427_v15, %v3192_v37  ;;  %v9756_v59 = vpop.f32.mrb[25].mxu0  ;;  %v9177_v37 = vld [vmem:[%s11921_s14 + $0x1] ss:$0 sm:$0xff]  ;;  %s11955_s14 = sld [smem:[#allocation22_spill]] }
0x1926   : > { %v9202_v54 = vld [vmem:[%s11955_s14] ss:$0 sm:$0xff] }
0x197e   : > { %v3518_v60 = vpop.xlane.xlu1 %3517 }
0x197f   : > { %10434 = vrcp.f32 %v3518_v60 }
0x1982   : > { %v3522_v61 = vpop.permute.xlu1 %3521 }
0x1983   : > { %9763 = vmatpush3.msra.mxu0 %v3522_v61  ;;  %v1311_v61 = vlaneseq }
0x1984   : > { %10209 = vmatprep.subr.bf16.mxu0 %v10626_v3 }
0x1989   : > { %v10435_v62 = vpop.eup %10434 }
0x198a   : > { %v3520_v63 = vmul.f32 %v10435_v62, %v10433_v55  ;;  %v1312_v62 = vshrl.u32 %v1311_v61, 7 }
0x198c   : > { %9765 = vmatmul.mubr.msk.f32.vlgmr.msra.gmra.mrb[26].mxu0 %vm1423_vm2, %v3520_v63  ;;  %v1314_v63 = vand.u32 127, %v1311_v61 }
0x198d   : > { %9780 = vmatprep.mubr.msk.f32.mxu0 %vm10627_vm0, %v10628_v6  ;;  %10211 = vmatpush3.bf16.msra.mxu0 %v10210_v18 }
0x198e   : > { %10212 = vmatprep.subr.bf16.mxu0 %v10626_v3  ;;  %vm1315_vm4 = vcmp.gt.s32.totalorder %v1314_v63, %v1312_v62 }
0x1a5f   : > { %v3593_v44 = vpop.f32.mrb[26].mxu0 }
0x1a60   : > { %v9766_v0 = vpop.f32.mrb[27].mxu0  ;;  %9770 = vmatmul.mubr.msk.f32.vlgmr.msra.gmra.mrb[26].mxu1 %vm1423_vm2, %v3593_v44 }
0x1a61   : > { %9799 = vmatprep.mubr.msk.f32.mxu1 %vm10627_vm0, %v10628_v6  ;;  %10217 = vmatpush3.bf16.msra.mxu1 %v10216_v24  ;;  %v1316_v0 = vsel %vm1315_vm4, -1e+09, %v10628_v6 }
0x1a62   : > { %10218 = vmatprep.subr.bf16.mxu1 %v10626_v3 }
0x1a65   : > { %10220 = vmatpush3.bf16.msra.mxu1 %v10219_v26 }
0x1a66   : > { %10221 = vmatprep.subr.bf16.mxu1 %v10626_v3 }
0x1a69   : > { %10223 = vmatpush3.bf16.msra.mxu1 %v10222_v29 }
0x1a6a   : > { %10224 = vmatprep.subr.bf16.mxu1 %v10626_v3 }
0x1a6d   : > { %10226 = vmatpush3.bf16.msra.mxu1 %v10225_v48 }
0x1a6e   : > { %9818 = vmatprep.subr.mxu1 %v10628_v6 }
0x1b33   : > { %v3666_v1 = vpop.f32.mrb[26].mxu1 }
0x1b34   : > { %v3670_v2 = vadd.f32 %v3666_v1, %v3431_v58  ;;  %v9771_v4 = vpop.f32.mrb[27].mxu1 }
0x1b36   : > { %v3671_v5 = vadd.f32 %v3670_v2, %v11075_v41  ;;  %v9180_v41 = vld [vmem:[%s11923_s19 + $0x30] sm:$0xff]  ;;  %s11953_s19 = sld [smem:[#allocation6_spill]] }
0x1b37   : > { %v10213_v20 = vpack.c.bf16 %v9181_v19, %v9180_v41 }
0x1b38   : > { %v3676_v7 = vsel %vm1335_vm1, %v3671_v5, 0.0 }
0x1b39   : > { %3677 = vadd.xlane.f32.xlu1 %v3676_v7  ;;  %10214 = vmatpush3.bf16.msra.mxu0 %v10213_v20 }
0x1b3a   : > { %10227 = vmatprep.subr.bf16.mxu0 %v10626_v3 }
0x1b3c   : > { %s1300_s10 = scalar_lea.vmem %s11953_s19, %s11954_s8  ;;  %s11956_s8 = sld [smem:[#allocation8_spill]] }
0x1b3d   : > { %v11210_v46 = vld [vmem:[%s1300_s10] sm:$0xff]  ;;  %s11957_s10 = sld [smem:[#allocation23_spill]] }
0x1b42   : > { %s1306_s19 = scalar_lea.vmem %s11956_s8, %s10921_s11  ;;  %s11958_s11 = sld [smem:[#allocation24_spill]] }
0x1b43   : > { %v9116_v44 = vld [vmem:[%s1306_s19] ss:$0 sm:$0xff]  ;;  %s11959_s8 = sld [smem:[#allocation27_spill]]  ;;  %s11960_s19 = sld [smem:[#allocation41_spill]] }
0x1b44   : > { %v11245_v1 = vadd.f32 %v9116_v44, %v1316_v0  ;;  %v4025_v20 = vld [vmem:[%s11957_s10] sm:$0xff] }
0x1bc6   : > { %v3678_v9 = vpop.xlane.xlu1 %3677 }
0x1bc7   : > { %v3679_v10 = vmul.f32 0.03125, %v3678_v9 }
0x1bc9   : > { %v3680_v12 = vsub.f32 %v3671_v5, %v3679_v10 }
0x1bcb   : > { %v3681_v13 = vmul.f32 %v3680_v12, %v3680_v12 }
0x1bcd   : > { %v3682_v14 = vsel %vm1335_vm1, %v3681_v13, 0.0 }
0x1bce   : > { %3683 = vadd.xlane.f32.xlu0 %v3682_v14 }
0x1c5b   : > { %v3684_v30 = vpop.xlane.xlu0 %3683 }
0x1c5c   : > { %v3685_v31 = vmul.f32 0.03125, %v3684_v30 }
0x1c5e   : > { %v3686_v32 = vadd.f32 1e-05, %v3685_v31 }
0x1c60   : > { %10436 = vrsqrt.f32 %v3686_v32 }
0x1c6a   : > { %v10437_v33 = vpop.eup %10436 }
0x1c6b   : > { %v3688_v34 = vmul.f32 %v10437_v33, %v3680_v12  ;;  %v4026_v33 = vld [vmem:[%s11957_s10 + $0x8] sm:$0xff] }
0x1c6d   : > { %v3695_v38 = vmul.f32 %v9176_v11, %v3688_v34 }
0x1c6f   : > { %v11198_v40 = vadd.f32 %v9177_v37, %v3695_v38 }
0x1c71   : > { %9781 = vmatmul.mubr.msk.f32.vlgmr.msra.gmra.mrb[28].mxu0 %vm1335_vm1, %v11198_v40 }
0x1c72   : > { %10229 = vmatpush3.bf16.msra.mxu0 %v10228_v39  ;;  %9810 = vmatprep.mubr.msk.f32.mxu0 %vm10627_vm0, %v10628_v6 }
0x1c73   : > { %10230 = vmatprep.subr.bf16.mxu0 %v10626_v3 }
0x1c76   : > { %10232 = vmatpush3.bf16.msra.mxu0 %v10231_v45 }
0x1c77   : > { %9813 = vmatprep.subr.mxu0 %v10628_v6 }
0x1c79   : > { %9811 = vmatmul.mubr.msk.f32.vlgmr.msra.gmra.mrb[30].mxu0 %vm1335_vm1, %v11210_v46 }
0x1c7a   : > { %9815 = vmatprep.mubr.msk.f32.mxu0 %vm10627_vm0, %v10628_v6 }
0x1d44   : > { %v3785_v50 = vpop.f32.mrb[28].mxu0 }
0x1d45   : > { %v3786_v51 = vadd.f32 %v9183_v49, %v3785_v50  ;;  %v9782_v52 = vpop.f32.mrb[29].mxu0 }
0x1d47   : > { %v3789_v53 = vmax.f32 %v3786_v51, 0.0 }
0x1d49   : > { %9800 = vmatmul.mubr.msk.f32.vlgmr.msra.gmra.mrb[28].mxu1 %vm2513_vm3, %v3789_v53 }
0x1d4a   : > { %9820 = vmatprep.mubr.msk.f32.mxu1 %vm10627_vm0, %v10628_v6 }
0x1d4c   : > { %v4021_v55 = vpop.f32.mrb[30].mxu0 }
0x1d4d   : > { %v11225_v56 = vadd.f32 %v9202_v54, %v4021_v55  ;;  %v9812_v57 = vpop.f32.mrb[31].mxu0  ;;  %v9208_v55 = vld [vmem:[%s11958_s11] ss:$0 sm:$0xff] }
0x1d4f   : > { %4118 = vrot.lane.b32.xlu1 %v11225_v56, %s11942_s23  ;;  %4031 = vrot.lane.b32.xlu0 %v11225_v56, %s11941_s1 }
0x1d53   : > { %4276 = vrot.lane.b32.xlu1 %v11225_v56, %s11943_s28 }
0x1dc1   : > { %v4119_v15 = vpop.permute.xlu1 %4118  ;;  %v4032_v58 = vpop.permute.xlu0 %4031 }
0x1dc2   : > { %9814 = vmatpush3.xpose.msk.msra.mxu0 %vm1423_vm2, %v4032_v58  ;;  %9819 = vmatpush3.msra.mxu1 %v4119_v15 }
0x1dc3   : > { %9828 = vmatprep.subr.mxu1 %v10628_v6  ;;  %9823 = vmatprep.subr.mxu0 %v10628_v6 }
0x1dc5   : > { %9816 = vmatmul.mubr.msk.f32.vlgmr.msra.gmra.mrb[32].mxu0 %vm1423_vm2, %v11225_v56  ;;  %v4277_v16 = vpop.permute.xlu1 %4276 }
0x1dc6   : > { %9825 = vmatprep.mubr.msk.f32.mxu0 %vm10627_vm0, %v10628_v6  ;;  %9824 = vmatpush3.msra.mxu0 %v4025_v20 }
0x1dc7   : > { %9833 = vmatprep.subr.mxu0 %v10628_v6 }
0x1e1c   : > { %v11240_v59 = vpop.f32.mrb[28].mxu1 }
0x1e1d   : > { %v9801_v60 = vpop.f32.mrb[29].mxu1 }
0x1e98   : > { %v4103_v2 = vpop.f32.mrb[32].mxu0 }
0x1e99   : > { %v4104_v4 = vadd.f32 %v4103_v2, %v11245_v1  ;;  %v9817_v5 = vpop.f32.mrb[33].mxu0  ;;  %v4027_v2 = vld [vmem:[%s11957_s10 + $0x10] sm:$0xff] }
0x1e9b   : > { %v4107_v7 = vsel %vm1423_vm2, %v4104_v4, -inf }
0x1e9c   : > { %4108 = vmax.xlane.f32.xlu0 %v4107_v7 }
0x1f29   : > { %v4109_v9 = vpop.xlane.xlu0 %4108 }
0x1f2a   : > { %v4110_v10 = vsub.f32 %v4104_v4, %v4109_v9 }
0x1f2c   : > { %v4111_v12 = vmul.f32 1.442695, %v4110_v10 }
0x1f2e   : > { %10438 = vpow2.f32 %v4111_v12 }
0x1f38   : > { %v10439_v13 = vpop.eup %10438 }
0x1f39   : > { %v4113_v14 = vsel %vm1423_vm2, %v10439_v13, 0.0 }
0x1f3a   : > { %4114 = vadd.xlane.f32.xlu1 %v4113_v14 }
0x1f4b   : > { %4274 = vrot.lane.b32.xlu1 %v11225_v56, %s11944_s5 }
0x1fc7   : > { %v4115_v17 = vpop.xlane.xlu1 %4114 }
0x1fc8   : > { %10440 = vrcp.f32 %v4115_v17 }
0x1fcb   : > { %v4275_v19 = vpop.permute.xlu1 %4274 }
0x1fd2   : > { %v10441_v18 = vpop.eup %10440 }
0x1fd3   : > { %v4117_v41 = vmul.f32 %v10441_v18, %v10439_v13  ;;  %v9194_v13 = vld [vmem:[%s11920_s6 + $0x1] ss:$0 sm:$0xff]  ;;  %s11961_s6 = sld [smem:[#allocation42_spill]] }
0x1fd4   : > { %v3877_v14 = vadd.f32 %v9194_v13, %v11240_v59 }
0x1fd5   : > { %9821 = vmatmul.mubr.msk.f32.vlgmr.msra.gmra.mrb[30].mxu1 %vm1423_vm2, %v4117_v41 }
0x1fd6   : > { %9829 = vmatpush3.xpose.msk.msra.mxu1 %vm1423_vm2, %v4277_v16  ;;  %9830 = vmatprep.mubr.msk.f32.mxu1 %vm10627_vm0, %v10628_v6  ;;  %v3880_v16 = vadd.f32 %v3877_v14, %v11198_v40 }
0x1fd7   : > { %9838 = vmatprep.subr.mxu1 %v10628_v6 }
0x1fd8   : > { %v3885_v17 = vsel %vm1335_vm1, %v3880_v16, 0.0 }
0x1fd9   : > { %9831 = vmatmul.mubr.msk.f32.vlgmr.msra.gmra.mrb[32].mxu1 %vm1423_vm2, %v4275_v19  ;;  %v9201_v13 = vld [vmem:[%s11961_s6] ss:$0 sm:$0xff]  ;;  %s11965_s6 = sld [smem:[#allocation28_spill]] }
0x1fda   : > { %9840 = vmatprep.mubr.msk.f32.mxu1 %vm10627_vm0, %v10628_v6  ;;  %9839 = vmatpush3.msra.mxu1 %v4026_v33 }
0x1fdb   : > { %9848 = vmatprep.subr.mxu1 %v10628_v6 }
0x20a8   : > { %v4190_v21 = vpop.f32.mrb[30].mxu1 }
0x20a9   : > { %v9822_v22 = vpop.f32.mrb[31].mxu1  ;;  %9826 = vmatmul.mubr.msk.f32.vlgmr.msra.gmra.mrb[34].mxu0 %vm1423_vm2, %v4190_v21 }
0x20aa   : > { %9835 = vmatprep.mubr.msk.f32.mxu0 %vm10627_vm0, %v10628_v6 }
0x20ac   : > { %v4348_v23 = vpop.f32.mrb[32].mxu1 }
0x20ad   : > { %v4349_v24 = vadd.f32 %v4348_v23, %v11245_v1  ;;  %v9832_v25 = vpop.f32.mrb[33].mxu1 }
0x20af   : > { %v4352_v26 = vsel %vm1423_vm2, %v4349_v24, -inf }
0x20b0   : > { %4353 = vmax.xlane.f32.xlu0 %v4352_v26 }
0x20c6   : > { %4363 = vrot.lane.b32.xlu0 %v11225_v56, %s11945_s13 }
0x20ca   : > { %4515 = vrot.lane.b32.xlu0 %v11225_v56, %s11946_s21 }
0x20ce   : > { %4513 = vrot.lane.b32.xlu0 %v11225_v56, %s11947_s25 }
0x213d   : > { %v4354_v27 = vpop.xlane.xlu0 %4353 }
0x213e   : > { %v4355_v28 = vsub.f32 %v4349_v24, %v4354_v27 }
0x2140   : > { %v4356_v29 = vmul.f32 1.442695, %v4355_v28 }
0x2141   : > { %v4364_v30 = vpop.permute.xlu0 %4363 }
0x2142   : > { %10442 = vpow2.f32 %v4356_v29  ;;  %9834 = vmatpush3.msra.mxu0 %v4364_v30 }
0x2143   : > { %9843 = vmatprep.subr.mxu0 %v10628_v6 }
0x2145   : > { %v4516_v37 = vpop.permute.xlu0 %4515 }
0x2149   : > { %v4514_v39 = vpop.permute.xlu0 %4513 }
0x214c   : > { %v10443_v31 = vpop.eup %10442 }
0x214d   : > { %v4358_v32 = vsel %vm1423_vm2, %v10443_v31, 0.0 }
0x214e   : > { %4359 = vadd.xlane.f32.xlu1 %v4358_v32 }
0x215f   : > { %4602 = vrot.lane.b32.xlu1 %v11225_v56, %s11948_s2 }
0x2163   : > { %4754 = vrot.lane.b32.xlu1 %v11225_v56, %s11949_s18 }
0x217c   : > { %v4263_v11 = vpop.f32.mrb[34].mxu0 }
0x217d   : > { %v9827_v34 = vpop.f32.mrb[35].mxu0  ;;  %v4273_v57 = vadd.f32 %v9208_v55, %v4263_v11 }
0x217e   : > { %v9198_v34 = vld [vmem:[%s11919_s12 + $0x1] ss:$0 sm:$0xff]  ;;  %s11962_s12 = sld [smem:[#allocation25_spill]] }
0x21db   : > { %v4360_v35 = vpop.xlane.xlu1 %4359 }
0x21dc   : > { %10444 = vrcp.f32 %v4360_v35 }
0x21df   : > { %v4603_v43 = vpop.permute.xlu1 %4602 }
0x21e3   : > { %v4755_v61 = vpop.permute.xlu1 %4754 }
0x21e6   : > { %v10445_v36 = vpop.eup %10444 }
0x21e7   : > { %v4362_v38 = vmul.f32 %v10445_v36, %v10443_v31  ;;  %v9199_v36 = vld [vmem:[%s11918_s20 + $0x1] ss:$0 sm:$0xff]  ;;  %s11963_s20 = sld [smem:[#allocation31_spill]] }
0x21e9   : > { %9836 = vmatmul.mubr.msk.f32.vlgmr.msra.gmra.mrb[36].mxu0 %vm1423_vm2, %v4362_v38 }
0x21ea   : > { %9844 = vmatpush3.xpose.msk.msra.mxu0 %vm1423_vm2, %v4516_v37  ;;  %9845 = vmatprep.mubr.msk.f32.mxu0 %vm10627_vm0, %v10628_v6 }
0x21eb   : > { %9853 = vmatprep.subr.mxu0 %v10628_v6 }
0x21ed   : > { %9846 = vmatmul.mubr.msk.f32.vlgmr.msra.gmra.mrb[38].mxu0 %vm1423_vm2, %v4514_v39 }
0x21ee   : > { %9855 = vmatprep.mubr.msk.f32.mxu0 %vm10627_vm0, %v10628_v6  ;;  %9854 = vmatpush3.msra.mxu0 %v4027_v2 }
0x21ef   : > { %9863 = vmatprep.subr.mxu0 %v10628_v6 }
0x22bc   : > { %v4435_v42 = vpop.f32.mrb[36].mxu0 }
0x22bd   : > { %v9837_v45 = vpop.f32.mrb[37].mxu0  ;;  %9841 = vmatmul.mubr.msk.f32.vlgmr.msra.gmra.mrb[34].mxu1 %vm1423_vm2, %v4435_v42  ;;  %v4028_v42 = vld [vmem:[%s11957_s10 + $0x18] sm:$0xff] }
0x22be   : > { %9849 = vmatpush3.msra.mxu1 %v4603_v43  ;;  %9850 = vmatprep.mubr.msk.f32.mxu1 %vm10627_vm0, %v10628_v6 }
0x22bf   : > { %9858 = vmatprep.subr.mxu1 %v10628_v6 }
0x22c0   : > { %v4587_v47 = vpop.f32.mrb[38].mxu0 }
0x22c1   : > { %v4588_v8 = vadd.f32 %v4587_v47, %v11245_v1  ;;  %v9847_v48 = vpop.f32.mrb[39].mxu0 }
0x22c3   : > { %v4591_v49 = vsel %vm1423_vm2, %v4588_v8, -inf }
0x22c4   : > { %4592 = vmax.xlane.f32.xlu0 %v4591_v49 }
0x2351   : > { %v4593_v50 = vpop.xlane.xlu0 %4592 }
0x2352   : > { %v4594_v51 = vsub.f32 %v4588_v8, %v4593_v50 }
0x2354   : > { %v4595_v52 = vmul.f32 1.442695, %v4594_v51 }
0x2356   : > { %10446 = vpow2.f32 %v4595_v52 }
0x2360   : > { %v10447_v53 = vpop.eup %10446 }
0x2361   : > { %v4597_v54 = vsel %vm1423_vm2, %v10447_v53, 0.0 }
0x2362   : > { %4598 = vadd.xlane.f32.xlu1 %v4597_v54 }
0x2373   : > { %4752 = vrot.lane.b32.xlu1 %v11225_v56, %s11950_s26 }
0x2390   : > { %v4508_v15 = vpop.f32.mrb[34].mxu1 }
0x2391   : > { %v4512_v58 = vadd.f32 %v4508_v15, %v4273_v57  ;;  %v9842_v60 = vpop.f32.mrb[35].mxu1  ;;  %v5105_v57 = vld [vmem:[%s11959_s8] sm:$0xff]  ;;  %v5106_v15 = vld [vmem:[%s11959_s8 + $0x8] sm:$0xff] }
0x2392   : > { %v5107_v60 = vld [vmem:[%s11959_s8 + $0x10] sm:$0xff] }
0x23ef   : > { %v4599_v62 = vpop.xlane.xlu1 %4598 }
0x23f0   : > { %10448 = vrcp.f32 %v4599_v62 }
0x23f3   : > { %v4753_v0 = vpop.permute.xlu1 %4752 }
0x23fa   : > { %v10449_v63 = vpop.eup %10448 }
0x23fb   : > { %v4601_v44 = vmul.f32 %v10449_v63, %v10447_v53 }
0x23fd   : > { %9851 = vmatmul.mubr.msk.f32.vlgmr.msra.gmra.mrb[36].mxu1 %vm1423_vm2, %v4601_v44 }
0x23fe   : > { %9859 = vmatpush3.xpose.msk.msra.mxu1 %vm1423_vm2, %v4755_v61  ;;  %9860 = vmatprep.mubr.msk.f32.mxu1 %vm10627_vm0, %v10628_v6  ;;  %v5108_v61 = vld [vmem:[%s11959_s8 + $0x18] sm:$0xff] }
0x23ff   : > { %9868 = vmatprep.subr.mxu1 %v10628_v6  ;;  %v10243_v62 = vpack.c.bf16 %v5108_v61, %v5107_v60 }
0x2401   : > { %9861 = vmatmul.mubr.msk.f32.vlgmr.msra.gmra.mrb[38].mxu1 %vm1423_vm2, %v4753_v0 }
0x2402   : > { %9870 = vmatprep.mubr.msk.f32.mxu1 %vm10627_vm0, %v10628_v6  ;;  %9869 = vmatpush3.msra.mxu1 %v4028_v42 }
0x2403   : > { %10239 = vmatprep.subr.bf16.mxu1 %v10626_v3 }
0x24d0   : > { %v4674_v4 = vpop.f32.mrb[36].mxu1 }
0x24d1   : > { %v9852_v5 = vpop.f32.mrb[37].mxu1  ;;  %9856 = vmatmul.mubr.msk.f32.vlgmr.msra.gmra.mrb[40].mxu0 %vm1423_vm2, %v4674_v4 }
0x24d2   : > { %9865 = vmatprep.mubr.msk.f32.mxu0 %vm10627_vm0, %v10628_v6 }
0x24d4   : > { %v4826_v7 = vpop.f32.mrb[38].mxu1 }
0x24d5   : > { %v4827_v9 = vadd.f32 %v4826_v7, %v11245_v1  ;;  %v9862_v10 = vpop.f32.mrb[39].mxu1 }
0x24d6   : > { %v9200_v10 = vld [vmem:[%s11960_s19] ss:$0 sm:$0xff]  ;;  %s11966_s19 = sld [smem:[#allocation26_spill]] }
0x24d7   : > { %v4830_v12 = vsel %vm1423_vm2, %v4827_v9, -inf }
0x24d8   : > { %4831 = vmax.xlane.f32.xlu0 %v4830_v12 }
0x24ee   : > { %4841 = vrot.lane.b32.xlu0 %v11225_v56, %s11951_s3 }
0x250d   : > { %3886 = vadd.xlane.f32.xlu0 %v3885_v17  ;;  %v5021_v17 = vld [vmem:[%s11962_s12] sm:$0xff] }
0x2565   : > { %v4832_v18 = vpop.xlane.xlu0 %4831 }
0x2566   : > { %v4833_v41 = vsub.f32 %v4827_v9, %v4832_v18  ;;  %v5022_v18 = vld [vmem:[%s11962_s12 + $0x8] sm:$0xff] }
0x2568   : > { %v4834_v19 = vmul.f32 1.442695, %v4833_v41  ;;  %v10234_v41 = vpack.c.bf16 %v5022_v18, %v5021_v17 }
0x2569   : > { %v4842_v20 = vpop.permute.xlu0 %4841 }
0x256a   : > { %10450 = vpow2.f32 %v4834_v19  ;;  %9864 = vmatpush3.msra.mxu0 %v4842_v20  ;;  %v5023_v19 = vld [vmem:[%s11962_s12 + $0x10] sm:$0xff]  ;;  %v5024_v20 = vld [vmem:[%s11962_s12 + $0x18] sm:$0xff] }
0x256b   : > { %10233 = vmatprep.subr.bf16.mxu0 %v10626_v3 }
0x2574   : > { %v10451_v21 = vpop.eup %10450 }
0x2575   : > { %v4836_v22 = vsel %vm1423_vm2, %v10451_v21, 0.0 }
0x2576   : > { %4837 = vadd.xlane.f32.xlu1 %v4836_v22 }
0x259a   : > { %v3887_v56 = vpop.xlane.xlu0 %3886 }
0x259b   : > { %v3888_v23 = vmul.f32 0.03125, %v3887_v56 }
0x259d   : > { %v3889_v59 = vsub.f32 %v3880_v16, %v3888_v23 }
0x259f   : > { %v3890_v24 = vmul.f32 %v3889_v59, %v3889_v59 }
0x25a1   : > { %v3891_v40 = vsel %vm1335_vm1, %v3890_v24, 0.0  ;;  %v9221_v24 = vld [vmem:[%s11963_s20] ss:$0 sm:$0xff] }
0x25a2   : > { %3892 = vadd.xlane.f32.xlu1 %v3891_v40 }
0x25a4   : > { %v4747_v25 = vpop.f32.mrb[40].mxu0 }
0x25a5   : > { %v4751_v26 = vadd.f32 %v4747_v25, %v4512_v58  ;;  %v9857_v27 = vpop.f32.mrb[41].mxu0  ;;  %v10240_v58 = vpack.c.bf16 %v5106_v15, %v5105_v57  ;;  %v9222_v25 = vld [vmem:[%s11964_s24] ss:$0 sm:$0xff] }
0x2603   : > { %v4838_v28 = vpop.xlane.xlu1 %4837 }
0x2604   : > { %10452 = vrcp.f32 %v4838_v28  ;;  %v9225_v28 = vld [vmem:[%s11965_s6] ss:$0 sm:$0xff] }
0x260e   : > { %v10453_v29 = vpop.eup %10452 }
0x260f   : > { %v4840_v30 = vmul.f32 %v10453_v29, %v10451_v21  ;;  %v10237_v21 = vpack.c.bf16 %v5024_v20, %v5023_v19 }
0x2611   : > { %9866 = vmatmul.mubr.msk.f32.vlgmr.msra.gmra.mrb[42].mxu0 %vm1423_vm2, %v4840_v30 }
0x2612   : > { %9881 = vmatprep.mubr.msk.f32.mxu0 %vm10627_vm0, %v10628_v6  ;;  %10235 = vmatpush3.bf16.msra.mxu0 %v10234_v41 }
0x2613   : > { %10236 = vmatprep.subr.bf16.mxu0 %v10626_v3 }
0x2616   : > { %10238 = vmatpush3.bf16.msra.mxu0 %v10237_v21 }
0x2617   : > { %9895 = vmatprep.subr.mxu0 %v10628_v6 }
0x262f   : > { %v3893_v31 = vpop.xlane.xlu1 %3892 }
0x2630   : > { %v3894_v32 = vmul.f32 0.03125, %v3893_v31 }
0x2632   : > { %v3895_v33 = vadd.f32 1e-05, %v3894_v32  ;;  %v9223_v32 = vld [vmem:[%s11966_s19] ss:$0 sm:$0xff] }
0x2634   : > { %10454 = vrsqrt.f32 %v3895_v33 }
0x263e   : > { %v10455_v11 = vpop.eup %10454 }
0x263f   : > { %v3897_v35 = vmul.f32 %v10455_v11, %v3889_v59 }
0x2641   : > { %v3904_v37 = vmul.f32 %v9198_v34, %v3897_v35 }
0x2643   : > { %v3911_v38 = vadd.f32 %v9199_v36, %v3904_v37 }
0x2645   : > { %v3914_v39 = vsel %vm1335_vm1, %v3911_v38, 0.0 }
0x2646   : > { %3915 = vadd.xlane.f32.xlu1 %v3914_v39 }
0x26d3   : > { %v3916_v47 = vpop.xlane.xlu1 %3915 }
0x26d4   : > { %v3917_v8 = vmul.f32 0.03125, %v3916_v47 }
0x26d6   : > { %v3918_v49 = vsub.f32 %v3911_v38, %v3917_v8 }
0x26d8   : > { %v3919_v54 = vmul.f32 %v3918_v49, %v3918_v49 }
0x26da   : > { %v3920_v55 = vsel %vm1335_vm1, %v3919_v54, 0.0 }
0x26e4   : > { %v4913_v43 = vpop.f32.mrb[42].mxu0 }
0x26e5   : > { %v9867_v45 = vpop.f32.mrb[43].mxu0  ;;  %9871 = vmatmul.mubr.msk.f32.vlgmr.msra.gmra.mrb[40].mxu1 %vm1423_vm2, %v4913_v43 }
0x26e6   : > { %9892 = vmatprep.mubr.msk.f32.mxu1 %vm10627_vm0, %v10628_v6  ;;  %10241 = vmatpush3.bf16.msra.mxu1 %v10240_v58 }
0x26e7   : > { %10242 = vmatprep.subr.bf16.mxu1 %v10626_v3 }
0x26ea   : > { %10244 = vmatpush3.bf16.msra.mxu1 %v10243_v62 }
0x26eb   : > { %9900 = vmatprep.subr.mxu1 %v10628_v6 }
0x27b8   : > { %v4986_v48 = vpop.f32.mrb[40].mxu1 }
0x27b9   : > { %v4990_v50 = vadd.f32 %v4986_v48, %v4751_v26  ;;  %v9872_v51 = vpop.f32.mrb[41].mxu1 }
0x27bb   : > { %v4991_v52 = vadd.f32 %v4990_v50, %v11210_v46 }
0x27bd   : > { %v4994_v53 = vsel %vm1335_vm1, %v4991_v52, 0.0 }
0x27be   : > { %4995 = vadd.xlane.f32.xlu1 %v4994_v53 }
0x27c2   : > { %3921 = vadd.xlane.f32.xlu1 %v3920_v55 }
0x284b   : > { %v4996_v46 = vpop.xlane.xlu1 %4995 }
0x284c   : > { %v4997_v63 = vmul.f32 0.03125, %v4996_v46 }
0x284e   : > { %v4998_v44 = vsub.f32 %v4991_v52, %v4997_v63  ;;  %v5189_v52 = vld [vmem:[%s11967_s30] sm:$0xff] }
0x284f   : > { %v3922_v0 = vpop.xlane.xlu1 %3921 }
0x2850   : > { %v3923_v2 = vmul.f32 0.03125, %v3922_v0  ;;  %v4999_v4 = vmul.f32 %v4998_v44, %v4998_v44 }
0x2852   : > { %v3924_v5 = vadd.f32 1e-05, %v3923_v2  ;;  %v5000_v7 = vsel %vm1335_vm1, %v4999_v4, 0.0 }
0x2853   : > { %5001 = vadd.xlane.f32.xlu1 %v5000_v7 }
0x2854   : > { %10456 = vrsqrt.f32 %v3924_v5 }
0x285e   : > { %v10457_v9 = vpop.eup %10456 }
0x285f   : > { %v3926_v12 = vmul.f32 %v10457_v9, %v3918_v49 }
0x2861   : > { %v3933_v14 = vmul.f32 %v9200_v10, %v3926_v12  ;;  %v5190_v10 = vld [vmem:[%s11967_s30 + $0x8] sm:$0xff] }
0x2863   : > { %v11346_v16 = vadd.f32 %v9201_v13, %v3933_v14 }
0x2865   : > { %9893 = vmatmul.mubr.msk.f32.vlgmr.msra.gmra.mrb[42].mxu1 %vm1335_vm1, %v11346_v16 }
0x2866   : > { %9902 = vmatprep.mubr.msk.f32.mxu1 %vm10627_vm0, %v10628_v6 }
0x28e0   : > { %v5002_v22 = vpop.xlane.xlu1 %5001 }
0x28e1   : > { %v5003_v56 = vmul.f32 0.03125, %v5002_v22 }
0x28e3   : > { %v5004_v23 = vadd.f32 1e-05, %v5003_v56  ;;  %v9231_v56 = vld [vmem:[%s11968_s15] ss:$0 sm:$0xff]  ;;  %s11970_s15 = sld [smem:[#allocation37_spill]] }
0x28e5   : > { %10458 = vrsqrt.f32 %v5004_v23 }
0x28e9   : > { %s11971_s17 = smov %s11970_s15 }
0x28ef   : > { %v10459_v59 = vpop.eup %10458 }
0x28f0   : > { %v5006_v40 = vmul.f32 %v10459_v59, %v4998_v44 }
0x28f2   : > { %v5013_v26 = vmul.f32 %v9221_v24, %v5006_v40 }
0x28f4   : > { %v11360_v27 = vadd.f32 %v9222_v25, %v5013_v26 }
0x28f6   : > { %9882 = vmatmul.mubr.msk.f32.vlgmr.msra.gmra.mrb[44].mxu0 %vm1335_vm1, %v11360_v27 }
0x28f7   : > { %9897 = vmatprep.mubr.msk.f32.mxu0 %vm10627_vm0, %v10628_v6 }
0x2938   : > { %v5185_v29 = vpop.f32.mrb[42].mxu1 }
0x2939   : > { %v11367_v30 = vadd.f32 %v9225_v28, %v5185_v29  ;;  %v9894_v31 = vpop.f32.mrb[43].mxu1 }
0x293b   : > { %5439 = vrot.lane.b32.xlu1 %v11367_v30, %s11944_s5  ;;  %9896 = vmatpush3.xpose.msk.msra.mxu0 %vm1423_vm2, %v11367_v30 }
0x293c   : > { %9905 = vmatprep.subr.mxu0 %v10628_v6 }
0x29ad   : > { %v5440_v8 = vpop.permute.xlu1 %5439 }
0x29c9   : > { %v5101_v33 = vpop.f32.mrb[44].mxu0 }
0x29ca   : > { %v11375_v11 = vadd.f32 %v9223_v32, %v5101_v33  ;;  %v9883_v34 = vpop.f32.mrb[45].mxu0  ;;  %v5191_v33 = vld [vmem:[%s11967_s30 + $0x10] sm:$0xff] }
0x29cc   : > { %9898 = vmatmul.mubr.msk.f32.vlgmr.msra.gmra.mrb[46].mxu0 %vm1423_vm2, %v11375_v11 }
0x29cd   : > { %9907 = vmatprep.mubr.msk.f32.mxu0 %vm10627_vm0, %v10628_v6  ;;  %9906 = vmatpush3.msra.mxu0 %v5189_v52 }
0x29ce   : > { %9915 = vmatprep.subr.mxu0 %v10628_v6 }
0x2a9f   : > { %v5266_v35 = vpop.f32.mrb[46].mxu0 }
0x2aa0   : > { %v9899_v36 = vpop.f32.mrb[47].mxu0  ;;  %v5270_v37 = vsel %vm1423_vm2, %v5266_v35, -inf }
0x2aa1   : > { %5271 = vmax.xlane.f32.xlu0 %v5270_v37 }
0x2ab7   : > { %5281 = vrot.lane.b32.xlu0 %v11367_v30, %s11941_s1 }
0x2b2e   : > { %v5272_v38 = vpop.xlane.xlu0 %5271 }
0x2b2f   : > { %v5273_v39 = vsub.f32 %v5266_v35, %v5272_v38 }
0x2b31   : > { %v5274_v42 = vmul.f32 1.442695, %v5273_v39 }
0x2b32   : > { %v5282_v43 = vpop.permute.xlu0 %5281 }
0x2b33   : > { %10460 = vpow2.f32 %v5274_v42  ;;  %9901 = vmatpush3.msra.mxu1 %v5282_v43 }
0x2b34   : > { %9910 = vmatprep.subr.mxu1 %v10628_v6 }
0x2b3d   : > { %v10461_v45 = vpop.eup %10460 }
0x2b3e   : > { %v5276_v47 = vsel %vm1423_vm2, %v10461_v45, 0.0 }
0x2b3f   : > { %5277 = vadd.xlane.f32.xlu1 %v5276_v47 }
0x2b50   : > { %5437 = vrot.lane.b32.xlu1 %v11375_v11, %s11944_s5 }
0x2bcc   : > { %v5278_v48 = vpop.xlane.xlu1 %5277 }
0x2bcd   : > { %10462 = vrcp.f32 %v5278_v48 }
0x2bd0   : > { %v5438_v51 = vpop.permute.xlu1 %5437 }
0x2bd7   : > { %v10463_v49 = vpop.eup %10462 }
0x2bd8   : > { %v5280_v50 = vmul.f32 %v10463_v49, %v10461_v45 }
0x2bda   : > { %9903 = vmatmul.mubr.msk.f32.vlgmr.msra.gmra.mrb[44].mxu1 %vm1423_vm2, %v5280_v50 }
0x2bdb   : > { %9911 = vmatpush3.xpose.msk.msra.mxu1 %vm1423_vm2, %v5440_v8  ;;  %9912 = vmatprep.mubr.msk.f32.mxu1 %vm10627_vm0, %v10628_v6  ;;  %v5192_v8 = vld [vmem:[%s11967_s30 + $0x18] sm:$0xff] }
0x2bdc   : > { %9920 = vmatprep.subr.mxu1 %v10628_v6 }
0x2bde   : > { %9913 = vmatmul.mubr.msk.f32.vlgmr.msra.gmra.mrb[46].mxu1 %vm1423_vm2, %v5438_v51 }
0x2bdf   : > { %9922 = vmatprep.mubr.msk.f32.mxu1 %vm10627_vm0, %v10628_v6  ;;  %9921 = vmatpush3.msra.mxu1 %v5190_v10  ;;  %v6270_v10 = vld [vmem:[%s11973_s0 + $0x8] sm:$0xff] }
0x2be0   : > { %9930 = vmatprep.subr.mxu1 %v10628_v6 }
0x2cad   : > { %v5353_v53 = vpop.f32.mrb[44].mxu1 }
0x2cae   : > { %v9904_v54 = vpop.f32.mrb[45].mxu1  ;;  %9908 = vmatmul.mubr.msk.f32.vlgmr.msra.gmra.mrb[48].mxu0 %vm1423_vm2, %v5353_v53 }
0x2caf   : > { %9917 = vmatprep.mubr.msk.f32.mxu0 %vm10627_vm0, %v10628_v6 }
0x2cb1   : > { %v5511_v55 = vpop.f32.mrb[46].mxu1 }
0x2cb2   : > { %v9914_v57 = vpop.f32.mrb[47].mxu1  ;;  %v5515_v15 = vsel %vm1423_vm2, %v5511_v55, -inf }
0x2cb3   : > { %5516 = vmax.xlane.f32.xlu0 %v5515_v15 }
0x2cc9   : > { %5526 = vrot.lane.b32.xlu0 %v11367_v30, %s11943_s28 }
0x2ccd   : > { %5676 = vrot.lane.b32.xlu0 %v11375_v11, %s11947_s25 }
0x2d40   : > { %v5517_v58 = vpop.xlane.xlu0 %5516 }
0x2d41   : > { %v5518_v60 = vsub.f32 %v5511_v55, %v5517_v58 }
0x2d43   : > { %v5519_v61 = vmul.f32 1.442695, %v5518_v60 }
0x2d44   : > { %v5527_v62 = vpop.permute.xlu0 %5526 }
0x2d45   : > { %10464 = vpow2.f32 %v5519_v61  ;;  %9916 = vmatpush3.msra.mxu0 %v5527_v62 }
0x2d46   : > { %9925 = vmatprep.subr.mxu0 %v10628_v6 }
0x2d48   : > { %v5677_v9 = vpop.permute.xlu0 %5676 }
0x2d4f   : > { %v10465_v46 = vpop.eup %10464 }
0x2d50   : > { %v5521_v63 = vsel %vm1423_vm2, %v10465_v46, 0.0 }
0x2d51   : > { %5522 = vadd.xlane.f32.xlu1 %v5521_v63 }
0x2d62   : > { %5678 = vrot.lane.b32.xlu1 %v11367_v30, %s11947_s25 }
0x2d81   : > { %v5426_v44 = vpop.f32.mrb[48].mxu0 }
0x2d82   : > { %v9909_v0 = vpop.f32.mrb[49].mxu0  ;;  %v5436_v23 = vadd.f32 %v9231_v56, %v5426_v44 }
0x2d83   : > { %v6184_v0 = vld [vmem:[%s11970_s15] sm:$0xff]  ;;  %s11975_s15 = sld [smem:[#allocation34_spill]] }
0x2dde   : > { %v5523_v2 = vpop.xlane.xlu1 %5522 }
0x2ddf   : > { %10466 = vrcp.f32 %v5523_v2  ;;  %v6185_v2 = vld [vmem:[%s11971_s17 + $0x8] sm:$0xff] }
0x2de2   : > { %v5679_v7 = vpop.permute.xlu1 %5678 }
0x2de9   : > { %v10467_v4 = vpop.eup %10466 }
0x2dea   : > { %v5525_v5 = vmul.f32 %v10467_v4, %v10465_v46  ;;  %v10246_v4 = vpack.c.bf16 %v6185_v2, %v6184_v0 }
0x2dec   : > { %9918 = vmatmul.mubr.msk.f32.vlgmr.msra.gmra.mrb[50].mxu0 %vm1423_vm2, %v5525_v5  ;;  %v6187_v5 = vld [vmem:[%s11971_s17 + $0x18] sm:$0xff] }
0x2ded   : > { %9926 = vmatpush3.xpose.msk.msra.mxu0 %vm1423_vm2, %v5679_v7  ;;  %9927 = vmatprep.mubr.msk.f32.mxu0 %vm10627_vm0, %v10628_v6 }
0x2dee   : > { %9935 = vmatprep.subr.mxu0 %v10628_v6 }
0x2df0   : > { %9928 = vmatmul.mubr.msk.f32.vlgmr.msra.gmra.mrb[52].mxu0 %vm1423_vm2, %v5677_v9  ;;  %v6269_v9 = vld [vmem:[%s11972_s22] sm:$0xff]  ;;  %s11976_s22 = sld [smem:[#allocation38_spill]] }
0x2df1   : > { %9937 = vmatprep.mubr.msk.f32.mxu0 %vm10627_vm0, %v10628_v6  ;;  %9936 = vmatpush3.msra.mxu0 %v5191_v33 }
0x2df2   : > { %9945 = vmatprep.subr.mxu0 %v10628_v6 }
0x2ebf   : > { %v5598_v12 = vpop.f32.mrb[50].mxu0 }
0x2ec0   : > { %v9919_v13 = vpop.f32.mrb[51].mxu0  ;;  %9923 = vmatmul.mubr.msk.f32.vlgmr.msra.gmra.mrb[48].mxu1 %vm1423_vm2, %v5598_v12  ;;  %v6271_v12 = vld [vmem:[%s11973_s0 + $0x10] sm:$0xff] }
0x2ec1   : > { %9932 = vmatprep.mubr.msk.f32.mxu1 %vm10627_vm0, %v10628_v6  ;;  %v10252_v13 = vpack.c.bf16 %v6270_v10, %v6269_v9 }
0x2ec3   : > { %v5750_v14 = vpop.f32.mrb[52].mxu0 }
0x2ec4   : > { %v9929_v17 = vpop.f32.mrb[53].mxu0  ;;  %v5754_v18 = vsel %vm1423_vm2, %v5750_v14, -inf }
0x2ec5   : > { %5755 = vmax.xlane.f32.xlu1 %v5754_v18  ;;  %v6273_v18 = vld [vmem:[%s11973_s0 + $0x20] sm:$0xff] }
0x2ed6   : > { %5917 = vrot.lane.b32.xlu1 %v11367_v30, %s11950_s26 }
0x2eda   : > { %5915 = vrot.lane.b32.xlu1 %v11375_v11, %s11950_s26 }
0x2f52   : > { %v5756_v41 = vpop.xlane.xlu1 %5755 }
0x2f53   : > { %v5757_v19 = vsub.f32 %v5750_v14, %v5756_v41  ;;  %v6272_v14 = vld [vmem:[%s11973_s0 + $0x18] sm:$0xff]  ;;  %v6274_v41 = vld [vmem:[%s11973_s0 + $0x28] sm:$0xff] }
0x2f54   : > { %v10255_v17 = vpack.c.bf16 %v6272_v14, %v6271_v12 }
0x2f55   : > { %v5758_v20 = vmul.f32 1.442695, %v5757_v19  ;;  %v10258_v19 = vpack.c.bf16 %v6274_v41, %v6273_v18 }
0x2f56   : > { %v5918_v29 = vpop.permute.xlu1 %5917 }
0x2f57   : > { %10468 = vpow2.f32 %v5758_v20 }
0x2f5a   : > { %v5916_v32 = vpop.permute.xlu1 %5915 }
0x2f61   : > { %v10469_v21 = vpop.eup %10468 }
0x2f62   : > { %v5760_v22 = vsel %vm1423_vm2, %v10469_v21, 0.0 }
0x2f63   : > { %5761 = vadd.xlane.f32.xlu0 %v5760_v22 }
0x2f79   : > { %5765 = vrot.lane.b32.xlu0 %v11367_v30, %s11946_s21 }
0x2f93   : > { %v5671_v59 = vpop.f32.mrb[48].mxu1 }
0x2f94   : > { %v5675_v24 = vadd.f32 %v5671_v59, %v5436_v23  ;;  %v9924_v40 = vpop.f32.mrb[49].mxu1  ;;  %v9244_v23 = vld [vmem:[%s11974_s4] ss:$0 sm:$0xff] }
0x2ff0   : > { %v5762_v25 = vpop.xlane.xlu0 %5761 }
0x2ff1   : > { %10470 = vrcp.f32 %v5762_v25 }
0x2ff4   : > { %v5766_v26 = vpop.permute.xlu0 %5765 }
0x2ff5   : > { %9931 = vmatpush3.msra.mxu1 %v5766_v26  ;;  %v6275_v26 = vld [vmem:[%s11973_s0 + $0x30] sm:$0xff] }
0x2ff6   : > { %9940 = vmatprep.subr.mxu1 %v10628_v6 }
0x2ffb   : > { %v10471_v28 = vpop.eup %10470 }
0x2ffc   : > { %v5764_v31 = vmul.f32 %v10471_v28, %v10469_v21  ;;  %v6276_v28 = vld [vmem:[%s11973_s0 + $0x38] sm:$0xff] }
0x2ffe   : > { %9933 = vmatmul.mubr.msk.f32.vlgmr.msra.gmra.mrb[50].mxu1 %vm1423_vm2, %v5764_v31  ;;  %v9246_v31 = vld [vmem:[%s11976_s22] ss:$0 sm:$0xff] }
0x2fff   : > { %9941 = vmatpush3.xpose.msk.msra.mxu1 %vm1423_vm2, %v5918_v29  ;;  %9942 = vmatprep.mubr.msk.f32.mxu1 %vm10627_vm0, %v10628_v6  ;;  %v10261_v29 = vpack.c.bf16 %v6276_v28, %v6275_v26 }
0x3000   : > { %9950 = vmatprep.subr.mxu1 %v10628_v6 }
0x3002   : > { %9943 = vmatmul.mubr.msk.f32.vlgmr.msra.gmra.mrb[52].mxu1 %vm1423_vm2, %v5916_v32 }
0x3003   : > { %9952 = vmatprep.mubr.msk.f32.mxu1 %vm10627_vm0, %v10628_v6  ;;  %9951 = vmatpush3.msra.mxu1 %v5192_v8 }
0x3004   : > { %10251 = vmatprep.subr.bf16.mxu1 %v10626_v3 }
0x30d1   : > { %v5837_v11 = vpop.f32.mrb[50].mxu1 }
0x30d2   : > { %v9934_v34 = vpop.f32.mrb[51].mxu1  ;;  %9938 = vmatmul.mubr.msk.f32.vlgmr.msra.gmra.mrb[54].mxu0 %vm1423_vm2, %v5837_v11 }
0x30d3   : > { %9947 = vmatprep.mubr.msk.f32.mxu0 %vm10627_vm0, %v10628_v6 }
0x30d5   : > { %v5989_v35 = vpop.f32.mrb[52].mxu1 }
0x30d6   : > { %v9944_v36 = vpop.f32.mrb[53].mxu1  ;;  %v5993_v37 = vsel %vm1423_vm2, %v5989_v35, -inf }
0x30d7   : > { %5994 = vmax.xlane.f32.xlu0 %v5993_v37 }
0x30ed   : > { %6004 = vrot.lane.b32.xlu0 %v11367_v30, %s11949_s18 }
0x3164   : > { %v5995_v38 = vpop.xlane.xlu0 %5994 }
0x3165   : > { %v5996_v39 = vsub.f32 %v5989_v35, %v5995_v38  ;;  %v9248_v35 = vld [vmem:[%s11977_s16] ss:$0 sm:$0xff]  ;;  %s11980_s16 = sld [smem:[#allocation36_spill]] }
0x3167   : > { %v5997_v42 = vmul.f32 1.442695, %v5996_v39 }
0x3168   : > { %v6005_v43 = vpop.permute.xlu0 %6004 }
0x3169   : > { %10472 = vpow2.f32 %v5997_v42  ;;  %9946 = vmatpush3.msra.mxu0 %v6005_v43 }
0x316a   : > { %10245 = vmatprep.subr.bf16.mxu0 %v10626_v3 }
0x316b   : > { %s11981_s27 = smov %s11980_s16 }
0x3173   : > { %v10473_v45 = vpop.eup %10472 }
0x3174   : > { %v5999_v47 = vsel %vm1423_vm2, %v10473_v45, 0.0 }
0x3175   : > { %6000 = vadd.xlane.f32.xlu1 %v5999_v47 }
0x31a5   : > { %v5910_v48 = vpop.f32.mrb[54].mxu0 }
0x31a6   : > { %v5914_v49 = vadd.f32 %v5910_v48, %v5675_v24  ;;  %v9939_v50 = vpop.f32.mrb[55].mxu0  ;;  %v9245_v24 = vld [vmem:[%s11975_s15] ss:$0 sm:$0xff]  ;;  %s11978_s15 = sld [smem:[#allocation35_spill]] }
0x31a7   : > { %v9253_v50 = vld [vmem:[%s11952_s29 + $0x28] sm:$0xff] }
0x31ac   : > { %s11979_s9 = smov %s11978_s15 }
0x3202   : > { %v6001_v30 = vpop.xlane.xlu1 %6000 }
0x3203   : > { %10474 = vrcp.f32 %v6001_v30 }
0x320d   : > { %v10475_v51 = vpop.eup %10474 }
0x320e   : > { %v6003_v52 = vmul.f32 %v10475_v51, %v10473_v45  ;;  %v9254_v51 = vld [vmem:[%s11952_s29 + $0x30] sm:$0xff] }
0x3210   : > { %9948 = vmatmul.mubr.msk.f32.vlgmr.msra.gmra.mrb[56].mxu0 %vm1423_vm2, %v6003_v52  ;;  %v9255_v52 = vld [vmem:[%s11952_s29 + $0x38] sm:$0xff] }
0x3211   : > { %9963 = vmatprep.mubr.msk.f32.mxu0 %vm10627_vm0, %v10628_v6  ;;  %10247 = vmatpush3.bf16.msra.mxu0 %v10246_v4 }
0x3212   : > { %10248 = vmatprep.subr.bf16.mxu0 %v10626_v3 }
0x32e3   : > { %v6076_v53 = vpop.f32.mrb[56].mxu0 }
0x32e4   : > { %v9949_v54 = vpop.f32.mrb[57].mxu0  ;;  %9953 = vmatmul.mubr.msk.f32.vlgmr.msra.gmra.mrb[54].mxu1 %vm1423_vm2, %v6076_v53  ;;  %v10267_v53 = vpack.c.bf16 %v9255_v52, %v9254_v51 }
0x32e5   : > { %9982 = vmatprep.mubr.msk.f32.mxu1 %vm10627_vm0, %v10628_v6  ;;  %10253 = vmatpush3.bf16.msra.mxu1 %v10252_v13 }
0x32e6   : > { %10254 = vmatprep.subr.bf16.mxu1 %v10626_v3 }
0x32e9   : > { %10256 = vmatpush3.bf16.msra.mxu1 %v10255_v17 }
0x32ea   : > { %10257 = vmatprep.subr.bf16.mxu1 %v10626_v3 }
0x32ed   : > { %10259 = vmatpush3.bf16.msra.mxu1 %v10258_v19 }
0x32ee   : > { %10260 = vmatprep.subr.bf16.mxu1 %v10626_v3 }
0x32f1   : > { %10262 = vmatpush3.bf16.msra.mxu1 %v10261_v29 }
0x32f2   : > { %10001 = vmatprep.subr.mxu1 %v10628_v6 }
0x33b7   : > { %v6149_v55 = vpop.f32.mrb[54].mxu1 }
0x33b8   : > { %v6153_v57 = vadd.f32 %v6149_v55, %v5914_v49  ;;  %v9954_v15 = vpop.f32.mrb[55].mxu1  ;;  %v9252_v49 = vld [vmem:[%s11952_s29 + $0x20] sm:$0xff] }
0x33b9   : > { %v10264_v30 = vpack.c.bf16 %v9253_v50, %v9252_v49 }
0x33ba   : > { %v6154_v58 = vadd.f32 %v6153_v57, %v11360_v27  ;;  %v6186_v27 = vld [vmem:[%s11971_s17 + $0x10] sm:$0xff] }
0x33bb   : > { %v10249_v7 = vpack.c.bf16 %v6187_v5, %v6186_v27 }
0x33bc   : > { %v6157_v60 = vsel %vm1335_vm1, %v6154_v58, 0.0 }
0x33bd   : > { %6158 = vadd.xlane.f32.xlu1 %v6157_v60  ;;  %10250 = vmatpush3.bf16.msra.mxu0 %v10249_v7 }
0x33be   : > { %10263 = vmatprep.subr.bf16.mxu0 %v10626_v3 }
0x344a   : > { %v6159_v61 = vpop.xlane.xlu1 %6158 }
0x344b   : > { %v6160_v62 = vmul.f32 0.03125, %v6159_v61  ;;  %v9251_v61 = vld [vmem:[%s11980_s16] ss:$0 sm:$0xff] }
0x344d   : > { %v6161_v46 = vsub.f32 %v6154_v58, %v6160_v62  ;;  %v9250_v58 = vld [vmem:[%s11978_s15] ss:$0 sm:$0xff] }
0x344f   : > { %v6162_v63 = vmul.f32 %v6161_v46, %v6161_v46 }
0x3451   : > { %v6163_v44 = vsel %vm1335_vm1, %v6162_v63, 0.0  ;;  %v9257_v63 = vld [vmem:[%s11955_s14 + $0x1] ss:$0 sm:$0xff] }
0x3452   : > { %6164 = vadd.xlane.f32.xlu1 %v6163_v44 }
0x34df   : > { %v6165_v20 = vpop.xlane.xlu1 %6164 }
0x34e0   : > { %v6166_v21 = vmul.f32 0.03125, %v6165_v20 }
0x34e2   : > { %v6167_v22 = vadd.f32 1e-05, %v6166_v21 }
0x34e4   : > { %10476 = vrsqrt.f32 %v6167_v22 }
0x34ee   : > { %v10477_v56 = vpop.eup %10476 }
0x34ef   : > { %v6169_v59 = vmul.f32 %v10477_v56, %v6161_v46  ;;  %v9259_v56 = vld [vmem:[%s11957_s10 + $0x20] sm:$0xff] }
0x34f1   : > { %v6176_v40 = vmul.f32 %v9244_v23, %v6169_v59 }
0x34f3   : > { %v6183_v25 = vadd.f32 %v9245_v24, %v6176_v40 }
0x34f5   : > { %9964 = vmatmul.mubr.msk.f32.vlgmr.msra.gmra.mrb[58].mxu0 %vm1335_vm1, %v6183_v25 }
0x34f6   : > { %9993 = vmatprep.mubr.msk.f32.mxu0 %vm10627_vm0, %v10628_v6  ;;  %10265 = vmatpush3.bf16.msra.mxu0 %v10264_v30 }
0x34f7   : > { %10266 = vmatprep.subr.bf16.mxu0 %v10626_v3 }
0x34fa   : > { %10268 = vmatpush3.bf16.msra.mxu0 %v10267_v53 }
0x34fb   : > { %9996 = vmatprep.subr.mxu0 %v10628_v6 }
0x35c8   : > { %v6264_v32 = vpop.f32.mrb[58].mxu0 }
0x35c9   : > { %v6265_v33 = vadd.f32 %v9246_v31, %v6264_v32  ;;  %v9965_v11 = vpop.f32.mrb[59].mxu0 }
0x35cb   : > { %v6268_v34 = vmax.f32 %v6265_v33, 0.0 }
0x35cd   : > { %9983 = vmatmul.mubr.msk.f32.vlgmr.msra.gmra.mrb[56].mxu1 %vm2513_vm3, %v6268_v34 }
0x35ce   : > { %10003 = vmatprep.mubr.msk.f32.mxu1 %vm10627_vm0, %v10628_v6 }
0x36a0   : > { %v6353_v36 = vpop.f32.mrb[56].mxu1 }
0x36a1   : > { %v6354_v37 = vadd.f32 %v9248_v35, %v6353_v36  ;;  %v9984_v38 = vpop.f32.mrb[57].mxu1 }
0x36a3   : > { %v6357_v39 = vadd.f32 %v6354_v37, %v6183_v25 }
0x36a5   : > { %v6360_v42 = vsel %vm1335_vm1, %v6357_v39, 0.0 }
0x36a6   : > { %6361 = vadd.xlane.f32.xlu1 %v6360_v42 }
0x3733   : > { %v6362_v43 = vpop.xlane.xlu1 %6361 }
0x3734   : > { %v6363_v45 = vmul.f32 0.03125, %v6362_v43  ;;  %v9260_v43 = vld [vmem:[%s11957_s10 + $0x28] sm:$0xff] }
0x3736   : > { %v6364_v47 = vsub.f32 %v6357_v39, %v6363_v45 }
0x3738   : > { %v6365_v8 = vmul.f32 %v6364_v47, %v6364_v47 }
0x373a   : > { %v6366_v48 = vsel %vm1335_vm1, %v6365_v8, 0.0 }
0x373b   : > { %6367 = vadd.xlane.f32.xlu1 %v6366_v48 }
0x37c8   : > { %v6368_v54 = vpop.xlane.xlu1 %6367 }
0x37c9   : > { %v6369_v55 = vmul.f32 0.03125, %v6368_v54 }
0x37cb   : > { %v6370_v57 = vadd.f32 1e-05, %v6369_v55 }
0x37cd   : > { %10478 = vrsqrt.f32 %v6370_v57  ;;  %v9268_v57 = vld [vmem:[%s11958_s11 + $0x1] ss:$0 sm:$0xff] }
0x37d7   : > { %v10479_v15 = vpop.eup %10478 }
0x37d8   : > { %v6372_v60 = vmul.f32 %v10479_v15, %v6364_v47 }
0x37da   : > { %v6379_v62 = vmul.f32 %v9250_v58, %v6372_v60 }
0x37dc   : > { %v11500_v46 = vadd.f32 %v9251_v61, %v6379_v62 }
0x37de   : > { %9994 = vmatmul.mubr.msk.f32.vlgmr.msra.gmra.mrb[60].mxu0 %vm1335_vm1, %v11500_v46 }
0x37df   : > { %9998 = vmatprep.mubr.msk.f32.mxu0 %vm10627_vm0, %v10628_v6 }
0x38b1   : > { %v6469_v44 = vpop.f32.mrb[60].mxu0 }
0x38b2   : > { %v11507_v0 = vadd.f32 %v9257_v63, %v6469_v44  ;;  %v9995_v2 = vpop.f32.mrb[61].mxu0 }
0x38b4   : > { %6481 = vrot.lane.b32.xlu1 %v11507_v0, %s11941_s1 }
0x3926   : > { %v6482_v4 = vpop.permute.xlu1 %6481 }
0x3927   : > { %9997 = vmatpush3.xpose.msk.msra.mxu0 %vm1423_vm2, %v6482_v4 }
0x3928   : > { %10006 = vmatprep.subr.mxu0 %v10628_v6 }
0x392a   : > { %9999 = vmatmul.mubr.msk.f32.vlgmr.msra.gmra.mrb[62].mxu0 %vm1423_vm2, %v11507_v0 }
0x392b   : > { %10008 = vmatprep.mubr.msk.f32.mxu0 %vm10627_vm0, %v10628_v6  ;;  %10007 = vmatpush3.msra.mxu0 %v9259_v56 }
0x392c   : > { %10016 = vmatprep.subr.mxu0 %v10628_v6 }
0x39fd   : > { %v6553_v27 = vpop.f32.mrb[62].mxu0 }
0x39fe   : > { %v6554_v5 = vadd.f32 %v6553_v27, %v11245_v1  ;;  %v10000_v7 = vpop.f32.mrb[63].mxu0  ;;  %v9261_v27 = vld [vmem:[%s11957_s10 + $0x30] sm:$0xff] }
0x3a00   : > { %v6557_v9 = vsel %vm1423_vm2, %v6554_v5, -inf }
0x3a01   : > { %6558 = vmax.xlane.f32.xlu0 %v6557_v9 }
0x3a17   : > { %6568 = vrot.lane.b32.xlu0 %v11507_v0, %s11942_s23  ;;  %s11990_s23 = sld [smem:[#allocation52_spill]] }
0x3a1b   : > { %6724 = vrot.lane.b32.xlu0 %v11507_v0, %s11944_s5 }
0x3a1d   : > { %s9352_s16 = sshll.u32 %s11990_s23, 7 }
0x3a8e   : > { %v6559_v10 = vpop.xlane.xlu0 %6558 }
0x3a8f   : > { %v6560_v12 = vsub.f32 %v6554_v5, %v6559_v10 }
0x3a91   : > { %v6561_v13 = vmul.f32 1.442695, %v6560_v12 }
0x3a92   : > { %v6569_v14 = vpop.permute.xlu0 %6568 }
0x3a93   : > { %10480 = vpow2.f32 %v6561_v13  ;;  %10002 = vmatpush3.msra.mxu1 %v6569_v14 }
0x3a94   : > { %10011 = vmatprep.subr.mxu1 %v10628_v6 }
0x3a96   : > { %v6725_v22 = vpop.permute.xlu0 %6724 }
0x3a9d   : > { %v10481_v17 = vpop.eup %10480 }
0x3a9e   : > { %v6563_v18 = vsel %vm1423_vm2, %v10481_v17, 0.0 }
0x3a9f   : > { %6564 = vadd.xlane.f32.xlu1 %v6563_v18 }
0x3ab0   : > { %6726 = vrot.lane.b32.xlu1 %v11507_v0, %s11943_s28 }
0x3b2c   : > { %v6565_v41 = vpop.xlane.xlu1 %6564 }
0x3b2d   : > { %10482 = vrcp.f32 %v6565_v41 }
0x3b30   : > { %v6727_v21 = vpop.permute.xlu1 %6726 }
0x3b37   : > { %v10483_v19 = vpop.eup %10482 }
0x3b38   : > { %v6567_v20 = vmul.f32 %v10483_v19, %v10481_v17 }
0x3b3a   : > { %10004 = vmatmul.mubr.msk.f32.vlgmr.msra.gmra.mrb[58].mxu1 %vm1423_vm2, %v6567_v20  ;;  %v9262_v20 = vld [vmem:[%s11957_s10 + $0x38] sm:$0xff] }
0x3b3b   : > { %10012 = vmatpush3.xpose.msk.msra.mxu1 %vm1423_vm2, %v6727_v21  ;;  %10013 = vmatprep.mubr.msk.f32.mxu1 %vm10627_vm0, %v10628_v6 }
0x3b3c   : > { %10021 = vmatprep.subr.mxu1 %v10628_v6 }
0x3b3e   : > { %10014 = vmatmul.mubr.msk.f32.vlgmr.msra.gmra.mrb[60].mxu1 %vm1423_vm2, %v6725_v22 }
0x3b3f   : > { %10023 = vmatprep.mubr.msk.f32.mxu1 %vm10627_vm0, %v10628_v6  ;;  %10022 = vmatpush3.msra.mxu1 %v9260_v43 }
0x3b40   : > { %10031 = vmatprep.subr.mxu1 %v10628_v6 }
0x3c0d   : > { %v6640_v23 = vpop.f32.mrb[58].mxu1 }
0x3c0e   : > { %v10005_v59 = vpop.f32.mrb[59].mxu1  ;;  %10009 = vmatmul.mubr.msk.f32.vlgmr.msra.gmra.mrb[64].mxu0 %vm1423_vm2, %v6640_v23 }
0x3c0f   : > { %10018 = vmatprep.mubr.msk.f32.mxu0 %vm10627_vm0, %v10628_v6 }
0x3c11   : > { %v6798_v24 = vpop.f32.mrb[60].mxu1 }
0x3c12   : > { %v6799_v40 = vadd.f32 %v6798_v24, %v11245_v1  ;;  %v10015_v25 = vpop.f32.mrb[61].mxu1  ;;  %v9292_v24 = vld [vmem:[%s11959_s8 + $0x20] sm:$0xff] }
0x3c14   : > { %v6802_v26 = vsel %vm1423_vm2, %v6799_v40, -inf }
0x3c15   : > { %6803 = vmax.xlane.f32.xlu0 %v6802_v26  ;;  %v9294_v26 = vld [vmem:[%s11959_s8 + $0x30] sm:$0xff] }
0x3c2b   : > { %6813 = vrot.lane.b32.xlu0 %v11507_v0, %s11945_s13  ;;  %s11983_s13 = smov %s11976_s22 }
0x3c2f   : > { %6963 = vrot.lane.b32.xlu0 %v11507_v0, %s11947_s25 }
0x3ca2   : > { %v6804_v28 = vpop.xlane.xlu0 %6803 }
0x3ca3   : > { %v6805_v29 = vsub.f32 %v6799_v40, %v6804_v28  ;;  %v9293_v40 = vld [vmem:[%s11959_s8 + $0x28] sm:$0xff]  ;;  %v9295_v28 = vld [vmem:[%s11959_s8 + $0x38] sm:$0xff] }
0x3ca4   : > { %v10276_v25 = vpack.c.bf16 %v9293_v40, %v9292_v24 }
0x3ca5   : > { %v6806_v31 = vmul.f32 1.442695, %v6805_v29 }
0x3ca6   : > { %v6814_v32 = vpop.permute.xlu0 %6813 }
0x3ca7   : > { %10484 = vpow2.f32 %v6806_v31  ;;  %10017 = vmatpush3.msra.mxu0 %v6814_v32  ;;  %v10279_v32 = vpack.c.bf16 %v9295_v28, %v9294_v26 }
0x3ca8   : > { %10026 = vmatprep.subr.mxu0 %v10628_v6 }
0x3caa   : > { %v6964_v42 = vpop.permute.xlu0 %6963 }
0x3cb1   : > { %v10485_v33 = vpop.eup %10484 }
0x3cb2   : > { %v6808_v11 = vsel %vm1423_vm2, %v10485_v33, 0.0 }
0x3cb3   : > { %6809 = vadd.xlane.f32.xlu1 %v6808_v11 }
0x3cc4   : > { %6965 = vrot.lane.b32.xlu1 %v11507_v0, %s11946_s21 }
0x3ce1   : > { %v6713_v34 = vpop.f32.mrb[64].mxu0 }
0x3ce2   : > { %v10010_v35 = vpop.f32.mrb[65].mxu0  ;;  %v6723_v15 = vadd.f32 %v9268_v57, %v6713_v34 }
0x3d40   : > { %v6810_v36 = vpop.xlane.xlu1 %6809 }
0x3d41   : > { %10486 = vrcp.f32 %v6810_v36 }
0x3d44   : > { %v6966_v39 = vpop.permute.xlu1 %6965 }
0x3d4b   : > { %v10487_v37 = vpop.eup %10486 }
0x3d4c   : > { %v6812_v38 = vmul.f32 %v10487_v37, %v10485_v33  ;;  %v9297_v37 = vld [vmem:[%s11965_s6 + $0x1] ss:$0 sm:$0xff] }
0x3d4e   : > { %10019 = vmatmul.mubr.msk.f32.vlgmr.msra.gmra.mrb[66].mxu0 %vm1423_vm2, %v6812_v38 }
0x3d4f   : > { %10027 = vmatpush3.xpose.msk.msra.mxu0 %vm1423_vm2, %v6966_v39  ;;  %10028 = vmatprep.mubr.msk.f32.mxu0 %vm10627_vm0, %v10628_v6 }
0x3d50   : > { %10036 = vmatprep.subr.mxu0 %v10628_v6 }
0x3d52   : > { %10029 = vmatmul.mubr.msk.f32.vlgmr.msra.gmra.mrb[68].mxu0 %vm1423_vm2, %v6964_v42 }
0x3d53   : > { %10038 = vmatprep.mubr.msk.f32.mxu0 %vm10627_vm0, %v10628_v6  ;;  %10037 = vmatpush3.msra.mxu0 %v9261_v27 }
0x3d54   : > { %10046 = vmatprep.subr.mxu0 %v10628_v6 }
0x3e21   : > { %v6885_v45 = vpop.f32.mrb[66].mxu0 }
0x3e22   : > { %v10020_v47 = vpop.f32.mrb[67].mxu0  ;;  %10024 = vmatmul.mubr.msk.f32.vlgmr.msra.gmra.mrb[62].mxu1 %vm1423_vm2, %v6885_v45 }
0x3e23   : > { %10033 = vmatprep.mubr.msk.f32.mxu1 %vm10627_vm0, %v10628_v6 }
0x3e25   : > { %v7037_v8 = vpop.f32.mrb[68].mxu0 }
0x3e26   : > { %v7038_v48 = vadd.f32 %v7037_v8, %v11245_v1  ;;  %v10030_v49 = vpop.f32.mrb[69].mxu0 }
0x3e27   : > { %v9286_v49 = vld [vmem:[%s11962_s12 + $0x28] sm:$0xff] }
0x3e28   : > { %v7041_v50 = vsel %vm1423_vm2, %v7038_v48, -inf }
0x3e29   : > { %7042 = vmax.xlane.f32.xlu0 %v7041_v50 }
0x3e3f   : > { %7052 = vrot.lane.b32.xlu0 %v11507_v0, %s11948_s2  ;;  %s11989_s2 = sld [smem:[#allocation46_spill]] }
0x3e43   : > { %7202 = vrot.lane.b32.xlu0 %v11507_v0, %s11950_s26 }
0x3eb6   : > { %v7043_v30 = vpop.xlane.xlu0 %7042 }
0x3eb7   : > { %v7044_v51 = vsub.f32 %v7038_v48, %v7043_v30  ;;  %v9285_v48 = vld [vmem:[%s11962_s12 + $0x20] sm:$0xff]  ;;  %v9287_v30 = vld [vmem:[%s11962_s12 + $0x30] sm:$0xff] }
0x3eb8   : > { %v10270_v50 = vpack.c.bf16 %v9286_v49, %v9285_v48 }
0x3eb9   : > { %v7045_v52 = vmul.f32 1.442695, %v7044_v51  ;;  %v9288_v51 = vld [vmem:[%s11962_s12 + $0x38] sm:$0xff] }
0x3eba   : > { %v7053_v53 = vpop.permute.xlu0 %7052 }
0x3ebb   : > { %10488 = vpow2.f32 %v7045_v52  ;;  %10032 = vmatpush3.msra.mxu1 %v7053_v53  ;;  %v10273_v52 = vpack.c.bf16 %v9288_v51, %v9287_v30 }
0x3ebc   : > { %10041 = vmatprep.subr.mxu1 %v10628_v6 }
0x3ebe   : > { %v7203_v4 = vpop.permute.xlu0 %7202 }
0x3ec5   : > { %v10489_v54 = vpop.eup %10488 }
0x3ec6   : > { %v7047_v55 = vsel %vm1423_vm2, %v10489_v54, 0.0 }
0x3ec7   : > { %7048 = vadd.xlane.f32.xlu1 %v7047_v55 }
0x3ed8   : > { %7204 = vrot.lane.b32.xlu1 %v11507_v0, %s11949_s18 }
0x3ef5   : > { %v6958_v58 = vpop.f32.mrb[62].mxu1 }
0x3ef6   : > { %v6962_v60 = vadd.f32 %v6958_v58, %v6723_v15  ;;  %v10025_v61 = vpop.f32.mrb[63].mxu1  ;;  %v9283_v15 = vld [vmem:[%s11963_s20 + $0x1] ss:$0 sm:$0xff] }
0x3f54   : > { %v7049_v62 = vpop.xlane.xlu1 %7048 }
0x3f55   : > { %10490 = vrcp.f32 %v7049_v62 }
0x3f58   : > { %v7205_v2 = vpop.permute.xlu1 %7204 }
0x3f5f   : > { %v10491_v63 = vpop.eup %10490 }
0x3f60   : > { %v7051_v44 = vmul.f32 %v10491_v63, %v10489_v54  ;;  %v9290_v63 = vld [vmem:[%s11966_s19 + $0x1] ss:$0 sm:$0xff] }
0x3f62   : > { %10034 = vmatmul.mubr.msk.f32.vlgmr.msra.gmra.mrb[64].mxu1 %vm1423_vm2, %v7051_v44 }
0x3f63   : > { %10042 = vmatpush3.xpose.msk.msra.mxu1 %vm1423_vm2, %v7205_v2  ;;  %10043 = vmatprep.mubr.msk.f32.mxu1 %vm10627_vm0, %v10628_v6 }
0x3f64   : > { %10051 = vmatprep.subr.mxu1 %v10628_v6 }
0x3f66   : > { %10044 = vmatmul.mubr.msk.f32.vlgmr.msra.gmra.mrb[66].mxu1 %vm1423_vm2, %v7203_v4 }
0x3f67   : > { %10053 = vmatprep.mubr.msk.f32.mxu1 %vm10627_vm0, %v10628_v6  ;;  %10052 = vmatpush3.msra.mxu1 %v9262_v20  ;;  %v9299_v20 = vld [vmem:[%s11967_s30 + $0x20] sm:$0xff] }
0x3f68   : > { %10275 = vmatprep.subr.bf16.mxu1 %v10626_v3 }
0x4035   : > { %v7124_v5 = vpop.f32.mrb[64].mxu1 }
0x4036   : > { %v10035_v7 = vpop.f32.mrb[65].mxu1  ;;  %10039 = vmatmul.mubr.msk.f32.vlgmr.msra.gmra.mrb[70].mxu0 %vm1423_vm2, %v7124_v5 }
0x4037   : > { %10048 = vmatprep.mubr.msk.f32.mxu0 %vm10627_vm0, %v10628_v6 }
0x4039   : > { %v7276_v9 = vpop.f32.mrb[66].mxu1 }
0x403a   : > { %v7277_v10 = vadd.f32 %v7276_v9, %v11245_v1  ;;  %v10045_v12 = vpop.f32.mrb[67].mxu1 }
0x403c   : > { %v7280_v13 = vsel %vm1423_vm2, %v7277_v10, -inf }
0x403d   : > { %7281 = vmax.xlane.f32.xlu0 %v7280_v13 }
0x4053   : > { %7291 = vrot.lane.b32.xlu0 %v11507_v0, %s11951_s3  ;;  %s11986_s3 = sld [smem:[#allocation43_spill]] }
0x40ca   : > { %v7282_v14 = vpop.xlane.xlu0 %7281 }
0x40cb   : > { %v7283_v17 = vsub.f32 %v7277_v10, %v7282_v14 }
0x40cd   : > { %v7284_v18 = vmul.f32 1.442695, %v7283_v17 }
0x40ce   : > { %v7292_v41 = vpop.permute.xlu0 %7291 }
0x40cf   : > { %10492 = vpow2.f32 %v7284_v18  ;;  %10047 = vmatpush3.msra.mxu0 %v7292_v41 }
0x40d0   : > { %10269 = vmatprep.subr.bf16.mxu0 %v10626_v3 }
0x40d9   : > { %v10493_v19 = vpop.eup %10492 }
0x40da   : > { %v7286_v1 = vsel %vm1423_vm2, %v10493_v19, 0.0 }
0x40db   : > { %7287 = vadd.xlane.f32.xlu1 %v7286_v1 }
0x4109   : > { %v7197_v0 = vpop.f32.mrb[70].mxu0 }
0x410a   : > { %v7201_v21 = vadd.f32 %v7197_v0, %v6962_v60  ;;  %v10040_v22 = vpop.f32.mrb[71].mxu0  ;;  %v9284_v60 = vld [vmem:[%s11964_s24 + $0x1] ss:$0 sm:$0xff] }
0x4168   : > { %v7288_v56 = vpop.xlane.xlu1 %7287 }
0x4169   : > { %10494 = vrcp.f32 %v7288_v56 }
0x4173   : > { %v10495_v23 = vpop.eup %10494 }
0x4174   : > { %v7290_v59 = vmul.f32 %v10495_v23, %v10493_v19 }
0x4176   : > { %10049 = vmatmul.mubr.msk.f32.vlgmr.msra.gmra.mrb[72].mxu0 %vm1423_vm2, %v7290_v59 }
0x4177   : > { %10064 = vmatprep.mubr.msk.f32.mxu0 %vm10627_vm0, %v10628_v6  ;;  %10271 = vmatpush3.bf16.msra.mxu0 %v10270_v50  ;;  %v9308_v50 = vld [vmem:[%s11969_s7 + $0x1] ss:$0 sm:$0xff] }
0x4178   : > { %10272 = vmatprep.subr.bf16.mxu0 %v10626_v3 }
0x417b   : > { %10274 = vmatpush3.bf16.msra.mxu0 %v10273_v52 }
0x417c   : > { %10078 = vmatprep.subr.mxu0 %v10628_v6 }
0x4249   : > { %v7363_v29 = vpop.f32.mrb[72].mxu0 }
0x424a   : > { %v10050_v31 = vpop.f32.mrb[73].mxu0  ;;  %10054 = vmatmul.mubr.msk.f32.vlgmr.msra.gmra.mrb[68].mxu1 %vm1423_vm2, %v7363_v29 }
0x424b   : > { %10277 = vmatpush3.bf16.msra.mxu1 %v10276_v25  ;;  %10075 = vmatprep.mubr.msk.f32.mxu1 %vm10627_vm0, %v10628_v6 }
0x424c   : > { %10278 = vmatprep.subr.bf16.mxu1 %v10626_v3 }
0x424f   : > { %10280 = vmatpush3.bf16.msra.mxu1 %v10279_v32 }
0x4250   : > { %10083 = vmatprep.subr.mxu1 %v10628_v6 }
0x4252   : > { %10076 = vmatmul.mubr.msk.f32.vlgmr.msra.gmra.mrb[70].mxu1 %vm1335_vm1, %v11346_v16 }
0x4253   : > { %10085 = vmatprep.mubr.msk.f32.mxu1 %vm10627_vm0, %v10628_v6 }
0x431d   : > { %v7436_v33 = vpop.f32.mrb[68].mxu1 }
0x431e   : > { %v7440_v11 = vadd.f32 %v7436_v33, %v7201_v21  ;;  %v10055_v34 = vpop.f32.mrb[69].mxu1 }
0x4320   : > { %v7441_v35 = vadd.f32 %v7440_v11, %v11500_v46 }
0x4322   : > { %v7446_v36 = vsel %vm1335_vm1, %v7441_v35, 0.0 }
0x4323   : > { %7447 = vadd.xlane.f32.xlu1 %v7446_v36  ;;  %v9300_v36 = vld [vmem:[%s11967_s30 + $0x28] sm:$0xff] }
0x4325   : > { %v7638_v38 = vpop.f32.mrb[70].mxu1 }
0x4326   : > { %v11614_v39 = vadd.f32 %v9297_v37, %v7638_v38  ;;  %v10077_v42 = vpop.f32.mrb[71].mxu1 }
0x4328   : > { %7736 = vrot.lane.b32.xlu0 %v11614_v39, %s11941_s1 }
0x439a   : > { %v7737_v16 = vpop.permute.xlu0 %7736 }
0x439b   : > { %10084 = vmatpush3.msra.mxu1 %v7737_v16 }
0x439c   : > { %10093 = vmatprep.subr.mxu1 %v10628_v6 }
0x43b0   : > { %v7448_v46 = vpop.xlane.xlu1 %7447 }
0x43b1   : > { %v7449_v43 = vmul.f32 0.03125, %v7448_v46 }
0x43b3   : > { %v7450_v45 = vsub.f32 %v7441_v35, %v7449_v43 }
0x43b5   : > { %v7451_v47 = vmul.f32 %v7450_v45, %v7450_v45 }
0x43b7   : > { %v7452_v8 = vsel %vm1335_vm1, %v7451_v47, 0.0 }
0x43b8   : > { %7453 = vadd.xlane.f32.xlu1 %v7452_v8 }
0x4445   : > { %v7454_v53 = vpop.xlane.xlu1 %7453 }
0x4446   : > { %v7455_v54 = vmul.f32 0.03125, %v7454_v53 }
0x4448   : > { %v7456_v55 = vadd.f32 1e-05, %v7455_v54 }
0x444a   : > { %10496 = vrsqrt.f32 %v7456_v55 }
0x4454   : > { %v10497_v57 = vpop.eup %10496 }
0x4455   : > { %v7458_v58 = vmul.f32 %v10497_v57, %v7450_v45 }
0x4457   : > { %v7465_v61 = vmul.f32 %v9283_v15, %v7458_v58 }
0x4459   : > { %v11628_v62 = vadd.f32 %v9284_v60, %v7465_v61  ;;  %v9301_v60 = vld [vmem:[%s11967_s30 + $0x30] sm:$0xff] }
0x445b   : > { %10065 = vmatmul.mubr.msk.f32.vlgmr.msra.gmra.mrb[74].mxu0 %vm1335_vm1, %v11628_v62 }
0x445c   : > { %10079 = vmatpush3.xpose.msk.msra.mxu0 %vm1423_vm2, %v11614_v39  ;;  %10080 = vmatprep.mubr.msk.f32.mxu0 %vm10627_vm0, %v10628_v6 }
0x445d   : > { %10088 = vmatprep.subr.mxu0 %v10628_v6 }
0x452e   : > { %v7555_v44 = vpop.f32.mrb[74].mxu0 }
0x452f   : > { %v11638_v2 = vadd.f32 %v9290_v63, %v7555_v44  ;;  %v10066_v4 = vpop.f32.mrb[75].mxu0 }
0x4531   : > { %7892 = vrot.lane.b32.xlu0 %v11638_v2, %s11944_s5  ;;  %10081 = vmatmul.mubr.msk.f32.vlgmr.msra.gmra.mrb[76].mxu0 %vm1423_vm2, %v11638_v2 }
0x4532   : > { %10090 = vmatprep.mubr.msk.f32.mxu0 %vm10627_vm0, %v10628_v6  ;;  %10089 = vmatpush3.msra.mxu0 %v9299_v20 }
0x4533   : > { %10098 = vmatprep.subr.mxu0 %v10628_v6 }
0x45a3   : > { %v7893_v1 = vpop.permute.xlu0 %7892 }
0x4604   : > { %v7721_v27 = vpop.f32.mrb[76].mxu0 }
0x4605   : > { %v10082_v5 = vpop.f32.mrb[77].mxu0  ;;  %v7725_v7 = vsel %vm1423_vm2, %v7721_v27, -inf }
0x4606   : > { %7726 = vmax.xlane.f32.xlu1 %v7725_v7 }
0x4693   : > { %v7727_v9 = vpop.xlane.xlu1 %7726 }
0x4694   : > { %v7728_v10 = vsub.f32 %v7721_v27, %v7727_v9 }
0x4696   : > { %v7729_v12 = vmul.f32 1.442695, %v7728_v10 }
0x4698   : > { %10498 = vpow2.f32 %v7729_v12 }
0x46a2   : > { %v10499_v13 = vpop.eup %10498 }
0x46a3   : > { %v7731_v14 = vsel %vm1423_vm2, %v10499_v13, 0.0 }
0x46a4   : > { %7732 = vadd.xlane.f32.xlu1 %v7731_v14 }
0x46b5   : > { %7894 = vrot.lane.b32.xlu1 %v11614_v39, %s11944_s5  ;;  %s11982_s5 = sld [smem:[#allocation34_spill]] }
0x4731   : > { %v7733_v17 = vpop.xlane.xlu1 %7732 }
0x4732   : > { %10500 = vrcp.f32 %v7733_v17 }
0x4735   : > { %v7895_v19 = vpop.permute.xlu1 %7894 }
0x473c   : > { %v10501_v18 = vpop.eup %10500 }
0x473d   : > { %v7735_v41 = vmul.f32 %v10501_v18, %v10499_v13  ;;  %v9302_v13 = vld [vmem:[%s11967_s30 + $0x38] sm:$0xff] }
0x473f   : > { %10086 = vmatmul.mubr.msk.f32.vlgmr.msra.gmra.mrb[72].mxu1 %vm1423_vm2, %v7735_v41 }
0x4740   : > { %10094 = vmatpush3.xpose.msk.msra.mxu1 %vm1423_vm2, %v7895_v19  ;;  %10095 = vmatprep.mubr.msk.f32.mxu1 %vm10627_vm0, %v10628_v6 }
0x4741   : > { %10103 = vmatprep.subr.mxu1 %v10628_v6 }
0x4743   : > { %10096 = vmatmul.mubr.msk.f32.vlgmr.msra.gmra.mrb[74].mxu1 %vm1423_vm2, %v7893_v1 }
0x4744   : > { %10105 = vmatprep.mubr.msk.f32.mxu1 %vm10627_vm0, %v10628_v6  ;;  %10104 = vmatpush3.msra.mxu1 %v9300_v36 }
0x4745   : > { %10113 = vmatprep.subr.mxu1 %v10628_v6 }
0x4812   : > { %v7808_v0 = vpop.f32.mrb[72].mxu1 }
0x4813   : > { %v10087_v21 = vpop.f32.mrb[73].mxu1  ;;  %10091 = vmatmul.mubr.msk.f32.vlgmr.msra.gmra.mrb[78].mxu0 %vm1423_vm2, %v7808_v0 }
0x4814   : > { %10100 = vmatprep.mubr.msk.f32.mxu0 %vm10627_vm0, %v10628_v6 }
0x4816   : > { %v7966_v22 = vpop.f32.mrb[74].mxu1 }
0x4817   : > { %v10097_v56 = vpop.f32.mrb[75].mxu1  ;;  %v7970_v23 = vsel %vm1423_vm2, %v7966_v22, -inf }
0x4818   : > { %7971 = vmax.xlane.f32.xlu0 %v7970_v23 }
0x482e   : > { %7981 = vrot.lane.b32.xlu0 %v11614_v39, %s11943_s28  ;;  %s11991_s28 = sld [smem:[#allocation47_spill]] }
0x4832   : > { %8131 = vrot.lane.b32.xlu0 %v11638_v2, %s11947_s25 }
0x48a5   : > { %v7972_v59 = vpop.xlane.xlu0 %7971 }
0x48a6   : > { %v7973_v24 = vsub.f32 %v7966_v22, %v7972_v59 }
0x48a8   : > { %v7974_v40 = vmul.f32 1.442695, %v7973_v24 }
0x48a9   : > { %v7982_v25 = vpop.permute.xlu0 %7981 }
0x48aa   : > { %10502 = vpow2.f32 %v7974_v40  ;;  %10099 = vmatpush3.msra.mxu0 %v7982_v25 }
0x48ab   : > { %10108 = vmatprep.subr.mxu0 %v10628_v6 }
0x48ad   : > { %v8132_v35 = vpop.permute.xlu0 %8131 }
0x48b4   : > { %v10503_v26 = vpop.eup %10502 }
0x48b5   : > { %v7976_v28 = vsel %vm1423_vm2, %v10503_v26, 0.0 }
0x48b6   : > { %7977 = vadd.xlane.f32.xlu1 %v7976_v28  ;;  %v9325_v28 = vld [vmem:[%s11971_s17 + $0x20] sm:$0xff] }
0x48c7   : > { %8133 = vrot.lane.b32.xlu1 %v11614_v39, %s11947_s25  ;;  %s11985_s25 = sld [smem:[#allocation45_spill]] }
0x48e6   : > { %v7881_v29 = vpop.f32.mrb[78].mxu0 }
0x48e7   : > { %v10092_v31 = vpop.f32.mrb[79].mxu0  ;;  %v7891_v30 = vadd.f32 %v9308_v50, %v7881_v29  ;;  %v9326_v29 = vld [vmem:[%s11971_s17 + $0x28] sm:$0xff]  ;;  %v9324_v50 = vld [vmem:[%s11982_s5 + $0x1] ss:$0 sm:$0xff] }
0x48e8   : > { %v10282_v31 = vpack.c.bf16 %v9326_v29, %v9325_v28 }
0x4943   : > { %v7978_v32 = vpop.xlane.xlu1 %7977 }
0x4944   : > { %10504 = vrcp.f32 %v7978_v32  ;;  %v9328_v32 = vld [vmem:[%s11971_s17 + $0x38] sm:$0xff] }
0x4947   : > { %v8134_v34 = vpop.permute.xlu1 %8133 }
0x494e   : > { %v10505_v33 = vpop.eup %10504 }
0x494f   : > { %v7980_v11 = vmul.f32 %v10505_v33, %v10503_v26 }
0x4951   : > { %10101 = vmatmul.mubr.msk.f32.vlgmr.msra.gmra.mrb[80].mxu0 %vm1423_vm2, %v7980_v11  ;;  %v9332_v11 = vld [vmem:[%s11973_s0 + $0x40] sm:$0xff] }
0x4952   : > { %10109 = vmatpush3.xpose.msk.msra.mxu0 %vm1423_vm2, %v8134_v34  ;;  %10110 = vmatprep.mubr.msk.f32.mxu0 %vm10627_vm0, %v10628_v6  ;;  %v9333_v34 = vld [vmem:[%s11973_s0 + $0x48] sm:$0xff] }
0x4953   : > { %10118 = vmatprep.subr.mxu0 %v10628_v6  ;;  %v10288_v36 = vpack.c.bf16 %v9333_v34, %v9332_v11 }
0x4955   : > { %10111 = vmatmul.mubr.msk.f32.vlgmr.msra.gmra.mrb[82].mxu0 %vm1423_vm2, %v8132_v35  ;;  %v9334_v35 = vld [vmem:[%s11973_s0 + $0x50] sm:$0xff] }
0x4956   : > { %10120 = vmatprep.mubr.msk.f32.mxu0 %vm10627_vm0, %v10628_v6  ;;  %10119 = vmatpush3.msra.mxu0 %v9301_v60 }
0x4957   : > { %10128 = vmatprep.subr.mxu0 %v10628_v6 }
0x4a24   : > { %v8053_v37 = vpop.f32.mrb[80].mxu0 }
0x4a25   : > { %v10102_v38 = vpop.f32.mrb[81].mxu0  ;;  %10106 = vmatmul.mubr.msk.f32.vlgmr.msra.gmra.mrb[76].mxu1 %vm1423_vm2, %v8053_v37  ;;  %v9335_v37 = vld [vmem:[%s11973_s0 + $0x58] sm:$0xff] }
0x4a26   : > { %10115 = vmatprep.mubr.msk.f32.mxu1 %vm10627_vm0, %v10628_v6  ;;  %v10291_v38 = vpack.c.bf16 %v9335_v37, %v9334_v35 }
0x4a28   : > { %v8205_v42 = vpop.f32.mrb[82].mxu0 }
0x4a29   : > { %v10112_v16 = vpop.f32.mrb[83].mxu0  ;;  %v8209_v46 = vsel %vm1423_vm2, %v8205_v42, -inf }
0x4a2a   : > { %8210 = vmax.xlane.f32.xlu0 %v8209_v46  ;;  %v9337_v16 = vld [vmem:[%s11973_s0 + $0x68] sm:$0xff] }
0x4a40   : > { %8220 = vrot.lane.b32.xlu0 %v11614_v39, %s11946_s21  ;;  %s11984_s21 = sld [smem:[#allocation40_spill]] }
0x4a44   : > { %8370 = vrot.lane.b32.xlu0 %v11638_v2, %s11950_s26 }
0x4ab7   : > { %v8211_v43 = vpop.xlane.xlu0 %8210 }
0x4ab8   : > { %v8212_v45 = vsub.f32 %v8205_v42, %v8211_v43  ;;  %v9336_v42 = vld [vmem:[%s11973_s0 + $0x60] sm:$0xff] }
0x4ab9   : > { %v10294_v46 = vpack.c.bf16 %v9337_v16, %v9336_v42 }
0x4aba   : > { %v8213_v47 = vmul.f32 1.442695, %v8212_v45 }
0x4abb   : > { %v8221_v8 = vpop.permute.xlu0 %8220 }
0x4abc   : > { %10506 = vpow2.f32 %v8213_v47  ;;  %10114 = vmatpush3.msra.mxu1 %v8221_v8 }
0x4abd   : > { %10123 = vmatprep.subr.mxu1 %v10628_v6 }
0x4abf   : > { %v8371_v58 = vpop.permute.xlu0 %8370 }
0x4ac6   : > { %v10507_v48 = vpop.eup %10506 }
0x4ac7   : > { %v8215_v49 = vsel %vm1423_vm2, %v10507_v48, 0.0 }
0x4ac8   : > { %8216 = vadd.xlane.f32.xlu1 %v8215_v49 }
0x4ad9   : > { %8372 = vrot.lane.b32.xlu1 %v11614_v39, %s11950_s26  ;;  %s11988_s26 = sld [smem:[#allocation49_spill]] }
0x4adf   : > { %s1290_s22 = sand.u32 1, %s11988_s26   ;;  %s10640_s26 = smov [#allocation2]  }
0x4ae0   : > { %s9113_s15 = sshll.u32 %s1290_s22, 3 }
0x4ae1   : > { %s1292_s5 = scalar_lea.vmem [#allocation2], %s9113_s15 }
0x4af8   : > { %v8126_v51 = vpop.f32.mrb[76].mxu1 }
0x4af9   : > { %v8130_v52 = vadd.f32 %v8126_v51, %v7891_v30  ;;  %v10107_v53 = vpop.f32.mrb[77].mxu1 }
0x4afa   : > { %v9339_v53 = vld [vmem:[%s11973_s0 + $0x78] sm:$0xff] }
0x4b55   : > { %v8217_v54 = vpop.xlane.xlu1 %8216 }
0x4b56   : > { %10508 = vrcp.f32 %v8217_v54 }
0x4b59   : > { %v8373_v15 = vpop.permute.xlu1 %8372 }
0x4b60   : > { %v10509_v55 = vpop.eup %10508 }
0x4b61   : > { %v8219_v57 = vmul.f32 %v10509_v55, %v10507_v48  ;;  %v9323_v48 = vld [vmem:[%s11974_s4 + $0x1] ss:$0 sm:$0xff] }
0x4b62   : > { %v9330_v55 = vld [vmem:[%s11983_s13 + $0x1] ss:$0 sm:$0xff]  ;;  %s8978_s13 = sshll.u32 %s1292_s5, 4  ;;  %s11769_s13 = int_to_ptr.vmem [resolvable:$true] %s8978_s13 }
0x4b63   : > { %10116 = vmatmul.mubr.msk.f32.vlgmr.msra.gmra.mrb[78].mxu1 %vm1423_vm2, %v8219_v57 }
0x4b64   : > { %10124 = vmatpush3.xpose.msk.msra.mxu1 %vm1423_vm2, %v8373_v15  ;;  %10125 = vmatprep.mubr.msk.f32.mxu1 %vm10627_vm0, %v10628_v6 }
0x4b65   : > { %10133 = vmatprep.subr.mxu1 %v10628_v6 }
0x4b67   : > { %10126 = vmatmul.mubr.msk.f32.vlgmr.msra.gmra.mrb[80].mxu1 %vm1423_vm2, %v8371_v58 }
0x4b68   : > { %10135 = vmatprep.mubr.msk.f32.mxu1 %vm10627_vm0, %v10628_v6  ;;  %10134 = vmatpush3.msra.mxu1 %v9302_v13 }
0x4b69   : > { %10287 = vmatprep.subr.bf16.mxu1 %v10626_v3 }
0x4c36   : > { %v8292_v61 = vpop.f32.mrb[78].mxu1 }
0x4c37   : > { %v10117_v63 = vpop.f32.mrb[79].mxu1  ;;  %10121 = vmatmul.mubr.msk.f32.vlgmr.msra.gmra.mrb[84].mxu0 %vm1423_vm2, %v8292_v61  ;;  %v9341_v61 = vld [vmem:[%s11984_s21 + $0x1] ss:$0 sm:$0xff]  ;;  %s11767_s21 = scalar_lea.hbm %s11991_s28, %s9352_s16 }
0x4c38   : > { %10130 = vmatprep.mubr.msk.f32.mxu0 %vm10627_vm0, %v10628_v6 }
0x4c3a   : > { %v8444_v44 = vpop.f32.mrb[80].mxu1 }
0x4c3b   : > { %v10127_v2 = vpop.f32.mrb[81].mxu1  ;;  %v8448_v4 = vsel %vm1423_vm2, %v8444_v44, -inf }
0x4c3c   : > { %8449 = vmax.xlane.f32.xlu0 %v8448_v4 }
0x4c52   : > { %8459 = vrot.lane.b32.xlu0 %v11614_v39, %s11949_s18  ;;  %s11987_s18 = sld [smem:[#allocation44_spill]] }
0x4c58   : > { %v9348_v34 = vld [vmem:[%s11987_s18] ss:$0 sm:$0xff]  ;;  %s10520_s18 = scalar_lea.vmem %s11769_s13, 128 }
0x4c59   : > { %p10521_p11 = scmp.ne.s32.totalorder %s11769_s13, %s10520_s18 }
0x4c5b   : > { %p10522_p12 = pnand %p10521_p11, %p10899_p5 }
0x4c5d   : > { %p10523_p13 = pneg %p10522_p12 }
0x4cc9   : > { %v8450_v27 = vpop.xlane.xlu0 %8449 }
0x4cca   : > { %v8451_v5 = vsub.f32 %v8444_v44, %v8450_v27 }
0x4ccc   : > { %v8452_v7 = vmul.f32 1.442695, %v8451_v5 }
0x4ccd   : > { %v8460_v9 = vpop.permute.xlu0 %8459 }
0x4cce   : > { %10510 = vpow2.f32 %v8452_v7  ;;  %10129 = vmatpush3.msra.mxu0 %v8460_v9 }
0x4ccf   : > { %10281 = vmatprep.subr.bf16.mxu0 %v10626_v3 }
0x4cd8   : > { %v10511_v10 = vpop.eup %10510 }
0x4cd9   : > { %v8454_v12 = vsel %vm1423_vm2, %v10511_v10, 0.0 }
0x4cda   : > { %8455 = vadd.xlane.f32.xlu1 %v8454_v12 }
0x4d0a   : > { %v8365_v14 = vpop.f32.mrb[84].mxu0 }
0x4d0b   : > { %v8369_v17 = vadd.f32 %v8365_v14, %v8130_v52  ;;  %v10122_v18 = vpop.f32.mrb[85].mxu0  ;;  %v9338_v52 = vld [vmem:[%s11973_s0 + $0x70] sm:$0xff] }
0x4d0c   : > { %v10297_v54 = vpack.c.bf16 %v9339_v53, %v9338_v52  ;;  %v9345_v18 = vld [vmem:[%s11979_s9 + $0x1] ss:$0 sm:$0xff] }
0x4d67   : > { %v8456_v39 = vpop.xlane.xlu1 %8455 }
0x4d68   : > { %10512 = vrcp.f32 %v8456_v39 }
0x4d72   : > { %v10513_v41 = vpop.eup %10512 }
0x4d73   : > { %v8458_v19 = vmul.f32 %v10513_v41, %v10511_v10  ;;  %v9346_v41 = vld [vmem:[%s11981_s27 + $0x1] ss:$0 sm:$0xff] }
0x4d75   : > { %10131 = vmatmul.mubr.msk.f32.vlgmr.msra.gmra.mrb[86].mxu0 %vm1423_vm2, %v8458_v19 }
0x4d76   : > { %10146 = vmatprep.mubr.msk.f32.mxu0 %vm10627_vm0, %v10628_v6  ;;  %10283 = vmatpush3.bf16.msra.mxu0 %v10282_v31 }
0x4d77   : > { %10284 = vmatprep.subr.bf16.mxu0 %v10626_v3 }
0x4e48   : > { %v8531_v1 = vpop.f32.mrb[86].mxu0 }
0x4e49   : > { %v10132_v20 = vpop.f32.mrb[87].mxu0  ;;  %10136 = vmatmul.mubr.msk.f32.vlgmr.msra.gmra.mrb[82].mxu1 %vm1423_vm2, %v8531_v1 }
0x4e4a   : > { %10165 = vmatprep.mubr.msk.f32.mxu1 %vm10627_vm0, %v10628_v6  ;;  %10289 = vmatpush3.bf16.msra.mxu1 %v10288_v36 }
0x4e4b   : > { %10290 = vmatprep.subr.bf16.mxu1 %v10626_v3 }
0x4e4e   : > { %10292 = vmatpush3.bf16.msra.mxu1 %v10291_v38 }
0x4e4f   : > { %10293 = vmatprep.subr.bf16.mxu1 %v10626_v3 }
0x4e52   : > { %10295 = vmatpush3.bf16.msra.mxu1 %v10294_v46 }
0x4e53   : > { %10296 = vmatprep.subr.bf16.mxu1 %v10626_v3 }
0x4e56   : > { %10298 = vmatpush3.bf16.msra.mxu1 %v10297_v54 }
0x4f1c   : > { %v8604_v0 = vpop.f32.mrb[82].mxu1 }
0x4f1d   : > { %v8608_v21 = vadd.f32 %v8604_v0, %v8369_v17  ;;  %v10137_v22 = vpop.f32.mrb[83].mxu1 }
0x4f1f   : > { %v8609_v56 = vadd.f32 %v8608_v21, %v11628_v62  ;;  %v9327_v62 = vld [vmem:[%s11971_s17 + $0x30] sm:$0xff] }
0x4f20   : > { %v10285_v33 = vpack.c.bf16 %v9328_v32, %v9327_v62 }
0x4f21   : > { %v8614_v23 = vsel %vm1335_vm1, %v8609_v56, 0.0 }
0x4f22   : > { %8615 = vadd.xlane.f32.xlu1 %v8614_v23  ;;  %10286 = vmatpush3.bf16.msra.mxu0 %v10285_v33  ;;  %v9347_v33 = vld [vmem:[%s11986_s3] ss:$0 sm:$0xff]  ;;  %s8965_s3 = scalar_lea.sflag [#allocation3], %s1290_s22 }
0x4f23   : > { %10299 = vmatprep.subr.bf16.mxu0 %v10626_v3 }
0x4faf   : > { %v8616_v59 = vpop.xlane.xlu1 %8615 }
0x4fb0   : > { %v8617_v24 = vmul.f32 0.03125, %v8616_v59  ;;  %v8879_v59 = vld [vmem:[%s11985_s25] sm:$0xff] }
0x4fb2   : > { %v8618_v40 = vsub.f32 %v8609_v56, %v8617_v24  ;;  %v8880_v24 = vld [vmem:[%s11985_s25 + $0x8] sm:$0xff] }
0x4fb4   : > { %v8619_v25 = vmul.f32 %v8618_v40, %v8618_v40 }
0x4fb6   : > { %v8620_v26 = vsel %vm1335_vm1, %v8619_v25, 0.0  ;;  %v8881_v25 = vld [vmem:[%s11985_s25 + $0x10] sm:$0xff] }
0x4fb7   : > { %8621 = vadd.xlane.f32.xlu1 %v8620_v26  ;;  %v8882_v26 = vld [vmem:[%s11985_s25 + $0x18] sm:$0xff] }
0x4fb8   : > { %v10303_v28 = vpack.c.bf16 %v8882_v26, %v8881_v25 }
0x5044   : > { %v8622_v43 = vpop.xlane.xlu1 %8621 }
0x5045   : > { %v8623_v45 = vmul.f32 0.03125, %v8622_v43 }
0x5047   : > { %v8624_v47 = vadd.f32 1e-05, %v8623_v45 }
0x5049   : > { %10514 = vrsqrt.f32 %v8624_v47 }
0x5053   : > { %v10515_v8 = vpop.eup %10514 }
0x5054   : > { %v8626_v49 = vmul.f32 %v10515_v8, %v8618_v40  ;;  %v10300_v40 = vpack.c.bf16 %v8880_v24, %v8879_v59 }
0x5056   : > { %v8633_v30 = vmul.f32 %v9323_v48, %v8626_v49 }
0x5058   : > { %v8640_v51 = vadd.f32 %v9324_v50, %v8633_v30 }
0x505a   : > { %10147 = vmatmul.mubr.msk.f32.vlgmr.msra.gmra.mrb[88].mxu0 %vm1335_vm1, %v8640_v51 }
0x505b   : > { %10176 = vmatprep.mubr.msk.f32.mxu0 %vm10627_vm0, %v10628_v6  ;;  %10301 = vmatpush3.bf16.msra.mxu0 %v10300_v40 }
0x505c   : > { %10302 = vmatprep.subr.bf16.mxu0 %v10626_v3  ;;  %v9349_v3 = vld [vmem:[%s11989_s2] ss:$0 sm:$0xff]  ;;  %s10524_s2 = sshll.u32 %s10640_s26, 4  ;;  %s10525_s2 = int_to_ptr.vmem [resolvable:$false] %s10524_s2 }
0x505d   : > { %s10526_s23 = scalar_lea.vmem %s10525_s2, 256  ;;  %p10527_p0 = scmp.lt.s32.totalorder %s11769_s13, %s10525_s2 }
0x505e   : > { %p10528_p1 = scmp.lt.s32.totalorder %s10526_s23, %s10520_s18 }
0x505f   : > { %10304 = vmatpush3.bf16.msra.mxu0 %v10303_v28 }
0x5060   : > { %p10529_p2 = por %p10528_p1, %p10527_p0 }
0x5062   : > { %p10530_p3 = pnand %p10529_p2, %p10523_p13 }
0x512d   : > { %v8723_v57 = vpop.f32.mrb[88].mxu0 }
0x512e   : > { %v8724_v15 = vadd.f32 %v9330_v55, %v8723_v57  ;;  %v10148_v58 = vpop.f32.mrb[89].mxu0 }
0x5130   : > { %v8727_v60 = vmax.f32 %v8724_v15, 0.0 }
0x5132   : > { %10166 = vmatmul.mubr.msk.f32.vlgmr.msra.gmra.mrb[84].mxu1 %vm2513_vm3, %v8727_v60 }
0x5205   : > { %v8814_v63 = vpop.f32.mrb[84].mxu1 }
0x5206   : > { %v8815_v44 = vadd.f32 %v9341_v61, %v8814_v63  ;;  %v10167_v2 = vpop.f32.mrb[85].mxu1 }
0x5208   : > { %v8818_v4 = vadd.f32 %v8815_v44, %v8640_v51 }
0x520a   : > { %v8823_v6 = vsel %vm1335_vm1, %v8818_v4, 0.0 }
0x520b   : > { %8824 = vadd.xlane.f32.xlu1 %v8823_v6 }
0x5298   : > { %v8825_v27 = vpop.xlane.xlu1 %8824 }
0x5299   : > { %v8826_v5 = vmul.f32 0.03125, %v8825_v27 }
0x529b   : > { %v8827_v7 = vsub.f32 %v8818_v4, %v8826_v5 }
0x529d   : > { %v8828_v9 = vmul.f32 %v8827_v7, %v8827_v7 }
0x529f   : > { %v8829_v10 = vsel %vm1335_vm1, %v8828_v9, 0.0 }
0x52a0   : > { %8830 = vadd.xlane.f32.xlu1 %v8829_v10 }
0x532d   : > { %v8831_v12 = vpop.xlane.xlu1 %8830 }
0x532e   : > { %v8832_v13 = vmul.f32 0.03125, %v8831_v12 }
0x5330   : > { %v8833_v14 = vadd.f32 1e-05, %v8832_v13 }
0x5332   : > { %10516 = vrsqrt.f32 %v8833_v14 }
0x533c   : > { %v10517_v17 = vpop.eup %10516 }
0x533d   : > { %v8835_v39 = vmul.f32 %v10517_v17, %v8827_v7 }
0x533f   : > { %v8842_v19 = vmul.f32 %v9345_v18, %v8835_v39 }
0x5341   : > { %v8849_v1 = vadd.f32 %v9346_v41, %v8842_v19 }
0x5343   : > { %v8852_v20 = vsel %vm1335_vm1, %v8849_v1, 0.0 }
0x5344   : > { %8853 = vadd.xlane.f32.xlu0 %v8852_v20 }
0x53d1   : > { %v8854_v0 = vpop.xlane.xlu0 %8853 }
0x53d2   : > { %v8855_v21 = vmul.f32 0.03125, %v8854_v0 }
0x53d4   : > { %v8856_v22 = vsub.f32 %v8849_v1, %v8855_v21 }
0x53d6   : > { %v8857_v56 = vmul.f32 %v8856_v22, %v8856_v22 }
0x53d8   : > { %v8858_v23 = vsel %vm1335_vm1, %v8857_v56, 0.0 }
0x53d9   : > { %8859 = vadd.xlane.f32.xlu1 %v8858_v23 }
0x5466   : > { %v8860_v29 = vpop.xlane.xlu1 %8859 }
0x5467   : > { %v8861_v31 = vmul.f32 0.03125, %v8860_v29 }
0x5469   : > { %v8862_v62 = vadd.f32 1e-05, %v8861_v31 }
0x546b   : > { %10518 = vrsqrt.f32 %v8862_v62 }
0x5475   : > { %v10519_v32 = vpop.eup %10518 }
0x5476   : > { %v8864_v11 = vmul.f32 %v10519_v32, %v8856_v22 }
0x5478   : > { %v8871_v35 = vmul.f32 %v9347_v33, %v8864_v11 }
0x547a   : > { %v8878_v36 = vadd.f32 %v9348_v34, %v8871_v35 }
0x547c   : > { %10177 = vmatmul.mubr.msk.f32.vlgmr.msra.gmra.mrb[90].mxu0 %vm1335_vm1, %v8878_v36 }
0x554f   : > { %v8959_v37 = vpop.f32.mrb[90].mxu0 }
0x5550   : > { %v8960_v38 = vadd.f32 %v9349_v3, %v8959_v37  ;;  %v10178_v42 = vpop.f32.mrb[91].mxu0 }
0x5552   : > { %8963 = vst [vmem:[%s1292_s5] sm:$0xff] %v8960_v38 }
0x5553   : > { %10533 = shalt.err (!%p10530_p3)
}
0x5554   : > { %s10534_s22 = scalar_lea.hbm %s11767_s21, 128  ;;  %s10538_s15 = scalar_lea.hbm %s11991_s28, 256 }
0x5555   : > { %p10535_p4 = scmp.ne.s32.totalorder %s11767_s21, %s10534_s22  ;;  %p10539_p9 = scmp.lt.u32.totalorder %s11767_s21, %s11991_s28 }
0x5556   : > { %p10540_p10 = scmp.lt.u32.totalorder %s10538_s15, %s10534_s22  ;;  %p10542_p12 = scmp.lt.u32.totalorder %s10534_s22, %s11767_s21 }
0x5557   : > { %p10536_p7 = pnand %p10535_p4, %p10899_p5 }
0x5558   : > { %p10541_p11 = por %p10540_p10, %p10539_p9 }
0x5559   : > { %p10537_p8 = pneg %p10536_p7 }
0x555a   : > { %p10543_p0 = por %p10542_p12, %p10541_p11 }
0x555c   : > { %p10544_p13 = pnand %p10543_p0, %p10537_p8 }
0x555e   : > { %10547 = shalt.err (!%p10544_p13)
}
0x555f   : > { %10305 = dma.vmem_to_hbm [thread:$0]  (%p10899_p5), %s11769_s13, 128, %s11767_s21, %s8965_s3  }
0x5560 PF: > { %s11993_s16 = sld [smem:[#allocation51_spill]]  ;;  %s11994_s5 = sld [smem:[#allocation48_spill]] }
0x5566   : > { %p10311_p1 = scmp.ge.s32.totalorder %s11993_s16, 2  ;;  %s8990_s26 = sand.u32 1, %s11994_s5  }
0x5567   : > { %s8991_s2 = scalar_lea.sflag [#allocation3], %s8990_s26 }
0x5568   : > { %p10308_p2 = pnand %p10311_p1, %p10903_p6 }
0x556a   : > { %10565 = dma.done.wait (!%p10308_p2), %s8991_s2, 128  }
0x556b   : > { %10567 = vsyncadd (!%p10308_p2), %s8991_s2, 4294967168  ;;  %s11996_s22 = sld [smem:[#allocation53_spill]]  ;;  %s11997_s15 = sld [smem:[#allocation49_spill]] }
0x556c   : > { %s11998_s16 = sld [smem:[#allocation50_spill]]  ;;  %s11999_s18 = sld [smem:[#allocation54_spill]] }
0x5571   : > { %p95_p3 = scmp.ge.s32.totalorder %s11996_s22, 4  }
0x5573   :  { %97 = sbr.rel (!%p95_p3) target bundleno = 107 (0x6b), region = 306 }
0x557a   :  { %8996 = vsyncpa [#allocation3], 1 }
0x557b   :  { %8998 = vsyncpa [#allocation3 + $0x1], 1 }

</bundles_post_ra>
